<compile_context>
chip_gen: v7x
topology: tpu7x:2x2x1
jax: 0.10.0
libtpu: 0.0.40
codegen_flags: <defaults>
</compile_context>

<pallas_src>
import math

import jax
import jax.numpy as jnp
from jax.experimental import pallas as pl
from jax.experimental.pallas import tpu as pltpu

INF = 1000000000.0
LN_EPS = 1e-5
LANE = 128


# ----------------------------------------------------------------------------
# In-kernel building blocks (pure value functions, traced inside the kernel)
# ----------------------------------------------------------------------------
def _layernorm(x):
    mu = jnp.mean(x, axis=-1, keepdims=True)
    var = jnp.mean(jnp.square(x - mu), axis=-1, keepdims=True)
    return (x - mu) * jax.lax.rsqrt(var + LN_EPS)


def _mha_block(x_q, x_kv, mask, wq, wk, wv, wo, w1, w2, n_head):
    """One MutiHeadAttention block with merged-head (lane-dense) projections.

    x_q : (Nq, d) f32  -- also the residual input (reference's `query`)
    x_kv: (Nk, d) f32
    mask: (Nq, Nk) f32 additive (-1e9 / 0)
    wq/wk: (d, H*dk) bf16   (wq already pre-scaled by 1/sqrt(dk) on the host)
    wv   : (d, H*dv) bf16
    wo   : (H*dv, d) bf16
    w1   : (d, mid) bf16 or None; w2: (mid, d) bf16 or None
    """
    H = n_head
    dk = wq.shape[1] // H
    dv = wv.shape[1] // H

    xq16 = x_q.astype(jnp.bfloat16)
    xkv16 = x_kv.astype(jnp.bfloat16)

    # Lane-dense merged-head projections: one MXU matmul each.
    q = jnp.dot(xq16, wq, preferred_element_type=jnp.float32)    # (Nq, H*dk)
    k = jnp.dot(xkv16, wk, preferred_element_type=jnp.float32)   # (Nk, H*dk)
    v = jnp.dot(xkv16, wv, preferred_element_type=jnp.float32)   # (Nk, H*dv)

    # Per-head attention via static lane slices (H is small and static).
    # TODO(synk): for production sequence lengths, tile over keys with an
    # online (flash-style) softmax + per-tile masks so the (Nq, Nk) score
    # tensor never materializes and the key axis stays lane-dense.
    qkt_dims = (((1,), (1,)), ((), ()))      # q @ k^T without a transpose
    head_outs = []
    for h in range(H):
        q_h = q[:, h * dk:(h + 1) * dk].astype(jnp.bfloat16)
        k_h = k[:, h * dk:(h + 1) * dk].astype(jnp.bfloat16)
        v_h = v[:, h * dv:(h + 1) * dv].astype(jnp.bfloat16)
        s = jax.lax.dot_general(q_h, k_h, qkt_dims,
                                preferred_element_type=jnp.float32)   # (Nq, Nk)
        s = s + mask
        s = s - jnp.max(s, axis=-1, keepdims=True)
        p = jnp.exp(s)
        p = p * pl.reciprocal(jnp.sum(p, axis=-1, keepdims=True), approx=True)
        head_outs.append(
            jnp.dot(p.astype(jnp.bfloat16), v_h,
                    preferred_element_type=jnp.float32))              # (Nq, dv)

    attn = jnp.concatenate(head_outs, axis=-1).astype(jnp.bfloat16)   # (Nq, H*dv)
    out = jnp.dot(attn, wo, preferred_element_type=jnp.float32)       # (Nq, d)

    x = _layernorm(x_q + out)
    if w1 is not None:
        h1 = jnp.maximum(
            jnp.dot(x.astype(jnp.bfloat16), w1,
                    preferred_element_type=jnp.float32), 0.0)
        ff = jnp.dot(h1.astype(jnp.bfloat16), w2,
                     preferred_element_type=jnp.float32)
        x = _layernorm(x + ff)
    return x


# ----------------------------------------------------------------------------
# Fused transformer kernel: grid = (batch [parallel], layer [arbitrary])
# ----------------------------------------------------------------------------
def make_transformer_kernel(N_in, N_out, n_enc, n_dec, n_head):
    n_total = n_enc + n_dec

    def kernel(x_ref, y_ref, epc_ref, epr_ref, dpc_ref, dpr_ref,
               e_wq, e_wk, e_wv, e_wo, e_w1, e_w2,
               s_wq, s_wk, s_wv, s_wo,
               c_wq, c_wk, c_wv, c_wo, c_w1, c_w2,
               fcw_ref, fcb_ref, o_ref, x_scr, y_scr):
        l = pl.program_id(1)

        # New batch tile: seed the resident activations from the embeddings.
        @pl.when(l == 0)
        def _():
            x_scr[...] = x_ref[0]          # (N_in, d) f32
            y_scr[...] = y_ref[0]          # (N_out, d) f32

        # ------------------------- encoder layer -------------------------
        @pl.when(l < n_enc)
        def _():
            epc = epc_ref[0]               # (N_in, 1)  query pad flag
            epr = epr_ref[0]               # (1, N_in)  key pad flag
            enc_mask = jnp.where(epc + epr > 0.0, -INF, 0.0)   # (N_in, N_in)
            x_scr[...] = _mha_block(x_scr[...], x_scr[...], enc_mask,
                                    e_wq[0], e_wk[0], e_wv[0], e_wo[0],
                                    e_w1[0], e_w2[0], n_head)

        # ------------------------- decoder layer -------------------------
        @pl.when(l >= n_enc)
        def _():
            dpc = dpc_ref[0]               # (N_out, 1)
            dpr = dpr_ref[0]               # (1, N_out)
            epr = epr_ref[0]               # (1, N_in)
            row = jax.lax.broadcasted_iota(jnp.int32, (N_out, N_out), 0)
            col = jax.lax.broadcasted_iota(jnp.int32, (N_out, N_out), 1)
            self_mask = jnp.where(
                jnp.logical_or(dpc + dpr > 0.0, col > row), -INF, 0.0)
            cross_mask = jnp.where(dpc + epr > 0.0, -INF, 0.0)  # (N_out, N_in)

            y = _mha_block(y_scr[...], y_scr[...], self_mask,
                           s_wq[0], s_wk[0], s_wv[0], s_wo[0],
                           None, None, n_head)
            y_scr[...] = _mha_block(y, x_scr[...], cross_mask,
                                    c_wq[0], c_wk[0], c_wv[0], c_wo[0],
                                    c_w1[0], c_w2[0], n_head)

        # ------------- final fc, lane-dense 128-wide output slab ------------
        @pl.when(l == n_total - 1)
        def _():
            logits = jnp.dot(y_scr[...].astype(jnp.bfloat16), fcw_ref[...],
                             preferred_element_type=jnp.float32) + fcb_ref[...]
            o_ref[0] = logits.astype(o_ref.dtype)

    return kernel


# ----------------------------------------------------------------------------
# Host-side glue: pad flags, embeddings, positional encoding, params
# ----------------------------------------------------------------------------
def make_positional_encoding(max_len, d):
    pos = jnp.arange(max_len, dtype=jnp.float32)[:, None]
    div = jnp.exp(jnp.arange(0, d, 2, dtype=jnp.float32) * (-math.log(10000.0) / d))
    pe = jnp.zeros((max_len, d), jnp.float32)
    pe = pe.at[:, 0::2].set(jnp.sin(pos * div))
    pe = pe.at[:, 1::2].set(jnp.cos(pos * div))
    return pe


def init_transformer_params(key, inp_voc, out_voc, out_dim, d, n_enc, n_dec,
                            n_head, qk_c, v_c, mid_c, max_len):
    F = max(LANE, ((out_dim + LANE - 1) // LANE) * LANE)
    keys = iter(jax.random.split(key, 32))

    def w(shape):
        return jax.random.normal(next(keys), shape, jnp.float32) * 0.02

    bf = jnp.bfloat16
    scale = 1.0 / math.sqrt(qk_c)          # folded into WQ (zero in-kernel cost)
    p = {"n_head": n_head}
    p["enc_emb"] = w((inp_voc, d))
    p["dec_emb"] = w((out_voc, d))
    p["pe"] = make_positional_encoding(max_len, d)
    # Merged-head (lane-dense) weight stacks; leading axis = layer.
    p["e_wq"] = (w((n_enc, d, n_head * qk_c)) * scale).astype(bf)
    p["e_wk"] = w((n_enc, d, n_head * qk_c)).astype(bf)
    p["e_wv"] = w((n_enc, d, n_head * v_c)).astype(bf)
    p["e_wo"] = w((n_enc, n_head * v_c, d)).astype(bf)
    p["e_w1"] = w((n_enc, d, mid_c)).astype(bf)
    p["e_w2"] = w((n_enc, mid_c, d)).astype(bf)
    # decoder self-attention (no FFN)
    p["s_wq"] = (w((n_dec, d, n_head * qk_c)) * scale).astype(bf)
    p["s_wk"] = w((n_dec, d, n_head * qk_c)).astype(bf)
    p["s_wv"] = w((n_dec, d, n_head * v_c)).astype(bf)
    p["s_wo"] = w((n_dec, n_head * v_c, d)).astype(bf)
    # decoder cross-attention (+FFN)
    p["c_wq"] = (w((n_dec, d, n_head * qk_c)) * scale).astype(bf)
    p["c_wk"] = w((n_dec, d, n_head * qk_c)).astype(bf)
    p["c_wv"] = w((n_dec, d, n_head * v_c)).astype(bf)
    p["c_wo"] = w((n_dec, n_head * v_c, d)).astype(bf)
    p["c_w1"] = w((n_dec, d, mid_c)).astype(bf)
    p["c_w2"] = w((n_dec, mid_c, d)).astype(bf)
    # final fc (with bias), zero-padded to a 128-lane slab
    fw = w((d, out_dim))
    fb = w((1, out_dim))
    p["fc_w"] = jnp.pad(fw, ((0, 0), (0, F - out_dim))).astype(bf)
    p["fc_b"] = jnp.pad(fb, ((0, 0), (0, F - out_dim)))     # f32
    return p


def _cost_estimate(args, out_bytes, B, N_in, N_out, d, H, dk, dv, mid,
                   n_enc, n_dec, F):
    def mha_flops(Nq, Nk, ffn):
        f = 2 * Nq * d * H * dk          # Q proj
        f += 2 * Nk * d * H * dk         # K proj
        f += 2 * Nk * d * H * dv         # V proj
        f += 2 * H * Nq * Nk * dk        # scores
        f += 2 * H * Nq * Nk * dv        # attn @ V
        f += 2 * Nq * H * dv * d         # out proj
        if ffn:
            f += 2 * 2 * Nq * d * mid    # FFN
        return B * f

    flops = n_enc * mha_flops(N_in, N_in, True)
    flops += n_dec * (mha_flops(N_out, N_out, False) + mha_flops(N_out, N_in, True))
    flops += 2 * B * N_out * d * F
    transcend = B * H * (n_enc * N_in * N_in
                         + n_dec * (N_out * N_out + N_out * N_in))
    bytes_accessed = sum(int(a.size) * a.dtype.itemsize for a in args) + out_bytes
    return pl.CostEstimate(flops=int(flops), transcendentals=int(transcend),
                           bytes_accessed=int(bytes_accessed))


def transformer_forward(params, inp, out_tok, pad_num, out_dim):
    B, N_in = inp.shape
    _, N_out = out_tok.shape
    d = params["enc_emb"].shape[1]
    F = params["fc_w"].shape[1]
    n_enc = params["e_wq"].shape[0]
    n_dec = params["s_wq"].shape[0]
    n_head = params["n_head"]
    mid = params["e_w1"].shape[2]
    dk = params["e_wq"].shape[2] // n_head
    dv = params["e_wv"].shape[2] // n_head
    n_total = n_enc + n_dec

    # Embedding gather + sinusoidal PE (plain JAX glue). Dropout == identity.
    x = (jnp.take(params["enc_emb"], inp, axis=0)
         + params["pe"][:N_in][None]).astype(jnp.float32)          # (B, N_in, d)
    y = (jnp.take(params["dec_emb"], out_tok, axis=0)
         + params["pe"][:N_out][None]).astype(jnp.float32)         # (B, N_out, d)

    # O(N) pad flags; (Nq, Nk) additive masks are rebuilt inside VMEM.
    ep = (inp == pad_num).astype(jnp.float32)
    dp = (out_tok == pad_num).astype(jnp.float32)
    epc, epr = ep[:, :, None], ep[:, None, :]      # (B, N_in, 1), (B, 1, N_in)
    dpc, dpr = dp[:, :, None], dp[:, None, :]      # (B, N_out, 1), (B, 1, N_out)

    args = [x, y, epc, epr, dpc, dpr,
            params["e_wq"], params["e_wk"], params["e_wv"], params["e_wo"],
            params["e_w1"], params["e_w2"],
            params["s_wq"], params["s_wk"], params["s_wv"], params["s_wo"],
            params["c_wq"], params["c_wk"], params["c_wv"], params["c_wo"],
            params["c_w1"], params["c_w2"],
            params["fc_w"], params["fc_b"]]

    # --- BlockSpecs ---------------------------------------------------------
    # Grid: (batch element ["parallel" -> both v7x TensorCores], layer
    # ["arbitrary" -> weights double-buffered behind the previous layer]).
    def batch_spec(a):                      # per-batch-element activation/flag
        blk = (1,) + a.shape[1:]
        nd = a.ndim
        return pl.BlockSpec(blk, lambda b, l, _nd=nd: (b,) + (0,) * (_nd - 1))

    def enc_w_spec(a):                      # one encoder layer's weight slice
        blk = (1,) + a.shape[1:]
        return pl.BlockSpec(blk, lambda b, l: (jnp.minimum(l, n_enc - 1), 0, 0))

    def dec_w_spec(a):                      # one decoder layer's weight slice
        blk = (1,) + a.shape[1:]
        return pl.BlockSpec(blk, lambda b, l: (jnp.maximum(l - n_enc, 0), 0, 0))

    def const_spec(a):                      # batch/layer-invariant (fc w, b)
        nd = a.ndim
        return pl.BlockSpec(a.shape, lambda b, l, _nd=nd: (0,) * _nd)

    # TODO(synk): at production sizes, mark the layer-invariant inputs
    # (x/y/pad flags/fc) with pipeline_mode=pl.Buffered(1) (or load them once
    # into scratch) so the default double-buffering doesn't duplicate them.
    in_specs = ([batch_spec(a) for a in args[:6]]
                + [enc_w_spec(a) for a in args[6:12]]
                + [dec_w_spec(a) for a in args[12:22]]
                + [const_spec(args[22]), const_spec(args[23])])
    out_specs = pl.BlockSpec((1, N_out, F), lambda b, l: (b, 0, 0))

    kernel = make_transformer_kernel(N_in, N_out, n_enc, n_dec, n_head)
    ce = _cost_estimate(args, B * N_out * F * 4, B, N_in, N_out, d,
                        n_head, dk, dv, mid, n_enc, n_dec, F)

    logits = pl.pallas_call(
        kernel,
        out_shape=jax.ShapeDtypeStruct((B, N_out, F), jnp.float32),
        grid=(B, n_total),
        in_specs=in_specs,
        out_specs=out_specs,
        scratch_shapes=[pltpu.VMEM((N_in, d), jnp.float32),    # encoder stream
                        pltpu.VMEM((N_out, d), jnp.float32)],  # decoder stream
        compiler_params=pltpu.CompilerParams(
            dimension_semantics=("parallel", "arbitrary"),
            # Explicit budget: above the 16/32 MiB scoped defaults, with
            # headroom under v7x's 64 MiB physical VMEM.
            vmem_limit_bytes=48 * 1024 * 1024),
        cost_estimate=ce,
    )(*args)

    return logits[:, :, :out_dim]


# ----------------------------------------------------------------------------
if __name__ == "__main__":
    batch = 2
    in_len = 8
    out_len = 8
    d = 32
    n_head = 2
    qk_c = 16
    v_c = 16
    mid_c = 64           # (original hardcodes 2048; scaled down for the demo)
    inp_voc = 50
    out_voc = 60
    out_dim = 16
    pad_num = 0
    n_encoder = 2        # == n_encoder_head in the original (so the arg swap
    n_decoder = 2        #    in Transformer.__init__ has no effect here)

    root = jax.random.PRNGKey(0)
    k_params, k_inp, k_out = jax.random.split(root, 3)

    params = init_transformer_params(
        k_params, inp_voc, out_voc, out_dim, d,
        n_enc=n_encoder, n_dec=n_decoder,
        n_head=n_head, qk_c=qk_c, v_c=v_c, mid_c=mid_c, max_len=64)

    inp = jax.random.randint(k_inp, (batch, in_len), 1, inp_voc, dtype=jnp.int32)
    out_tok = jax.random.randint(k_out, (batch, out_len), 1, out_voc, dtype=jnp.int32)
    # add some padding tokens so the masks are exercised
    inp = inp.at[:, -2:].set(pad_num)
    out_tok = out_tok.at[:, -1:].set(pad_num)

    result = transformer_forward(params, inp, out_tok, pad_num, out_dim)
    result = jax.block_until_ready(result)

    assert result.shape == (batch, out_len, out_dim)
    assert bool(jnp.all(jnp.isfinite(result)))
    print("KERNEL_OK")
</pallas_src>

<mosaic_0001>
module attributes {stable_mosaic.version = 11 : i64} {
  func.func @kernel(%arg0: i32, %arg1: i32, %arg2: memref<1x8x32xf32, #tpu.memory_space<vmem>>, %arg3: memref<1x8x32xf32, #tpu.memory_space<vmem>>, %arg4: memref<1x8x1xf32, #tpu.memory_space<vmem>>, %arg5: memref<1x1x8xf32, #tpu.memory_space<vmem>>, %arg6: memref<1x8x1xf32, #tpu.memory_space<vmem>>, %arg7: memref<1x1x8xf32, #tpu.memory_space<vmem>>, %arg8: memref<1x32x32xbf16, #tpu.memory_space<vmem>>, %arg9: memref<1x32x32xbf16, #tpu.memory_space<vmem>>, %arg10: memref<1x32x32xbf16, #tpu.memory_space<vmem>>, %arg11: memref<1x32x32xbf16, #tpu.memory_space<vmem>>, %arg12: memref<1x32x64xbf16, #tpu.memory_space<vmem>>, %arg13: memref<1x64x32xbf16, #tpu.memory_space<vmem>>, %arg14: memref<1x32x32xbf16, #tpu.memory_space<vmem>>, %arg15: memref<1x32x32xbf16, #tpu.memory_space<vmem>>, %arg16: memref<1x32x32xbf16, #tpu.memory_space<vmem>>, %arg17: memref<1x32x32xbf16, #tpu.memory_space<vmem>>, %arg18: memref<1x32x32xbf16, #tpu.memory_space<vmem>>, %arg19: memref<1x32x32xbf16, #tpu.memory_space<vmem>>, %arg20: memref<1x32x32xbf16, #tpu.memory_space<vmem>>, %arg21: memref<1x32x32xbf16, #tpu.memory_space<vmem>>, %arg22: memref<1x32x64xbf16, #tpu.memory_space<vmem>>, %arg23: memref<1x64x32xbf16, #tpu.memory_space<vmem>>, %arg24: memref<32x128xbf16, #tpu.memory_space<vmem>>, %arg25: memref<1x128xf32, #tpu.memory_space<vmem>>, %arg26: memref<1x8x128xf32, #tpu.memory_space<vmem>>, %arg27: memref<8x32xf32, #tpu.memory_space<vmem>>, %arg28: memref<8x32xf32, #tpu.memory_space<vmem>>) attributes {dimension_semantics = [#tpu.dimension_semantics<parallel>, #tpu.dimension_semantics<arbitrary>], iteration_bounds = array<i64: 2, 4>, scalar_prefetch = 0 : i64, scratch_operands = 2 : i64, tpu.core_type = #tpu.core_type<tc>, window_params = [{transform_indices = @transform_0, window_bounds = array<i64: 1, 8, 32>}, {transform_indices = @transform_1, window_bounds = array<i64: 1, 8, 32>}, {transform_indices = @transform_2, window_bounds = array<i64: 1, 8, 1>}, {transform_indices = @transform_3, window_bounds = array<i64: 1, 1, 8>}, {transform_indices = @transform_4, window_bounds = array<i64: 1, 8, 1>}, {transform_indices = @transform_5, window_bounds = array<i64: 1, 1, 8>}, {transform_indices = @transform_6, window_bounds = array<i64: 1, 32, 32>}, {transform_indices = @transform_7, window_bounds = array<i64: 1, 32, 32>}, {transform_indices = @transform_8, window_bounds = array<i64: 1, 32, 32>}, {transform_indices = @transform_9, window_bounds = array<i64: 1, 32, 32>}, {transform_indices = @transform_10, window_bounds = array<i64: 1, 32, 64>}, {transform_indices = @transform_11, window_bounds = array<i64: 1, 64, 32>}, {transform_indices = @transform_12, window_bounds = array<i64: 1, 32, 32>}, {transform_indices = @transform_13, window_bounds = array<i64: 1, 32, 32>}, {transform_indices = @transform_14, window_bounds = array<i64: 1, 32, 32>}, {transform_indices = @transform_15, window_bounds = array<i64: 1, 32, 32>}, {transform_indices = @transform_16, window_bounds = array<i64: 1, 32, 32>}, {transform_indices = @transform_17, window_bounds = array<i64: 1, 32, 32>}, {transform_indices = @transform_18, window_bounds = array<i64: 1, 32, 32>}, {transform_indices = @transform_19, window_bounds = array<i64: 1, 32, 32>}, {transform_indices = @transform_20, window_bounds = array<i64: 1, 32, 64>}, {transform_indices = @transform_21, window_bounds = array<i64: 1, 64, 32>}, {pipeline_mode = #tpu.pipeline_mode<synchronous>, transform_indices = @transform_22, window_bounds = array<i64: 32, 128>}, {pipeline_mode = #tpu.pipeline_mode<synchronous>, transform_indices = @transform_23, window_bounds = array<i64: 1, 128>}, {transform_indices = @transform_24, window_bounds = array<i64: 1, 8, 128>}]} {
    %c0_i32 = arith.constant 0 : i32
    %0 = arith.cmpi eq, %arg1, %c0_i32 : i32
    %1 = arith.extui %0 : i1 to i32
    %c0_i32_0 = arith.constant 0 : i32
    %2 = arith.cmpi ne, %1, %c0_i32_0 : i32
    scf.if %2 {
      %c0 = arith.constant 0 : index
      %c0_5 = arith.constant 0 : index
      %c0_6 = arith.constant 0 : index
      %12 = vector.load %arg2[%c0, %c0_5, %c0_6] : memref<1x8x32xf32, #tpu.memory_space<vmem>>, vector<1x8x32xf32>
      %13 = vector.shape_cast %12 : vector<1x8x32xf32> to vector<8x32xf32>
      %c0_7 = arith.constant 0 : index
      %c0_8 = arith.constant 0 : index
      %14 = vector.load %arg27[%c0_7, %c0_8] : memref<8x32xf32, #tpu.memory_space<vmem>>, vector<8x32xf32>
      tpu.vector_store %arg27[%c0_7, %c0_8], %13 {strides = array<i32>} : memref<8x32xf32, #tpu.memory_space<vmem>>, vector<8x32xf32>,
      %c0_9 = arith.constant 0 : index
      %c0_10 = arith.constant 0 : index
      %c0_11 = arith.constant 0 : index
      %15 = vector.load %arg3[%c0_9, %c0_10, %c0_11] : memref<1x8x32xf32, #tpu.memory_space<vmem>>, vector<1x8x32xf32>
      %16 = vector.shape_cast %15 : vector<1x8x32xf32> to vector<8x32xf32>
      %c0_12 = arith.constant 0 : index
      %c0_13 = arith.constant 0 : index
      %17 = vector.load %arg28[%c0_12, %c0_13] : memref<8x32xf32, #tpu.memory_space<vmem>>, vector<8x32xf32>
      tpu.vector_store %arg28[%c0_12, %c0_13], %16 {strides = array<i32>} : memref<8x32xf32, #tpu.memory_space<vmem>>, vector<8x32xf32>,
    } else {
    }
    %c2_i32 = arith.constant 2 : i32
    %3 = arith.cmpi slt, %arg1, %c2_i32 : i32
    %4 = arith.extui %3 : i1 to i32
    %c0_i32_1 = arith.constant 0 : i32
    %5 = arith.cmpi ne, %4, %c0_i32_1 : i32
    scf.if %5 {
      %c0 = arith.constant 0 : index
      %c0_5 = arith.constant 0 : index
      %c0_6 = arith.constant 0 : index
      %12 = vector.load %arg4[%c0, %c0_5, %c0_6] : memref<1x8x1xf32, #tpu.memory_space<vmem>>, vector<1x8x1xf32>
      %13 = vector.shape_cast %12 : vector<1x8x1xf32> to vector<8x1xf32>
      %c0_7 = arith.constant 0 : index
      %c0_8 = arith.constant 0 : index
      %c0_9 = arith.constant 0 : index
      %14 = vector.load %arg5[%c0_7, %c0_8, %c0_9] : memref<1x1x8xf32, #tpu.memory_space<vmem>>, vector<1x1x8xf32>
      %15 = vector.shape_cast %14 : vector<1x1x8xf32> to vector<1x8xf32>
      %16 = vector.broadcast %13 : vector<8x1xf32> to vector<8x8xf32>
      %17 = vector.broadcast %15 : vector<1x8xf32> to vector<8x8xf32>
      %18 = arith.addf %16, %17 : vector<8x8xf32>
      %cst = arith.constant 0.000000e+00 : f32
      %19 = vector.broadcast %cst : f32 to vector<8x8xf32>
      %20 = arith.cmpf ogt, %18, %19 : vector<8x8xf32>
      %cst_10 = arith.constant -1.000000e+09 : f32
      %cst_11 = arith.constant 0.000000e+00 : f32
      %21 = vector.broadcast %cst_10 : f32 to vector<8x8xf32>
      %22 = vector.broadcast %cst_11 : f32 to vector<8x8xf32>
      %23 = arith.select %20, %21, %22 : vector<8x8xi1>, vector<8x8xf32>
      %c0_12 = arith.constant 0 : index
      %c0_13 = arith.constant 0 : index
      %24 = vector.load %arg27[%c0_12, %c0_13] : memref<8x32xf32, #tpu.memory_space<vmem>>, vector<8x32xf32>
      %c0_14 = arith.constant 0 : index
      %c0_15 = arith.constant 0 : index
      %25 = vector.load %arg27[%c0_14, %c0_15] : memref<8x32xf32, #tpu.memory_space<vmem>>, vector<8x32xf32>
      %c0_16 = arith.constant 0 : index
      %c0_17 = arith.constant 0 : index
      %c0_18 = arith.constant 0 : index
      %26 = vector.load %arg8[%c0_16, %c0_17, %c0_18] : memref<1x32x32xbf16, #tpu.memory_space<vmem>>, vector<1x32x32xbf16>
      %27 = vector.shape_cast %26 : vector<1x32x32xbf16> to vector<32x32xbf16>
      %c0_19 = arith.constant 0 : index
      %c0_20 = arith.constant 0 : index
      %c0_21 = arith.constant 0 : index
      %28 = vector.load %arg9[%c0_19, %c0_20, %c0_21] : memref<1x32x32xbf16, #tpu.memory_space<vmem>>, vector<1x32x32xbf16>
      %29 = vector.shape_cast %28 : vector<1x32x32xbf16> to vector<32x32xbf16>
      %c0_22 = arith.constant 0 : index
      %c0_23 = arith.constant 0 : index
      %c0_24 = arith.constant 0 : index
      %30 = vector.load %arg10[%c0_22, %c0_23, %c0_24] : memref<1x32x32xbf16, #tpu.memory_space<vmem>>, vector<1x32x32xbf16>
      %31 = vector.shape_cast %30 : vector<1x32x32xbf16> to vector<32x32xbf16>
      %c0_25 = arith.constant 0 : index
      %c0_26 = arith.constant 0 : index
      %c0_27 = arith.constant 0 : index
      %32 = vector.load %arg11[%c0_25, %c0_26, %c0_27] : memref<1x32x32xbf16, #tpu.memory_space<vmem>>, vector<1x32x32xbf16>
      %33 = vector.shape_cast %32 : vector<1x32x32xbf16> to vector<32x32xbf16>
      %c0_28 = arith.constant 0 : index
      %c0_29 = arith.constant 0 : index
      %c0_30 = arith.constant 0 : index
      %34 = vector.load %arg12[%c0_28, %c0_29, %c0_30] : memref<1x32x64xbf16, #tpu.memory_space<vmem>>, vector<1x32x64xbf16>
      %35 = vector.shape_cast %34 : vector<1x32x64xbf16> to vector<32x64xbf16>
      %c0_31 = arith.constant 0 : index
      %c0_32 = arith.constant 0 : index
      %c0_33 = arith.constant 0 : index
      %36 = vector.load %arg13[%c0_31, %c0_32, %c0_33] : memref<1x64x32xbf16, #tpu.memory_space<vmem>>, vector<1x64x32xbf16>
      %37 = vector.shape_cast %36 : vector<1x64x32xbf16> to vector<64x32xbf16>
      %38 = arith.truncf %24 : vector<8x32xf32> to vector<8x32xbf16>
      %39 = arith.truncf %25 : vector<8x32xf32> to vector<8x32xbf16>
      %cst_34 = arith.constant dense<0.000000e+00> : vector<8x32xf32>
      %40 = tpu.matmul %38, %27, %cst_34 {dimension_numbers = #tpu.dot_dimension_numbers<[1], [0], [0], [1], [0, 0, 1, 1], [], []>} : vector<8x32xbf16>, vector<32x32xbf16>, vector<8x32xf32> -> vector<8x32xf32>
      %cst_35 = arith.constant dense<0.000000e+00> : vector<8x32xf32>
      %41 = tpu.matmul %39, %29, %cst_35 {dimension_numbers = #tpu.dot_dimension_numbers<[1], [0], [0], [1], [0, 0, 1, 1], [], []>} : vector<8x32xbf16>, vector<32x32xbf16>, vector<8x32xf32> -> vector<8x32xf32>
      %cst_36 = arith.constant dense<0.000000e+00> : vector<8x32xf32>
      %42 = tpu.matmul %39, %31, %cst_36 {dimension_numbers = #tpu.dot_dimension_numbers<[1], [0], [0], [1], [0, 0, 1, 1], [], []>} : vector<8x32xbf16>, vector<32x32xbf16>, vector<8x32xf32> -> vector<8x32xf32>
      %43 = vector.extract_strided_slice %40 {offsets = [0, 0], sizes = [8, 16], strides = [1, 1]} : vector<8x32xf32> to vector<8x16xf32>
      %44 = arith.truncf %43 : vector<8x16xf32> to vector<8x16xbf16>
      %45 = vector.extract_strided_slice %41 {offsets = [0, 0], sizes = [8, 16], strides = [1, 1]} : vector<8x32xf32> to vector<8x16xf32>
      %46 = arith.truncf %45 : vector<8x16xf32> to vector<8x16xbf16>
      %47 = vector.extract_strided_slice %42 {offsets = [0, 0], sizes = [8, 16], strides = [1, 1]} : vector<8x32xf32> to vector<8x16xf32>
      %48 = arith.truncf %47 : vector<8x16xf32> to vector<8x16xbf16>
      %cst_37 = arith.constant dense<0.000000e+00> : vector<8x8xf32>
      %49 = tpu.matmul %44, %46, %cst_37 {dimension_numbers = #tpu.dot_dimension_numbers<[1], [1], [0], [0], [0, 0, 1, 0], [], []>} : vector<8x16xbf16>, vector<8x16xbf16>, vector<8x8xf32> -> vector<8x8xf32>
      %50 = arith.addf %49, %23 : vector<8x8xf32>
      %cst_38 = arith.constant dense<0xFF800000> : vector<8xf32>
      %51 = vector.multi_reduction <maximumf>, %50, %cst_38 [1] : vector<8x8xf32> to vector<8xf32>
      %52 = vector.shape_cast %51 : vector<8xf32> to vector<8x1xf32>
      %53 = vector.broadcast %52 : vector<8x1xf32> to vector<8x8xf32>
      %54 = arith.subf %50, %53 : vector<8x8xf32>
      %55 = math.exp %54 : vector<8x8xf32>
      %cst_39 = arith.constant dense<0.000000e+00> : vector<8xf32>
      %56 = vector.multi_reduction <add>, %55, %cst_39 [1] : vector<8x8xf32> to vector<8xf32>
      %57 = vector.shape_cast %56 : vector<8xf32> to vector<8x1xf32>
      %58 = tpu.reciprocal %57 {approx = true} : vector<8x1xf32> -> vector<8x1xf32>
      %59 = vector.broadcast %58 : vector<8x1xf32> to vector<8x8xf32>
      %60 = arith.mulf %55, %59 : vector<8x8xf32>
      %61 = arith.truncf %60 : vector<8x8xf32> to vector<8x8xbf16>
      %cst_40 = arith.constant dense<0.000000e+00> : vector<8x16xf32>
      %62 = tpu.matmul %61, %48, %cst_40 {dimension_numbers = #tpu.dot_dimension_numbers<[1], [0], [0], [1], [0, 0, 1, 1], [], []>} : vector<8x8xbf16>, vector<8x16xbf16>, vector<8x16xf32> -> vector<8x16xf32>
      %63 = vector.extract_strided_slice %40 {offsets = [0, 16], sizes = [8, 16], strides = [1, 1]} : vector<8x32xf32> to vector<8x16xf32>
      %64 = arith.truncf %63 : vector<8x16xf32> to vector<8x16xbf16>
      %65 = vector.extract_strided_slice %41 {offsets = [0, 16], sizes = [8, 16], strides = [1, 1]} : vector<8x32xf32> to vector<8x16xf32>
      %66 = arith.truncf %65 : vector<8x16xf32> to vector<8x16xbf16>
      %67 = vector.extract_strided_slice %42 {offsets = [0, 16], sizes = [8, 16], strides = [1, 1]} : vector<8x32xf32> to vector<8x16xf32>
      %68 = arith.truncf %67 : vector<8x16xf32> to vector<8x16xbf16>
      %cst_41 = arith.constant dense<0.000000e+00> : vector<8x8xf32>
      %69 = tpu.matmul %64, %66, %cst_41 {dimension_numbers = #tpu.dot_dimension_numbers<[1], [1], [0], [0], [0, 0, 1, 0], [], []>} : vector<8x16xbf16>, vector<8x16xbf16>, vector<8x8xf32> -> vector<8x8xf32>
      %70 = arith.addf %69, %23 : vector<8x8xf32>
      %cst_42 = arith.constant dense<0xFF800000> : vector<8xf32>
      %71 = vector.multi_reduction <maximumf>, %70, %cst_42 [1] : vector<8x8xf32> to vector<8xf32>
      %72 = vector.shape_cast %71 : vector<8xf32> to vector<8x1xf32>
      %73 = vector.broadcast %72 : vector<8x1xf32> to vector<8x8xf32>
      %74 = arith.subf %70, %73 : vector<8x8xf32>
      %75 = math.exp %74 : vector<8x8xf32>
      %cst_43 = arith.constant dense<0.000000e+00> : vector<8xf32>
      %76 = vector.multi_reduction <add>, %75, %cst_43 [1] : vector<8x8xf32> to vector<8xf32>
      %77 = vector.shape_cast %76 : vector<8xf32> to vector<8x1xf32>
      %78 = tpu.reciprocal %77 {approx = true} : vector<8x1xf32> -> vector<8x1xf32>
      %79 = vector.broadcast %78 : vector<8x1xf32> to vector<8x8xf32>
      %80 = arith.mulf %75, %79 : vector<8x8xf32>
      %81 = arith.truncf %80 : vector<8x8xf32> to vector<8x8xbf16>
      %cst_44 = arith.constant dense<0.000000e+00> : vector<8x16xf32>
      %82 = tpu.matmul %81, %68, %cst_44 {dimension_numbers = #tpu.dot_dimension_numbers<[1], [0], [0], [1], [0, 0, 1, 1], [], []>} : vector<8x8xbf16>, vector<8x16xbf16>, vector<8x16xf32> -> vector<8x16xf32>
      %83 = tpu.concatenate %62, %82 in 1 : vector<8x16xf32>, vector<8x16xf32> -> vector<8x32xf32>
      %84 = arith.truncf %83 : vector<8x32xf32> to vector<8x32xbf16>
      %cst_45 = arith.constant dense<0.000000e+00> : vector<8x32xf32>
      %85 = tpu.matmul %84, %33, %cst_45 {dimension_numbers = #tpu.dot_dimension_numbers<[1], [0], [0], [1], [0, 0, 1, 1], [], []>} : vector<8x32xbf16>, vector<32x32xbf16>, vector<8x32xf32> -> vector<8x32xf32>
      %86 = arith.addf %24, %85 : vector<8x32xf32>
      %cst_46 = arith.constant dense<0.000000e+00> : vector<8xf32>
      %87 = vector.multi_reduction <add>, %86, %cst_46 [1] : vector<8x32xf32> to vector<8xf32>
      %88 = vector.shape_cast %87 : vector<8xf32> to vector<8x1xf32>
      %cst_47 = arith.constant 3.200000e+01 : f32
      %89 = vector.broadcast %cst_47 : f32 to vector<8x1xf32>
      %90 = arith.divf %88, %89 : vector<8x1xf32>
      %91 = vector.broadcast %90 : vector<8x1xf32> to vector<8x32xf32>
      %92 = arith.subf %86, %91 : vector<8x32xf32>
      %93 = arith.mulf %92, %92 : vector<8x32xf32>
      %cst_48 = arith.constant dense<0.000000e+00> : vector<8xf32>
      %94 = vector.multi_reduction <add>, %93, %cst_48 [1] : vector<8x32xf32> to vector<8xf32>
      %95 = vector.shape_cast %94 : vector<8xf32> to vector<8x1xf32>
      %cst_49 = arith.constant 3.200000e+01 : f32
      %96 = vector.broadcast %cst_49 : f32 to vector<8x1xf32>
      %97 = arith.divf %95, %96 : vector<8x1xf32>
      %98 = vector.broadcast %90 : vector<8x1xf32> to vector<8x32xf32>
      %99 = arith.subf %86, %98 : vector<8x32xf32>
      %cst_50 = arith.constant 9.99999974E-6 : f32
      %100 = vector.broadcast %cst_50 : f32 to vector<8x1xf32>
      %101 = arith.addf %97, %100 : vector<8x1xf32>
      %102 = math.rsqrt %101 : vector<8x1xf32>
      %103 = vector.broadcast %102 : vector<8x1xf32> to vector<8x32xf32>
      %104 = arith.mulf %99, %103 : vector<8x32xf32>
      %105 = arith.truncf %104 : vector<8x32xf32> to vector<8x32xbf16>
      %cst_51 = arith.constant dense<0.000000e+00> : vector<8x64xf32>
      %106 = tpu.matmul %105, %35, %cst_51 {dimension_numbers = #tpu.dot_dimension_numbers<[1], [0], [0], [1], [0, 0, 1, 1], [], []>} : vector<8x32xbf16>, vector<32x64xbf16>, vector<8x64xf32> -> vector<8x64xf32>
      %cst_52 = arith.constant 0.000000e+00 : f32
      %107 = vector.broadcast %cst_52 : f32 to vector<8x64xf32>
      %108 = arith.maximumf %106, %107 : vector<8x64xf32>
      %109 = arith.truncf %108 : vector<8x64xf32> to vector<8x64xbf16>
      %cst_53 = arith.constant dense<0.000000e+00> : vector<8x32xf32>
      %110 = tpu.matmul %109, %37, %cst_53 {dimension_numbers = #tpu.dot_dimension_numbers<[1], [0], [0], [1], [0, 0, 1, 1], [], []>} : vector<8x64xbf16>, vector<64x32xbf16>, vector<8x32xf32> -> vector<8x32xf32>
      %111 = arith.addf %104, %110 : vector<8x32xf32>
      %cst_54 = arith.constant dense<0.000000e+00> : vector<8xf32>
      %112 = vector.multi_reduction <add>, %111, %cst_54 [1] : vector<8x32xf32> to vector<8xf32>
      %113 = vector.shape_cast %112 : vector<8xf32> to vector<8x1xf32>
      %cst_55 = arith.constant 3.200000e+01 : f32
      %114 = vector.broadcast %cst_55 : f32 to vector<8x1xf32>
      %115 = arith.divf %113, %114 : vector<8x1xf32>
      %116 = vector.broadcast %115 : vector<8x1xf32> to vector<8x32xf32>
      %117 = arith.subf %111, %116 : vector<8x32xf32>
      %118 = arith.mulf %117, %117 : vector<8x32xf32>
      %cst_56 = arith.constant dense<0.000000e+00> : vector<8xf32>
      %119 = vector.multi_reduction <add>, %118, %cst_56 [1] : vector<8x32xf32> to vector<8xf32>
      %120 = vector.shape_cast %119 : vector<8xf32> to vector<8x1xf32>
      %cst_57 = arith.constant 3.200000e+01 : f32
      %121 = vector.broadcast %cst_57 : f32 to vector<8x1xf32>
      %122 = arith.divf %120, %121 : vector<8x1xf32>
      %123 = vector.broadcast %115 : vector<8x1xf32> to vector<8x32xf32>
      %124 = arith.subf %111, %123 : vector<8x32xf32>
      %cst_58 = arith.constant 9.99999974E-6 : f32
      %125 = vector.broadcast %cst_58 : f32 to vector<8x1xf32>
      %126 = arith.addf %122, %125 : vector<8x1xf32>
      %127 = math.rsqrt %126 : vector<8x1xf32>
      %128 = vector.broadcast %127 : vector<8x1xf32> to vector<8x32xf32>
      %129 = arith.mulf %124, %128 : vector<8x32xf32>
      %c0_59 = arith.constant 0 : index
      %c0_60 = arith.constant 0 : index
      %130 = vector.load %arg27[%c0_59, %c0_60] : memref<8x32xf32, #tpu.memory_space<vmem>>, vector<8x32xf32>
      tpu.vector_store %arg27[%c0_59, %c0_60], %129 {strides = array<i32>} : memref<8x32xf32, #tpu.memory_space<vmem>>, vector<8x32xf32>,
    } else {
    }
    %c2_i32_2 = arith.constant 2 : i32
    %6 = arith.cmpi sge, %arg1, %c2_i32_2 : i32
    %7 = arith.extui %6 : i1 to i32
    %c0_i32_3 = arith.constant 0 : i32
    %8 = arith.cmpi ne, %7, %c0_i32_3 : i32
    scf.if %8 {
      %c0 = arith.constant 0 : index
      %c0_5 = arith.constant 0 : index
      %c0_6 = arith.constant 0 : index
      %12 = vector.load %arg6[%c0, %c0_5, %c0_6] : memref<1x8x1xf32, #tpu.memory_space<vmem>>, vector<1x8x1xf32>
      %13 = vector.shape_cast %12 : vector<1x8x1xf32> to vector<8x1xf32>
      %c0_7 = arith.constant 0 : index
      %c0_8 = arith.constant 0 : index
      %c0_9 = arith.constant 0 : index
      %14 = vector.load %arg7[%c0_7, %c0_8, %c0_9] : memref<1x1x8xf32, #tpu.memory_space<vmem>>, vector<1x1x8xf32>
      %15 = vector.shape_cast %14 : vector<1x1x8xf32> to vector<1x8xf32>
      %c0_10 = arith.constant 0 : index
      %c0_11 = arith.constant 0 : index
      %c0_12 = arith.constant 0 : index
      %16 = vector.load %arg5[%c0_10, %c0_11, %c0_12] : memref<1x1x8xf32, #tpu.memory_space<vmem>>, vector<1x1x8xf32>
      %17 = vector.shape_cast %16 : vector<1x1x8xf32> to vector<1x8xf32>
      %18 = tpu.iota {dimensions = array<i32: 0>} : vector<8x8xi32>
      %19 = tpu.iota {dimensions = array<i32: 1>} : vector<8x8xi32>
      %20 = vector.broadcast %13 : vector<8x1xf32> to vector<8x8xf32>
      %21 = vector.broadcast %15 : vector<1x8xf32> to vector<8x8xf32>
      %22 = arith.addf %20, %21 : vector<8x8xf32>
      %cst = arith.constant 0.000000e+00 : f32
      %23 = vector.broadcast %cst : f32 to vector<8x8xf32>
      %24 = arith.cmpf ogt, %22, %23 : vector<8x8xf32>
      %25 = arith.cmpi sgt, %19, %18 : vector<8x8xi32>
      %26 = arith.ori %24, %25 : vector<8x8xi1>
      %cst_13 = arith.constant -1.000000e+09 : f32
      %cst_14 = arith.constant 0.000000e+00 : f32
      %27 = vector.broadcast %cst_13 : f32 to vector<8x8xf32>
      %28 = vector.broadcast %cst_14 : f32 to vector<8x8xf32>
      %29 = arith.select %26, %27, %28 : vector<8x8xi1>, vector<8x8xf32>
      %30 = vector.broadcast %13 : vector<8x1xf32> to vector<8x8xf32>
      %31 = vector.broadcast %17 : vector<1x8xf32> to vector<8x8xf32>
      %32 = arith.addf %30, %31 : vector<8x8xf32>
      %cst_15 = arith.constant 0.000000e+00 : f32
      %33 = vector.broadcast %cst_15 : f32 to vector<8x8xf32>
      %34 = arith.cmpf ogt, %32, %33 : vector<8x8xf32>
      %cst_16 = arith.constant -1.000000e+09 : f32
      %cst_17 = arith.constant 0.000000e+00 : f32
      %35 = vector.broadcast %cst_16 : f32 to vector<8x8xf32>
      %36 = vector.broadcast %cst_17 : f32 to vector<8x8xf32>
      %37 = arith.select %34, %35, %36 : vector<8x8xi1>, vector<8x8xf32>
      %c0_18 = arith.constant 0 : index
      %c0_19 = arith.constant 0 : index
      %38 = vector.load %arg28[%c0_18, %c0_19] : memref<8x32xf32, #tpu.memory_space<vmem>>, vector<8x32xf32>
      %c0_20 = arith.constant 0 : index
      %c0_21 = arith.constant 0 : index
      %39 = vector.load %arg28[%c0_20, %c0_21] : memref<8x32xf32, #tpu.memory_space<vmem>>, vector<8x32xf32>
      %c0_22 = arith.constant 0 : index
      %c0_23 = arith.constant 0 : index
      %c0_24 = arith.constant 0 : index
      %40 = vector.load %arg14[%c0_22, %c0_23, %c0_24] : memref<1x32x32xbf16, #tpu.memory_space<vmem>>, vector<1x32x32xbf16>
      %41 = vector.shape_cast %40 : vector<1x32x32xbf16> to vector<32x32xbf16>
      %c0_25 = arith.constant 0 : index
      %c0_26 = arith.constant 0 : index
      %c0_27 = arith.constant 0 : index
      %42 = vector.load %arg15[%c0_25, %c0_26, %c0_27] : memref<1x32x32xbf16, #tpu.memory_space<vmem>>, vector<1x32x32xbf16>
      %43 = vector.shape_cast %42 : vector<1x32x32xbf16> to vector<32x32xbf16>
      %c0_28 = arith.constant 0 : index
      %c0_29 = arith.constant 0 : index
      %c0_30 = arith.constant 0 : index
      %44 = vector.load %arg16[%c0_28, %c0_29, %c0_30] : memref<1x32x32xbf16, #tpu.memory_space<vmem>>, vector<1x32x32xbf16>
      %45 = vector.shape_cast %44 : vector<1x32x32xbf16> to vector<32x32xbf16>
      %c0_31 = arith.constant 0 : index
      %c0_32 = arith.constant 0 : index
      %c0_33 = arith.constant 0 : index
      %46 = vector.load %arg17[%c0_31, %c0_32, %c0_33] : memref<1x32x32xbf16, #tpu.memory_space<vmem>>, vector<1x32x32xbf16>
      %47 = vector.shape_cast %46 : vector<1x32x32xbf16> to vector<32x32xbf16>
      %48 = arith.truncf %38 : vector<8x32xf32> to vector<8x32xbf16>
      %49 = arith.truncf %39 : vector<8x32xf32> to vector<8x32xbf16>
      %cst_34 = arith.constant dense<0.000000e+00> : vector<8x32xf32>
      %50 = tpu.matmul %48, %41, %cst_34 {dimension_numbers = #tpu.dot_dimension_numbers<[1], [0], [0], [1], [0, 0, 1, 1], [], []>} : vector<8x32xbf16>, vector<32x32xbf16>, vector<8x32xf32> -> vector<8x32xf32>
      %cst_35 = arith.constant dense<0.000000e+00> : vector<8x32xf32>
      %51 = tpu.matmul %49, %43, %cst_35 {dimension_numbers = #tpu.dot_dimension_numbers<[1], [0], [0], [1], [0, 0, 1, 1], [], []>} : vector<8x32xbf16>, vector<32x32xbf16>, vector<8x32xf32> -> vector<8x32xf32>
      %cst_36 = arith.constant dense<0.000000e+00> : vector<8x32xf32>
      %52 = tpu.matmul %49, %45, %cst_36 {dimension_numbers = #tpu.dot_dimension_numbers<[1], [0], [0], [1], [0, 0, 1, 1], [], []>} : vector<8x32xbf16>, vector<32x32xbf16>, vector<8x32xf32> -> vector<8x32xf32>
      %53 = vector.extract_strided_slice %50 {offsets = [0, 0], sizes = [8, 16], strides = [1, 1]} : vector<8x32xf32> to vector<8x16xf32>
      %54 = arith.truncf %53 : vector<8x16xf32> to vector<8x16xbf16>
      %55 = vector.extract_strided_slice %51 {offsets = [0, 0], sizes = [8, 16], strides = [1, 1]} : vector<8x32xf32> to vector<8x16xf32>
      %56 = arith.truncf %55 : vector<8x16xf32> to vector<8x16xbf16>
      %57 = vector.extract_strided_slice %52 {offsets = [0, 0], sizes = [8, 16], strides = [1, 1]} : vector<8x32xf32> to vector<8x16xf32>
      %58 = arith.truncf %57 : vector<8x16xf32> to vector<8x16xbf16>
      %cst_37 = arith.constant dense<0.000000e+00> : vector<8x8xf32>
      %59 = tpu.matmul %54, %56, %cst_37 {dimension_numbers = #tpu.dot_dimension_numbers<[1], [1], [0], [0], [0, 0, 1, 0], [], []>} : vector<8x16xbf16>, vector<8x16xbf16>, vector<8x8xf32> -> vector<8x8xf32>
      %60 = arith.addf %59, %29 : vector<8x8xf32>
      %cst_38 = arith.constant dense<0xFF800000> : vector<8xf32>
      %61 = vector.multi_reduction <maximumf>, %60, %cst_38 [1] : vector<8x8xf32> to vector<8xf32>
      %62 = vector.shape_cast %61 : vector<8xf32> to vector<8x1xf32>
      %63 = vector.broadcast %62 : vector<8x1xf32> to vector<8x8xf32>
      %64 = arith.subf %60, %63 : vector<8x8xf32>
      %65 = math.exp %64 : vector<8x8xf32>
      %cst_39 = arith.constant dense<0.000000e+00> : vector<8xf32>
      %66 = vector.multi_reduction <add>, %65, %cst_39 [1] : vector<8x8xf32> to vector<8xf32>
      %67 = vector.shape_cast %66 : vector<8xf32> to vector<8x1xf32>
      %68 = tpu.reciprocal %67 {approx = true} : vector<8x1xf32> -> vector<8x1xf32>
      %69 = vector.broadcast %68 : vector<8x1xf32> to vector<8x8xf32>
      %70 = arith.mulf %65, %69 : vector<8x8xf32>
      %71 = arith.truncf %70 : vector<8x8xf32> to vector<8x8xbf16>
      %cst_40 = arith.constant dense<0.000000e+00> : vector<8x16xf32>
      %72 = tpu.matmul %71, %58, %cst_40 {dimension_numbers = #tpu.dot_dimension_numbers<[1], [0], [0], [1], [0, 0, 1, 1], [], []>} : vector<8x8xbf16>, vector<8x16xbf16>, vector<8x16xf32> -> vector<8x16xf32>
      %73 = vector.extract_strided_slice %50 {offsets = [0, 16], sizes = [8, 16], strides = [1, 1]} : vector<8x32xf32> to vector<8x16xf32>
      %74 = arith.truncf %73 : vector<8x16xf32> to vector<8x16xbf16>
      %75 = vector.extract_strided_slice %51 {offsets = [0, 16], sizes = [8, 16], strides = [1, 1]} : vector<8x32xf32> to vector<8x16xf32>
      %76 = arith.truncf %75 : vector<8x16xf32> to vector<8x16xbf16>
      %77 = vector.extract_strided_slice %52 {offsets = [0, 16], sizes = [8, 16], strides = [1, 1]} : vector<8x32xf32> to vector<8x16xf32>
      %78 = arith.truncf %77 : vector<8x16xf32> to vector<8x16xbf16>
      %cst_41 = arith.constant dense<0.000000e+00> : vector<8x8xf32>
      %79 = tpu.matmul %74, %76, %cst_41 {dimension_numbers = #tpu.dot_dimension_numbers<[1], [1], [0], [0], [0, 0, 1, 0], [], []>} : vector<8x16xbf16>, vector<8x16xbf16>, vector<8x8xf32> -> vector<8x8xf32>
      %80 = arith.addf %79, %29 : vector<8x8xf32>
      %cst_42 = arith.constant dense<0xFF800000> : vector<8xf32>
      %81 = vector.multi_reduction <maximumf>, %80, %cst_42 [1] : vector<8x8xf32> to vector<8xf32>
      %82 = vector.shape_cast %81 : vector<8xf32> to vector<8x1xf32>
      %83 = vector.broadcast %82 : vector<8x1xf32> to vector<8x8xf32>
      %84 = arith.subf %80, %83 : vector<8x8xf32>
      %85 = math.exp %84 : vector<8x8xf32>
      %cst_43 = arith.constant dense<0.000000e+00> : vector<8xf32>
      %86 = vector.multi_reduction <add>, %85, %cst_43 [1] : vector<8x8xf32> to vector<8xf32>
      %87 = vector.shape_cast %86 : vector<8xf32> to vector<8x1xf32>
      %88 = tpu.reciprocal %87 {approx = true} : vector<8x1xf32> -> vector<8x1xf32>
      %89 = vector.broadcast %88 : vector<8x1xf32> to vector<8x8xf32>
      %90 = arith.mulf %85, %89 : vector<8x8xf32>
      %91 = arith.truncf %90 : vector<8x8xf32> to vector<8x8xbf16>
      %cst_44 = arith.constant dense<0.000000e+00> : vector<8x16xf32>
      %92 = tpu.matmul %91, %78, %cst_44 {dimension_numbers = #tpu.dot_dimension_numbers<[1], [0], [0], [1], [0, 0, 1, 1], [], []>} : vector<8x8xbf16>, vector<8x16xbf16>, vector<8x16xf32> -> vector<8x16xf32>
      %93 = tpu.concatenate %72, %92 in 1 : vector<8x16xf32>, vector<8x16xf32> -> vector<8x32xf32>
      %94 = arith.truncf %93 : vector<8x32xf32> to vector<8x32xbf16>
      %cst_45 = arith.constant dense<0.000000e+00> : vector<8x32xf32>
      %95 = tpu.matmul %94, %47, %cst_45 {dimension_numbers = #tpu.dot_dimension_numbers<[1], [0], [0], [1], [0, 0, 1, 1], [], []>} : vector<8x32xbf16>, vector<32x32xbf16>, vector<8x32xf32> -> vector<8x32xf32>
      %96 = arith.addf %38, %95 : vector<8x32xf32>
      %cst_46 = arith.constant dense<0.000000e+00> : vector<8xf32>
      %97 = vector.multi_reduction <add>, %96, %cst_46 [1] : vector<8x32xf32> to vector<8xf32>
      %98 = vector.shape_cast %97 : vector<8xf32> to vector<8x1xf32>
      %cst_47 = arith.constant 3.200000e+01 : f32
      %99 = vector.broadcast %cst_47 : f32 to vector<8x1xf32>
      %100 = arith.divf %98, %99 : vector<8x1xf32>
      %101 = vector.broadcast %100 : vector<8x1xf32> to vector<8x32xf32>
      %102 = arith.subf %96, %101 : vector<8x32xf32>
      %103 = arith.mulf %102, %102 : vector<8x32xf32>
      %cst_48 = arith.constant dense<0.000000e+00> : vector<8xf32>
      %104 = vector.multi_reduction <add>, %103, %cst_48 [1] : vector<8x32xf32> to vector<8xf32>
      %105 = vector.shape_cast %104 : vector<8xf32> to vector<8x1xf32>
      %cst_49 = arith.constant 3.200000e+01 : f32
      %106 = vector.broadcast %cst_49 : f32 to vector<8x1xf32>
      %107 = arith.divf %105, %106 : vector<8x1xf32>
      %108 = vector.broadcast %100 : vector<8x1xf32> to vector<8x32xf32>
      %109 = arith.subf %96, %108 : vector<8x32xf32>
      %cst_50 = arith.constant 9.99999974E-6 : f32
      %110 = vector.broadcast %cst_50 : f32 to vector<8x1xf32>
      %111 = arith.addf %107, %110 : vector<8x1xf32>
      %112 = math.rsqrt %111 : vector<8x1xf32>
      %113 = vector.broadcast %112 : vector<8x1xf32> to vector<8x32xf32>
      %114 = arith.mulf %109, %113 : vector<8x32xf32>
      %c0_51 = arith.constant 0 : index
      %c0_52 = arith.constant 0 : index
      %115 = vector.load %arg27[%c0_51, %c0_52] : memref<8x32xf32, #tpu.memory_space<vmem>>, vector<8x32xf32>
      %c0_53 = arith.constant 0 : index
      %c0_54 = arith.constant 0 : index
      %c0_55 = arith.constant 0 : index
      %116 = vector.load %arg18[%c0_53, %c0_54, %c0_55] : memref<1x32x32xbf16, #tpu.memory_space<vmem>>, vector<1x32x32xbf16>
      %117 = vector.shape_cast %116 : vector<1x32x32xbf16> to vector<32x32xbf16>
      %c0_56 = arith.constant 0 : index
      %c0_57 = arith.constant 0 : index
      %c0_58 = arith.constant 0 : index
      %118 = vector.load %arg19[%c0_56, %c0_57, %c0_58] : memref<1x32x32xbf16, #tpu.memory_space<vmem>>, vector<1x32x32xbf16>
      %119 = vector.shape_cast %118 : vector<1x32x32xbf16> to vector<32x32xbf16>
      %c0_59 = arith.constant 0 : index
      %c0_60 = arith.constant 0 : index
      %c0_61 = arith.constant 0 : index
      %120 = vector.load %arg20[%c0_59, %c0_60, %c0_61] : memref<1x32x32xbf16, #tpu.memory_space<vmem>>, vector<1x32x32xbf16>
      %121 = vector.shape_cast %120 : vector<1x32x32xbf16> to vector<32x32xbf16>
      %c0_62 = arith.constant 0 : index
      %c0_63 = arith.constant 0 : index
      %c0_64 = arith.constant 0 : index
      %122 = vector.load %arg21[%c0_62, %c0_63, %c0_64] : memref<1x32x32xbf16, #tpu.memory_space<vmem>>, vector<1x32x32xbf16>
      %123 = vector.shape_cast %122 : vector<1x32x32xbf16> to vector<32x32xbf16>
      %c0_65 = arith.constant 0 : index
      %c0_66 = arith.constant 0 : index
      %c0_67 = arith.constant 0 : index
      %124 = vector.load %arg22[%c0_65, %c0_66, %c0_67] : memref<1x32x64xbf16, #tpu.memory_space<vmem>>, vector<1x32x64xbf16>
      %125 = vector.shape_cast %124 : vector<1x32x64xbf16> to vector<32x64xbf16>
      %c0_68 = arith.constant 0 : index
      %c0_69 = arith.constant 0 : index
      %c0_70 = arith.constant 0 : index
      %126 = vector.load %arg23[%c0_68, %c0_69, %c0_70] : memref<1x64x32xbf16, #tpu.memory_space<vmem>>, vector<1x64x32xbf16>
      %127 = vector.shape_cast %126 : vector<1x64x32xbf16> to vector<64x32xbf16>
      %128 = arith.truncf %114 : vector<8x32xf32> to vector<8x32xbf16>
      %129 = arith.truncf %115 : vector<8x32xf32> to vector<8x32xbf16>
      %cst_71 = arith.constant dense<0.000000e+00> : vector<8x32xf32>
      %130 = tpu.matmul %128, %117, %cst_71 {dimension_numbers = #tpu.dot_dimension_numbers<[1], [0], [0], [1], [0, 0, 1, 1], [], []>} : vector<8x32xbf16>, vector<32x32xbf16>, vector<8x32xf32> -> vector<8x32xf32>
      %cst_72 = arith.constant dense<0.000000e+00> : vector<8x32xf32>
      %131 = tpu.matmul %129, %119, %cst_72 {dimension_numbers = #tpu.dot_dimension_numbers<[1], [0], [0], [1], [0, 0, 1, 1], [], []>} : vector<8x32xbf16>, vector<32x32xbf16>, vector<8x32xf32> -> vector<8x32xf32>
      %cst_73 = arith.constant dense<0.000000e+00> : vector<8x32xf32>
      %132 = tpu.matmul %129, %121, %cst_73 {dimension_numbers = #tpu.dot_dimension_numbers<[1], [0], [0], [1], [0, 0, 1, 1], [], []>} : vector<8x32xbf16>, vector<32x32xbf16>, vector<8x32xf32> -> vector<8x32xf32>
      %133 = vector.extract_strided_slice %130 {offsets = [0, 0], sizes = [8, 16], strides = [1, 1]} : vector<8x32xf32> to vector<8x16xf32>
      %134 = arith.truncf %133 : vector<8x16xf32> to vector<8x16xbf16>
      %135 = vector.extract_strided_slice %131 {offsets = [0, 0], sizes = [8, 16], strides = [1, 1]} : vector<8x32xf32> to vector<8x16xf32>
      %136 = arith.truncf %135 : vector<8x16xf32> to vector<8x16xbf16>
      %137 = vector.extract_strided_slice %132 {offsets = [0, 0], sizes = [8, 16], strides = [1, 1]} : vector<8x32xf32> to vector<8x16xf32>
      %138 = arith.truncf %137 : vector<8x16xf32> to vector<8x16xbf16>
      %cst_74 = arith.constant dense<0.000000e+00> : vector<8x8xf32>
      %139 = tpu.matmul %134, %136, %cst_74 {dimension_numbers = #tpu.dot_dimension_numbers<[1], [1], [0], [0], [0, 0, 1, 0], [], []>} : vector<8x16xbf16>, vector<8x16xbf16>, vector<8x8xf32> -> vector<8x8xf32>
      %140 = arith.addf %139, %37 : vector<8x8xf32>
      %cst_75 = arith.constant dense<0xFF800000> : vector<8xf32>
      %141 = vector.multi_reduction <maximumf>, %140, %cst_75 [1] : vector<8x8xf32> to vector<8xf32>
      %142 = vector.shape_cast %141 : vector<8xf32> to vector<8x1xf32>
      %143 = vector.broadcast %142 : vector<8x1xf32> to vector<8x8xf32>
      %144 = arith.subf %140, %143 : vector<8x8xf32>
      %145 = math.exp %144 : vector<8x8xf32>
      %cst_76 = arith.constant dense<0.000000e+00> : vector<8xf32>
      %146 = vector.multi_reduction <add>, %145, %cst_76 [1] : vector<8x8xf32> to vector<8xf32>
      %147 = vector.shape_cast %146 : vector<8xf32> to vector<8x1xf32>
      %148 = tpu.reciprocal %147 {approx = true} : vector<8x1xf32> -> vector<8x1xf32>
      %149 = vector.broadcast %148 : vector<8x1xf32> to vector<8x8xf32>
      %150 = arith.mulf %145, %149 : vector<8x8xf32>
      %151 = arith.truncf %150 : vector<8x8xf32> to vector<8x8xbf16>
      %cst_77 = arith.constant dense<0.000000e+00> : vector<8x16xf32>
      %152 = tpu.matmul %151, %138, %cst_77 {dimension_numbers = #tpu.dot_dimension_numbers<[1], [0], [0], [1], [0, 0, 1, 1], [], []>} : vector<8x8xbf16>, vector<8x16xbf16>, vector<8x16xf32> -> vector<8x16xf32>
      %153 = vector.extract_strided_slice %130 {offsets = [0, 16], sizes = [8, 16], strides = [1, 1]} : vector<8x32xf32> to vector<8x16xf32>
      %154 = arith.truncf %153 : vector<8x16xf32> to vector<8x16xbf16>
      %155 = vector.extract_strided_slice %131 {offsets = [0, 16], sizes = [8, 16], strides = [1, 1]} : vector<8x32xf32> to vector<8x16xf32>
      %156 = arith.truncf %155 : vector<8x16xf32> to vector<8x16xbf16>
      %157 = vector.extract_strided_slice %132 {offsets = [0, 16], sizes = [8, 16], strides = [1, 1]} : vector<8x32xf32> to vector<8x16xf32>
      %158 = arith.truncf %157 : vector<8x16xf32> to vector<8x16xbf16>
      %cst_78 = arith.constant dense<0.000000e+00> : vector<8x8xf32>
      %159 = tpu.matmul %154, %156, %cst_78 {dimension_numbers = #tpu.dot_dimension_numbers<[1], [1], [0], [0], [0, 0, 1, 0], [], []>} : vector<8x16xbf16>, vector<8x16xbf16>, vector<8x8xf32> -> vector<8x8xf32>
      %160 = arith.addf %159, %37 : vector<8x8xf32>
      %cst_79 = arith.constant dense<0xFF800000> : vector<8xf32>
      %161 = vector.multi_reduction <maximumf>, %160, %cst_79 [1] : vector<8x8xf32> to vector<8xf32>
      %162 = vector.shape_cast %161 : vector<8xf32> to vector<8x1xf32>
      %163 = vector.broadcast %162 : vector<8x1xf32> to vector<8x8xf32>
      %164 = arith.subf %160, %163 : vector<8x8xf32>
      %165 = math.exp %164 : vector<8x8xf32>
      %cst_80 = arith.constant dense<0.000000e+00> : vector<8xf32>
      %166 = vector.multi_reduction <add>, %165, %cst_80 [1] : vector<8x8xf32> to vector<8xf32>
      %167 = vector.shape_cast %166 : vector<8xf32> to vector<8x1xf32>
      %168 = tpu.reciprocal %167 {approx = true} : vector<8x1xf32> -> vector<8x1xf32>
      %169 = vector.broadcast %168 : vector<8x1xf32> to vector<8x8xf32>
      %170 = arith.mulf %165, %169 : vector<8x8xf32>
      %171 = arith.truncf %170 : vector<8x8xf32> to vector<8x8xbf16>
      %cst_81 = arith.constant dense<0.000000e+00> : vector<8x16xf32>
      %172 = tpu.matmul %171, %158, %cst_81 {dimension_numbers = #tpu.dot_dimension_numbers<[1], [0], [0], [1], [0, 0, 1, 1], [], []>} : vector<8x8xbf16>, vector<8x16xbf16>, vector<8x16xf32> -> vector<8x16xf32>
      %173 = tpu.concatenate %152, %172 in 1 : vector<8x16xf32>, vector<8x16xf32> -> vector<8x32xf32>
      %174 = arith.truncf %173 : vector<8x32xf32> to vector<8x32xbf16>
      %cst_82 = arith.constant dense<0.000000e+00> : vector<8x32xf32>
      %175 = tpu.matmul %174, %123, %cst_82 {dimension_numbers = #tpu.dot_dimension_numbers<[1], [0], [0], [1], [0, 0, 1, 1], [], []>} : vector<8x32xbf16>, vector<32x32xbf16>, vector<8x32xf32> -> vector<8x32xf32>
      %176 = arith.addf %114, %175 : vector<8x32xf32>
      %cst_83 = arith.constant dense<0.000000e+00> : vector<8xf32>
      %177 = vector.multi_reduction <add>, %176, %cst_83 [1] : vector<8x32xf32> to vector<8xf32>
      %178 = vector.shape_cast %177 : vector<8xf32> to vector<8x1xf32>
      %cst_84 = arith.constant 3.200000e+01 : f32
      %179 = vector.broadcast %cst_84 : f32 to vector<8x1xf32>
      %180 = arith.divf %178, %179 : vector<8x1xf32>
      %181 = vector.broadcast %180 : vector<8x1xf32> to vector<8x32xf32>
      %182 = arith.subf %176, %181 : vector<8x32xf32>
      %183 = arith.mulf %182, %182 : vector<8x32xf32>
      %cst_85 = arith.constant dense<0.000000e+00> : vector<8xf32>
      %184 = vector.multi_reduction <add>, %183, %cst_85 [1] : vector<8x32xf32> to vector<8xf32>
      %185 = vector.shape_cast %184 : vector<8xf32> to vector<8x1xf32>
      %cst_86 = arith.constant 3.200000e+01 : f32
      %186 = vector.broadcast %cst_86 : f32 to vector<8x1xf32>
      %187 = arith.divf %185, %186 : vector<8x1xf32>
      %188 = vector.broadcast %180 : vector<8x1xf32> to vector<8x32xf32>
      %189 = arith.subf %176, %188 : vector<8x32xf32>
      %cst_87 = arith.constant 9.99999974E-6 : f32
      %190 = vector.broadcast %cst_87 : f32 to vector<8x1xf32>
      %191 = arith.addf %187, %190 : vector<8x1xf32>
      %192 = math.rsqrt %191 : vector<8x1xf32>
      %193 = vector.broadcast %192 : vector<8x1xf32> to vector<8x32xf32>
      %194 = arith.mulf %189, %193 : vector<8x32xf32>
      %195 = arith.truncf %194 : vector<8x32xf32> to vector<8x32xbf16>
      %cst_88 = arith.constant dense<0.000000e+00> : vector<8x64xf32>
      %196 = tpu.matmul %195, %125, %cst_88 {dimension_numbers = #tpu.dot_dimension_numbers<[1], [0], [0], [1], [0, 0, 1, 1], [], []>} : vector<8x32xbf16>, vector<32x64xbf16>, vector<8x64xf32> -> vector<8x64xf32>
      %cst_89 = arith.constant 0.000000e+00 : f32
      %197 = vector.broadcast %cst_89 : f32 to vector<8x64xf32>
      %198 = arith.maximumf %196, %197 : vector<8x64xf32>
      %199 = arith.truncf %198 : vector<8x64xf32> to vector<8x64xbf16>
      %cst_90 = arith.constant dense<0.000000e+00> : vector<8x32xf32>
      %200 = tpu.matmul %199, %127, %cst_90 {dimension_numbers = #tpu.dot_dimension_numbers<[1], [0], [0], [1], [0, 0, 1, 1], [], []>} : vector<8x64xbf16>, vector<64x32xbf16>, vector<8x32xf32> -> vector<8x32xf32>
      %201 = arith.addf %194, %200 : vector<8x32xf32>
      %cst_91 = arith.constant dense<0.000000e+00> : vector<8xf32>
      %202 = vector.multi_reduction <add>, %201, %cst_91 [1] : vector<8x32xf32> to vector<8xf32>
      %203 = vector.shape_cast %202 : vector<8xf32> to vector<8x1xf32>
      %cst_92 = arith.constant 3.200000e+01 : f32
      %204 = vector.broadcast %cst_92 : f32 to vector<8x1xf32>
      %205 = arith.divf %203, %204 : vector<8x1xf32>
      %206 = vector.broadcast %205 : vector<8x1xf32> to vector<8x32xf32>
      %207 = arith.subf %201, %206 : vector<8x32xf32>
      %208 = arith.mulf %207, %207 : vector<8x32xf32>
      %cst_93 = arith.constant dense<0.000000e+00> : vector<8xf32>
      %209 = vector.multi_reduction <add>, %208, %cst_93 [1] : vector<8x32xf32> to vector<8xf32>
      %210 = vector.shape_cast %209 : vector<8xf32> to vector<8x1xf32>
      %cst_94 = arith.constant 3.200000e+01 : f32
      %211 = vector.broadcast %cst_94 : f32 to vector<8x1xf32>
      %212 = arith.divf %210, %211 : vector<8x1xf32>
      %213 = vector.broadcast %205 : vector<8x1xf32> to vector<8x32xf32>
      %214 = arith.subf %201, %213 : vector<8x32xf32>
      %cst_95 = arith.constant 9.99999974E-6 : f32
      %215 = vector.broadcast %cst_95 : f32 to vector<8x1xf32>
      %216 = arith.addf %212, %215 : vector<8x1xf32>
      %217 = math.rsqrt %216 : vector<8x1xf32>
      %218 = vector.broadcast %217 : vector<8x1xf32> to vector<8x32xf32>
      %219 = arith.mulf %214, %218 : vector<8x32xf32>
      %c0_96 = arith.constant 0 : index
      %c0_97 = arith.constant 0 : index
      %220 = vector.load %arg28[%c0_96, %c0_97] : memref<8x32xf32, #tpu.memory_space<vmem>>, vector<8x32xf32>
      tpu.vector_store %arg28[%c0_96, %c0_97], %219 {strides = array<i32>} : memref<8x32xf32, #tpu.memory_space<vmem>>, vector<8x32xf32>,
    } else {
    }
    %c3_i32 = arith.constant 3 : i32
    %9 = arith.cmpi eq, %arg1, %c3_i32 : i32
    %10 = arith.extui %9 : i1 to i32
    %c0_i32_4 = arith.constant 0 : i32
    %11 = arith.cmpi ne, %10, %c0_i32_4 : i32
    scf.if %11 {
      %c0 = arith.constant 0 : index
      %c0_5 = arith.constant 0 : index
      %12 = vector.load %arg28[%c0, %c0_5] : memref<8x32xf32, #tpu.memory_space<vmem>>, vector<8x32xf32>
      %13 = arith.truncf %12 : vector<8x32xf32> to vector<8x32xbf16>
      %c0_6 = arith.constant 0 : index
      %c0_7 = arith.constant 0 : index
      %14 = vector.load %arg24[%c0_6, %c0_7] : memref<32x128xbf16, #tpu.memory_space<vmem>>, vector<32x128xbf16>
      %cst = arith.constant dense<0.000000e+00> : vector<8x128xf32>
      %15 = tpu.matmul %13, %14, %cst {dimension_numbers = #tpu.dot_dimension_numbers<[1], [0], [0], [1], [0, 0, 1, 1], [], []>} : vector<8x32xbf16>, vector<32x128xbf16>, vector<8x128xf32> -> vector<8x128xf32>
      %c0_8 = arith.constant 0 : index
      %c0_9 = arith.constant 0 : index
      %16 = vector.load %arg25[%c0_8, %c0_9] : memref<1x128xf32, #tpu.memory_space<vmem>>, vector<1x128xf32>
      %17 = vector.broadcast %16 : vector<1x128xf32> to vector<8x128xf32>
      %18 = arith.addf %15, %17 : vector<8x128xf32>
      %c0_10 = arith.constant 0 : index
      %c0_11 = arith.constant 0 : index
      %c0_12 = arith.constant 0 : index
      %19 = vector.load %arg26[%c0_10, %c0_11, %c0_12] : memref<1x8x128xf32, #tpu.memory_space<vmem>>, vector<1x8x128xf32>
      %20 = vector.shape_cast %19 : vector<1x8x128xf32> to vector<8x128xf32>
      %21 = vector.shape_cast %18 : vector<8x128xf32> to vector<1x8x128xf32>
      tpu.vector_store %arg26[%c0_10, %c0_11, %c0_12], %21 {strides = array<i32>} : memref<1x8x128xf32, #tpu.memory_space<vmem>>, vector<1x8x128xf32>,
    } else {
    }
    return
  }
  func.func @transform_0(%arg0: i32, %arg1: i32) -> (i32, i32, i32) {
    %c0_i32 = arith.constant 0 : i32
    %c0_i32_0 = arith.constant 0 : i32
    %c0_i32_1 = arith.constant 0 : i32
    return %arg0, %c0_i32, %c0_i32_0 : i32, i32, i32
  }
  func.func @transform_1(%arg0: i32, %arg1: i32) -> (i32, i32, i32) {
    %c0_i32 = arith.constant 0 : i32
    %c0_i32_0 = arith.constant 0 : i32
    %c0_i32_1 = arith.constant 0 : i32
    return %arg0, %c0_i32, %c0_i32_0 : i32, i32, i32
  }
  func.func @transform_2(%arg0: i32, %arg1: i32) -> (i32, i32, i32) {
    %c0_i32 = arith.constant 0 : i32
    %c0_i32_0 = arith.constant 0 : i32
    %c0_i32_1 = arith.constant 0 : i32
    return %arg0, %c0_i32, %c0_i32_0 : i32, i32, i32
  }
  func.func @transform_3(%arg0: i32, %arg1: i32) -> (i32, i32, i32) {
    %c0_i32 = arith.constant 0 : i32
    %c0_i32_0 = arith.constant 0 : i32
    %c0_i32_1 = arith.constant 0 : i32
    return %arg0, %c0_i32, %c0_i32_0 : i32, i32, i32
  }
  func.func @transform_4(%arg0: i32, %arg1: i32) -> (i32, i32, i32) {
    %c0_i32 = arith.constant 0 : i32
    %c0_i32_0 = arith.constant 0 : i32
    %c0_i32_1 = arith.constant 0 : i32
    return %arg0, %c0_i32, %c0_i32_0 : i32, i32, i32
  }
  func.func @transform_5(%arg0: i32, %arg1: i32) -> (i32, i32, i32) {
    %c0_i32 = arith.constant 0 : i32
    %c0_i32_0 = arith.constant 0 : i32
    %c0_i32_1 = arith.constant 0 : i32
    return %arg0, %c0_i32, %c0_i32_0 : i32, i32, i32
  }
  func.func @transform_6(%arg0: i32, %arg1: i32) -> (i32, i32, i32) {
    %c1_i32 = arith.constant 1 : i32
    %0 = arith.minsi %arg1, %c1_i32 : i32
    %c0_i32 = arith.constant 0 : i32
    %c0_i32_0 = arith.constant 0 : i32
    %c0_i32_1 = arith.constant 0 : i32
    return %0, %c0_i32, %c0_i32_0 : i32, i32, i32
  }
  func.func @transform_7(%arg0: i32, %arg1: i32) -> (i32, i32, i32) {
    %c1_i32 = arith.constant 1 : i32
    %0 = arith.minsi %arg1, %c1_i32 : i32
    %c0_i32 = arith.constant 0 : i32
    %c0_i32_0 = arith.constant 0 : i32
    %c0_i32_1 = arith.constant 0 : i32
    return %0, %c0_i32, %c0_i32_0 : i32, i32, i32
  }
  func.func @transform_8(%arg0: i32, %arg1: i32) -> (i32, i32, i32) {
    %c1_i32 = arith.constant 1 : i32
    %0 = arith.minsi %arg1, %c1_i32 : i32
    %c0_i32 = arith.constant 0 : i32
    %c0_i32_0 = arith.constant 0 : i32
    %c0_i32_1 = arith.constant 0 : i32
    return %0, %c0_i32, %c0_i32_0 : i32, i32, i32
  }
  func.func @transform_9(%arg0: i32, %arg1: i32) -> (i32, i32, i32) {
    %c1_i32 = arith.constant 1 : i32
    %0 = arith.minsi %arg1, %c1_i32 : i32
    %c0_i32 = arith.constant 0 : i32
    %c0_i32_0 = arith.constant 0 : i32
    %c0_i32_1 = arith.constant 0 : i32
    return %0, %c0_i32, %c0_i32_0 : i32, i32, i32
  }
  func.func @transform_10(%arg0: i32, %arg1: i32) -> (i32, i32, i32) {
    %c1_i32 = arith.constant 1 : i32
    %0 = arith.minsi %arg1, %c1_i32 : i32
    %c0_i32 = arith.constant 0 : i32
    %c0_i32_0 = arith.constant 0 : i32
    %c0_i32_1 = arith.constant 0 : i32
    return %0, %c0_i32, %c0_i32_0 : i32, i32, i32
  }
  func.func @transform_11(%arg0: i32, %arg1: i32) -> (i32, i32, i32) {
    %c1_i32 = arith.constant 1 : i32
    %0 = arith.minsi %arg1, %c1_i32 : i32
    %c0_i32 = arith.constant 0 : i32
    %c0_i32_0 = arith.constant 0 : i32
    %c0_i32_1 = arith.constant 0 : i32
    return %0, %c0_i32, %c0_i32_0 : i32, i32, i32
  }
  func.func @transform_12(%arg0: i32, %arg1: i32) -> (i32, i32, i32) {
    %c2_i32 = arith.constant 2 : i32
    %0 = arith.subi %arg1, %c2_i32 : i32
    %c0_i32 = arith.constant 0 : i32
    %1 = arith.maxsi %0, %c0_i32 : i32
    %c0_i32_0 = arith.constant 0 : i32
    %c0_i32_1 = arith.constant 0 : i32
    %c0_i32_2 = arith.constant 0 : i32
    return %1, %c0_i32_0, %c0_i32_1 : i32, i32, i32
  }
  func.func @transform_13(%arg0: i32, %arg1: i32) -> (i32, i32, i32) {
    %c2_i32 = arith.constant 2 : i32
    %0 = arith.subi %arg1, %c2_i32 : i32
    %c0_i32 = arith.constant 0 : i32
    %1 = arith.maxsi %0, %c0_i32 : i32
    %c0_i32_0 = arith.constant 0 : i32
    %c0_i32_1 = arith.constant 0 : i32
    %c0_i32_2 = arith.constant 0 : i32
    return %1, %c0_i32_0, %c0_i32_1 : i32, i32, i32
  }
  func.func @transform_14(%arg0: i32, %arg1: i32) -> (i32, i32, i32) {
    %c2_i32 = arith.constant 2 : i32
    %0 = arith.subi %arg1, %c2_i32 : i32
    %c0_i32 = arith.constant 0 : i32
    %1 = arith.maxsi %0, %c0_i32 : i32
    %c0_i32_0 = arith.constant 0 : i32
    %c0_i32_1 = arith.constant 0 : i32
    %c0_i32_2 = arith.constant 0 : i32
    return %1, %c0_i32_0, %c0_i32_1 : i32, i32, i32
  }
  func.func @transform_15(%arg0: i32, %arg1: i32) -> (i32, i32, i32) {
    %c2_i32 = arith.constant 2 : i32
    %0 = arith.subi %arg1, %c2_i32 : i32
    %c0_i32 = arith.constant 0 : i32
    %1 = arith.maxsi %0, %c0_i32 : i32
    %c0_i32_0 = arith.constant 0 : i32
    %c0_i32_1 = arith.constant 0 : i32
    %c0_i32_2 = arith.constant 0 : i32
    return %1, %c0_i32_0, %c0_i32_1 : i32, i32, i32
  }
  func.func @transform_16(%arg0: i32, %arg1: i32) -> (i32, i32, i32) {
    %c2_i32 = arith.constant 2 : i32
    %0 = arith.subi %arg1, %c2_i32 : i32
    %c0_i32 = arith.constant 0 : i32
    %1 = arith.maxsi %0, %c0_i32 : i32
    %c0_i32_0 = arith.constant 0 : i32
    %c0_i32_1 = arith.constant 0 : i32
    %c0_i32_2 = arith.constant 0 : i32
    return %1, %c0_i32_0, %c0_i32_1 : i32, i32, i32
  }
  func.func @transform_17(%arg0: i32, %arg1: i32) -> (i32, i32, i32) {
    %c2_i32 = arith.constant 2 : i32
    %0 = arith.subi %arg1, %c2_i32 : i32
    %c0_i32 = arith.constant 0 : i32
    %1 = arith.maxsi %0, %c0_i32 : i32
    %c0_i32_0 = arith.constant 0 : i32
    %c0_i32_1 = arith.constant 0 : i32
    %c0_i32_2 = arith.constant 0 : i32
    return %1, %c0_i32_0, %c0_i32_1 : i32, i32, i32
  }
  func.func @transform_18(%arg0: i32, %arg1: i32) -> (i32, i32, i32) {
    %c2_i32 = arith.constant 2 : i32
    %0 = arith.subi %arg1, %c2_i32 : i32
    %c0_i32 = arith.constant 0 : i32
    %1 = arith.maxsi %0, %c0_i32 : i32
    %c0_i32_0 = arith.constant 0 : i32
    %c0_i32_1 = arith.constant 0 : i32
    %c0_i32_2 = arith.constant 0 : i32
    return %1, %c0_i32_0, %c0_i32_1 : i32, i32, i32
  }
  func.func @transform_19(%arg0: i32, %arg1: i32) -> (i32, i32, i32) {
    %c2_i32 = arith.constant 2 : i32
    %0 = arith.subi %arg1, %c2_i32 : i32
    %c0_i32 = arith.constant 0 : i32
    %1 = arith.maxsi %0, %c0_i32 : i32
    %c0_i32_0 = arith.constant 0 : i32
    %c0_i32_1 = arith.constant 0 : i32
    %c0_i32_2 = arith.constant 0 : i32
    return %1, %c0_i32_0, %c0_i32_1 : i32, i32, i32
  }
  func.func @transform_20(%arg0: i32, %arg1: i32) -> (i32, i32, i32) {
    %c2_i32 = arith.constant 2 : i32
    %0 = arith.subi %arg1, %c2_i32 : i32
    %c0_i32 = arith.constant 0 : i32
    %1 = arith.maxsi %0, %c0_i32 : i32
    %c0_i32_0 = arith.constant 0 : i32
    %c0_i32_1 = arith.constant 0 : i32
    %c0_i32_2 = arith.constant 0 : i32
    return %1, %c0_i32_0, %c0_i32_1 : i32, i32, i32
  }
  func.func @transform_21(%arg0: i32, %arg1: i32) -> (i32, i32, i32) {
    %c2_i32 = arith.constant 2 : i32
    %0 = arith.subi %arg1, %c2_i32 : i32
    %c0_i32 = arith.constant 0 : i32
    %1 = arith.maxsi %0, %c0_i32 : i32
    %c0_i32_0 = arith.constant 0 : i32
    %c0_i32_1 = arith.constant 0 : i32
    %c0_i32_2 = arith.constant 0 : i32
    return %1, %c0_i32_0, %c0_i32_1 : i32, i32, i32
  }
  func.func @transform_22(%arg0: i32, %arg1: i32) -> (i32, i32) {
    %c0_i32 = arith.constant 0 : i32
    %c0_i32_0 = arith.constant 0 : i32
    %c0_i32_1 = arith.constant 0 : i32
    return %c0_i32, %c0_i32_0 : i32, i32
  }
  func.func @transform_23(%arg0: i32, %arg1: i32) -> (i32, i32) {
    %c0_i32 = arith.constant 0 : i32
    %c0_i32_0 = arith.constant 0 : i32
    %c0_i32_1 = arith.constant 0 : i32
    return %c0_i32, %c0_i32_0 : i32, i32
  }
  func.func @transform_24(%arg0: i32, %arg1: i32) -> (i32, i32, i32) {
    %c0_i32 = arith.constant 0 : i32
    %c0_i32_0 = arith.constant 0 : i32
    %c0_i32_1 = arith.constant 0 : i32
    return %arg0, %c0_i32, %c0_i32_0 : i32, i32, i32
  }
}

</mosaic_0001>

<bundles_post_ra>
// kernel: tpu_custom_call.1
= control target key start
LH: loop header
LB: loop body
LE: loop exit
PB: predicated region body
PF: predicated region fallthrough
CT: control target
= control target key end

     0   :  { %s6298_s0 = inlined_call_operand.hbm [shape: f32[2,8,32], index: 0, kind: input, shape index: {}]   ;;  %s6299_s1 = inlined_call_operand.hbm [shape: f32[2,8,32], index: 1, kind: input, shape index: {}]   ;;  %s6300_s2 = inlined_call_operand.vmem [shape: f32[2,8,1], index: 2, kind: input, shape index: {}]   ;;  %s6301_s3 = inlined_call_operand.hbm [shape: f32[2,1,8], index: 3, kind: input, shape index: {}]   ;;  %s6302_s4 = inlined_call_operand.vmem [shape: f32[2,8,1], index: 4, kind: input, shape index: {}]   ;;  %s6303_s5 = inlined_call_operand.hbm [shape: f32[2,1,8], index: 5, kind: input, shape index: {}]   ;;  %s6304_s6 = inlined_call_operand.vmem [shape: bf16[2,32,32], index: 6, kind: input, shape index: {}]   ;;  %s6305_s7 = inlined_call_operand.vmem [shape: bf16[2,32,32], index: 7, kind: input, shape index: {}]   ;;  %s6306_s8 = inlined_call_operand.vmem [shape: bf16[2,32,32], index: 8, kind: input, shape index: {}]   ;;  %s6307_s9 = inlined_call_operand.vmem [shape: bf16[2,32,32], index: 9, kind: input, shape index: {}]   ;;  %s6308_s10 = inlined_call_operand.vmem [shape: bf16[2,32,64], index: 10, kind: input, shape index: {}]   ;;  %s6309_s11 = inlined_call_operand.vmem [shape: bf16[2,64,32], index: 11, kind: input, shape index: {}]   ;;  %s6310_s12 = inlined_call_operand.vmem [shape: bf16[2,32,32], index: 12, kind: input, shape index: {}]   ;;  %s6311_s13 = inlined_call_operand.hbm [shape: bf16[2,32,32], index: 13, kind: input, shape index: {}]   ;;  %s6312_s14 = inlined_call_operand.hbm [shape: bf16[2,32,32], index: 14, kind: input, shape index: {}]   ;;  %s6313_s15 = inlined_call_operand.hbm [shape: bf16[2,32,32], index: 15, kind: input, shape index: {}]   ;;  %s6314_s16 = inlined_call_operand.vmem [shape: bf16[2,32,32], index: 16, kind: input, shape index: {}]   ;;  %s6315_s17 = inlined_call_operand.hbm [shape: bf16[2,32,32], index: 17, kind: input, shape index: {}]   ;;  %s6316_s18 = inlined_call_operand.hbm [shape: bf16[2,32,32], index: 18, kind: input, shape index: {}]   ;;  %s6317_s19 = inlined_call_operand.hbm [shape: bf16[2,32,32], index: 19, kind: input, shape index: {}]   ;;  %s6318_s20 = inlined_call_operand.hbm [shape: bf16[2,32,64], index: 20, kind: input, shape index: {}]   ;;  %s6319_s21 = inlined_call_operand.vmem [shape: bf16[2,64,32], index: 21, kind: input, shape index: {}]   ;;  %s6320_s22 = inlined_call_operand.vmem [shape: bf16[32,128], index: 22, kind: input, shape index: {}]   ;;  %s6321_s23 = inlined_call_operand.vmem [shape: f32[1,128], index: 23, kind: input, shape index: {}]   ;;  %s6322_s24 = inlined_call_operand.hbm [shape: f32[2,8,128], index: 24, kind: output, shape index: {}]  }
   0x1   :  { %6372 = sst [smem:[#allocation51_spill]] %s6298_s0 }
   0x2   :  { %6373 = sst [smem:[#allocation52_spill]] %s6299_s1 }
   0x3   :  { %6374 = sst [smem:[#allocation53_spill]] %s6300_s2 }
   0x4   :  { %6375 = sst [smem:[#allocation54_spill]] %s6301_s3 }
   0x5   :  { %6376 = sst [smem:[#allocation55_spill]] %s6302_s4 }
   0x6   :  { %6377 = sst [smem:[#allocation56_spill]] %s6303_s5 }
   0x7   :  { %6378 = sst [smem:[#allocation57_spill]] %s6304_s6 }
   0x8   :  { %6379 = sst [smem:[#allocation58_spill]] %s6305_s7 }
   0x9   :  { %6380 = sst [smem:[#allocation59_spill]] %s6306_s8 }
   0xa   :  { %6381 = sst [smem:[#allocation60_spill]] %s6307_s9 }
   0xb   :  { %6382 = sst [smem:[#allocation61_spill]] %s6308_s10 }
   0xc   :  { %6383 = sst [smem:[#allocation62_spill]] %s6309_s11 }
   0xd   :  { %6384 = sst [smem:[#allocation63_spill]] %s6310_s12 }
   0xe   :  { %6385 = sst [smem:[#allocation64_spill]] %s6311_s13 }
   0xf   :  { %6386 = sst [smem:[#allocation65_spill]] %s6312_s14 }
  0x10   :  { %6387 = sst [smem:[#allocation66_spill]] %s6313_s15 }
  0x11   :  { %6388 = sst [smem:[#allocation67_spill]] %s6314_s16 }
  0x12   :  { %6389 = sst [smem:[#allocation68_spill]] %s6315_s17 }
  0x13   :  { %6390 = sst [smem:[#allocation69_spill]] %s6316_s18 }
  0x14   :  { %6391 = sst [smem:[#allocation70_spill]] %s6317_s19 }
  0x15   :  { %6392 = sst [smem:[#allocation71_spill]] %s6318_s20 }
  0x16   :  { %6393 = sst [smem:[#allocation72_spill]] %s6319_s21 }
  0x17   :  { %6394 = sst [smem:[#allocation73_spill]] %s6320_s22 }
  0x18   :  { %6395 = sst [smem:[#allocation74_spill]] %s6321_s23 }
  0x19   :  { %6396 = sst [smem:[#allocation75_spill]] %s6322_s24 }
  0x1a   :  { %29 = vsyncpa [#allocation5], 0 }
  0x1b   :  { %31 = vsyncpa [#allocation5 + $0x1], 0 }
  0x1c   :  { %32 = vsyncpa [#allocation8], 0 }
  0x1d   :  { %34 = vsyncpa [#allocation8 + $0x1], 0 }
  0x1e   :  { %35 = vsyncpa [#allocation11], 0 }
  0x1f   :  { %37 = vsyncpa [#allocation11 + $0x1], 0 }
  0x20   :  { %38 = vsyncpa [#allocation14], 0 }
  0x21   :  { %40 = vsyncpa [#allocation14 + $0x1], 0 }
  0x22   :  { %41 = vsyncpa [#allocation17], 0 }
  0x23   :  { %43 = vsyncpa [#allocation17 + $0x1], 0 }
  0x24   :  { %44 = vsyncpa [#allocation20], 0 }
  0x25   :  { %46 = vsyncpa [#allocation20 + $0x1], 0 }
  0x26   :  { %47 = vsyncpa [#allocation6], 0 }
  0x27   :  { %49 = vsyncpa [#allocation6 + $0x1], 0  ;;  %s5284_s5 = smov 0   ;;  %s5286_s26 = smov 0  }
  0x28   :  { %s5288_s27 = smov 0   ;;  %s5290_s28 = smov 0  }
  0x29   :  { %s5292_s6 = smov 0   ;;  %s5294_s2 = smov 0  }
  0x2a   :  { %s5296_s29 = smov 0   ;;  %s5298_s0 = smov 0  }
  0x2b   :  { %s5300_s7 = smov 0   ;;  %s5302_s30 = smov 0  }
  0x2c   :  { %s5304_s3 = smov 0  }
  0x2d LB: > { %6397 = sst [smem:[#allocation31_spill]] %s5095_s26  ;;  %s5340_s25 = sadd.s32 4294967295, %s5131_s3   ;;  %s5131_s3 = sphi %s5304_s3, %s55_s3   ;;  %s5127_s30 = sphi %s5302_s30, %s6519_s30   ;;  %s5123_s7 = sphi %s5300_s7, %s6518_s7   ;;  %s5119_s0 = sphi %s5298_s0, %s6517_s0   ;;  %s5115_s29 = sphi %s5296_s29, %s6516_s29   ;;  %s5111_s2 = sphi %s5294_s2, %s6515_s2   ;;  %s5107_s6 = sphi %s5292_s6, %s6514_s6   ;;  %s5103_s28 = sphi %s5290_s28, %s6513_s28   ;;  %s5099_s27 = sphi %s5288_s27, %s6512_s27   ;;  %s5095_s26 = sphi %s5286_s26, %s6511_s26   ;;  %s5091_s5 = sphi %s5284_s5, %s6510_s5  }
  0x2e   : > { %6398 = sst [smem:[#allocation32_spill]] %s5099_s27  ;;  %s3893_s8 = sadd.s32 4294967294, %s5131_s3  }
  0x2f   : > { %6399 = sst [smem:[#allocation33_spill]] %s5103_s28  ;;  %s64_s4 = sadd.s32 1, %s5123_s7 }
  0x30   : > { %6400 = sst [smem:[#allocation34_spill]] %s5107_s6  ;;  %s67_s1 = sadd.s32 1, %s5127_s30 }
  0x31   : > { %6401 = sst [smem:[#allocation35_spill]] %s5111_s2  ;;  %p65_p0 = scmp.ge.s32.totalorder %s64_s4, 4 }
  0x32   : > { %6402 = sst [smem:[#allocation36_spill]] %s5115_s29  ;;  %s74_s24 = sadd.s32 1, %s5111_s2 }
  0x33   : > { %6403 = sst [smem:[#allocation37_spill]] %s5119_s0  ;;  %p81_p1 = scmp.ne.s32.totalorder %s5111_s2, %s5107_s6 }
  0x34   : > { %6404 = sst [smem:[#allocation38_spill]] %s5123_s7  ;;  %p82_p2 = scmp.eq.s32.totalorder %s5131_s3, 0 }
  0x35   : > { %6405 = sst [smem:[#allocation39_spill]] %s5127_s30  ;;  %s6521_s4 = smov (%p65_p0, %s64_s4), 0 }
  0x36   : > { %6406 = sst [smem:[#allocation40_spill]] %s5131_s3  ;;  %s6523_s1 = smov (!%p65_p0, %s67_s1), %s5127_s30 }
  0x37   : > { %6407 = sst [smem:[#allocation41_spill]] %s5340_s25  ;;  %p5357_p3 = por %p82_p2, %p81_p1 }
  0x38   : > { %6408 = sst [smem:[#allocation42_spill]] %s6521_s4  ;;  %p6330_p4 = scmp.ne.s32.totalorder %s5107_s6, %s5103_s28 }
  0x39   : > { %p69_p5 = scmp.ge.s32.totalorder %s6523_s1, 2  ;;  %p88_p6 = scmp.eq.s32.totalorder %s5340_s25, 0 }
  0x3a   : > { %s3897_s22 = sadd.s32 4294967294, %s6521_s4  ;;  %p455_p9 = scmp.ne.s32.totalorder %s5099_s27, %s5095_s26 }
  0x3b   : > { %s6525_s1 = smov (%p69_p5, %s6523_s1), 0  ;;  %p5373_p7 = por %p88_p6, %p6330_p4 }
  0x3c   : > { %6410 = sst [smem:[#allocation43_spill]] %s6525_s1  ;;  %p443_p8 = scmp.gt.s32.totalorder %s3897_s22, 0 }
  0x3d   : > { %s6411_s16 = scalar_select %p5373_p7, 1, 0 }
  0x3e   : > { %s71_s12 = ssub.s32 %s5127_s30, %s6525_s1  ;;  %p461_p11 = scmp.ne.s32.totalorder %s5095_s26, %s5091_s5 }
  0x3f   : > { %6412 = sst [smem:[#allocation44_spill]] %s6411_s16  ;;  %p72_p10 = scmp.eq.s32.totalorder %s71_s12, 0 }
  0x40   : > { %s6527_s22 = smov (!%p443_p8, %s3897_s22), 0  ;;  %p5390_p12 = por %p455_p9, %p82_p2 }
  0x41   : > { %s5386_s21 = scalar_select %p72_p10, %s5111_s2, %s74_s24  }
  0x42   : > { %p5396_p13 = por %p461_p11, %p88_p6  ;;  %p783_p0 = scmp.eq.s32.totalorder %s5340_s25, 7 }
  0x43   : > { %6413 = sst [smem:[#allocation45_spill]] %s5386_s21  ;;  %p789_p5 = scmp.eq.s32.totalorder %s3893_s8, 7 }
  0x44   : > { %s6415_s11 = scalar_select %p5396_p13, 1, 0 }
  0x45   : > { %p4475_p4 = scmp.lt.s32.totalorder %s5131_s3, 8  ;;  %p5405_p7 = por %p783_p0, %p81_p1 }
  0x46   : > { %6416 = sst [smem:[#allocation46_spill]] %s6415_s11  ;;  %p6419_p8 = scmp.ne.s32.totalorder %s5107_s6, %s5103_s28 }
  0x47   : > { %s6417_s12 = scalar_select %p5405_p7, 1, 0 }
  0x48   : > { %p5412_p10 = por %p789_p5, %p6419_p8  ;;  %s5417_s5 = sand.u32 1, %s5111_s2  }
  0x49   : > { %6418 = sst [smem:[#allocation47_spill]] %s6417_s12  ;;  %s6343_s1 = sshll.u32 %s5127_s30, 7 }
  0x4a   : > { %s6420_s24 = scalar_select %p5412_p10, 1, 0 }
  0x4b   : > { %s6342_s21 = sshll.u32 %s5417_s5, 3  ;;  %p5423_p2 = pnand %p4475_p4, %p5357_p3 }
  0x4c   : > { %6421 = sst [smem:[#allocation48_spill]] %s6420_s24  ;;  %s5428_s10 = sand.u32 1, %s5131_s3  }
  0x4d   : > { %s6422_s8 = scalar_select %p5423_p2, 1, 0 }
  0x4e   : > { %s6423_s9 = sld [smem:[#allocation52_spill]]  ;;  %s837_s23 = scalar_lea.vmem [#allocation7], %s6342_s21 }
  0x4f   : > { %s844_s2 = sshll.u32 %s837_s23, 4  ;;  %p5443_p1 = pnand %p4475_p4, %p5390_p12  ;;  %s5439_s2 = int_to_ptr.vmem [resolvable:$true] %s844_s2 }
  0x50   : > { %p5452_p6 = pneg %p5423_p2 }
  0x51   : > { %s6424_s29 = scalar_select %p5443_p1, 1, 0 }
  0x52   : > { %s6425_s28 = scalar_select %p5452_p6, 1, 0 }
  0x54   : > { %s5435_s24 = scalar_lea.hbm %s6423_s9, %s6343_s1  ;;  %s4660_s4 = scalar_lea.hbm %s6423_s9, 256 }
  0x55   : > { %s4655_s11 = scalar_lea.hbm %s5435_s24, 128  ;;  %p4661_p4 = scmp.lt.u32.totalorder %s5435_s24, %s6423_s9 }
  0x56   : > { %p4656_p3 = scmp.ne.s32.totalorder %s5435_s24, %s4655_s11  ;;  %p4662_p12 = scmp.lt.u32.totalorder %s4660_s4, %s4655_s11 }
  0x57   : > { %p4664_p5 = scmp.lt.u32.totalorder %s4655_s11, %s5435_s24 }
  0x58   : > { %p4658_p9 = pnand %p5452_p6, %p4656_p3  ;;  %p4663_p0 = por %p4662_p12, %p4661_p4 }
  0x5a   : > { %p4659_p11 = pneg %p4658_p9  ;;  %p4665_p8 = por %p4664_p5, %p4663_p0 }
  0x5c   : > { %p4666_p10 = pnand %p4665_p8, %p4659_p11 }
  0x5e   : > { %4669 = shalt.err (!%p4666_p10)
}
  0x5f   : > { %s4670_s0 = scalar_lea.vmem %s5439_s2, 128  ;;  %s5133_s12 = smov [#allocation7]  }
  0x60   : > { %p4671_p3 = scmp.ne.s32.totalorder %s5439_s2, %s4670_s0  ;;  %s4675_s23 = sshll.u32 %s5133_s12, 4  ;;  %s4676_s23 = int_to_ptr.vmem [resolvable:$false] %s4675_s23 }
  0x61   : > { %s4677_s21 = scalar_lea.vmem %s4676_s23, 256  ;;  %p4678_p13 = scmp.lt.s32.totalorder %s5439_s2, %s4676_s23 }
  0x62   : > { %p4673_p9 = pnand %p4671_p3, %p5452_p6  ;;  %p4679_p1 = scmp.lt.s32.totalorder %s4677_s21, %s4670_s0 }
  0x64   : > { %p4674_p7 = pneg %p4673_p9  ;;  %p4680_p4 = por %p4679_p1, %p4678_p13 }
  0x66   : > { %p4681_p12 = pnand %p4680_p4, %p4674_p7 }
  0x68   : > { %4684 = shalt.err (!%p4681_p12)
}
  0x69   : > { %s6426_s11 = scalar_lea.sflag [#allocation8], %s5428_s10  ;;  %p3950_p10 = scmp.ge.s32.totalorder %s5131_s3, 1 }
  0x6a   : > { %4443 = dma.hbm_to_vmem [thread:$0]  (!%p5423_p2), %s5435_s24, 128, %s5439_s2, %s6426_s11  }
  0x6b   : > { %p1179_p11 = scmp.lt.s32.totalorder %s5131_s3, 9  ;;  %s3920_s0 = sshll.u32 %s5127_s30, 4 }
  0x6c   : > { %s6427_s12 = sld [smem:[#allocation54_spill]]  ;;  %s6430_s25 = sld [smem:[#allocation56_spill]] }
  0x6d   : > { %p5485_p7 = pnand %p3950_p10, %p1179_p11  ;;  %s885_s2 = scalar_lea.vmem [#allocation10], %s5417_s5 }
  0x6e   : > { %s892_s24 = sshll.u32 %s885_s2, 4  ;;  %s3896_s11 = sadd.s32 4294967294, %s5123_s7  ;;  %s5495_s24 = int_to_ptr.vmem [resolvable:$true] %s892_s24 }
  0x6f   : > { %s6428_s21 = scalar_select %p5485_p7, 1, 0 }
  0x70   : > { %s6355_s1 = scalar_lea.sflag [#allocation11], %s5428_s10 }
  0x71   : > { %6429 = sst [smem:[#allocation49_spill]] %s6428_s21 }
  0x72   : > { %s5483_s23 = scalar_lea.hbm %s6427_s12, %s3920_s0  ;;  %s5492_s16 = scalar_lea.hbm %s6430_s25, %s3920_s0 }
  0x73   : > { %s4685_s4 = scalar_lea.hbm %s5492_s16, 16  ;;  %s4690_s9 = scalar_lea.hbm %s6430_s25, 32 }
  0x74   : > { %p4686_p13 = scmp.ne.s32.totalorder %s5492_s16, %s4685_s4  ;;  %p4691_p5 = scmp.lt.u32.totalorder %s5492_s16, %s6430_s25 }
  0x75   : > { %p4692_p8 = scmp.lt.u32.totalorder %s4690_s9, %s4685_s4  ;;  %p4694_p9 = scmp.lt.u32.totalorder %s4685_s4, %s5492_s16 }
  0x76   : > { %p4688_p1 = pnand %p4686_p13, %p5452_p6 }
  0x77   : > { %p4693_p3 = por %p4692_p8, %p4691_p5 }
  0x78   : > { %p4689_p0 = pneg %p4688_p1 }
  0x79   : > { %p4695_p4 = por %p4694_p9, %p4693_p3 }
  0x7b   : > { %p4696_p12 = pnand %p4695_p4, %p4689_p0 }
  0x7d   : > { %4699 = shalt.err (!%p4696_p12)
}
  0x7e   : > { %s4700_s2 = scalar_lea.vmem %s5495_s24, 16  ;;  %s5134_s6 = smov [#allocation10]  }
  0x7f   : > { %p4701_p10 = scmp.ne.s32.totalorder %s5495_s24, %s4700_s2  ;;  %s4705_s3 = sshll.u32 %s5134_s6, 4  ;;  %s4706_s3 = int_to_ptr.vmem [resolvable:$false] %s4705_s3 }
  0x80   : > { %s4707_s26 = scalar_lea.vmem %s4706_s3, 32  ;;  %p4708_p1 = scmp.lt.s32.totalorder %s5495_s24, %s4706_s3 }
  0x81   : > { %p4703_p11 = pnand %p4701_p10, %p5452_p6  ;;  %p4709_p7 = scmp.lt.s32.totalorder %s4707_s26, %s4700_s2 }
  0x83   : > { %p4704_p13 = pneg %p4703_p11  ;;  %p4710_p5 = por %p4709_p7, %p4708_p1 }
  0x85   : > { %p4711_p8 = pnand %p4710_p5, %p4704_p13 }
  0x87   : > { %4714 = shalt.err (!%p4711_p8)
}
  0x88   : > { %4449 = dma.hbm_to_vmem [thread:$0]  (!%p5423_p2), %s5492_s16, 16, %s5495_s24, %s6355_s1  }
  0x89   : > { %p440_p0 = scmp.gt.s32.totalorder %s3896_s11, 0  ;;  %s987_s4 = sand.u32 1, %s5099_s27  }
  0x8a   : > { %s5525_s9 = sshll.u32 %s987_s4, 4  ;;  %s6431_s14 = sld [smem:[#allocation65_spill]] }
  0x8b   : > { %s6529_s11 = smov (!%p440_p0, %s3896_s11), 0  ;;  %s1013_s16 = scalar_lea.vmem [#allocation13], %s5525_s9 }
  0x8c   : > { %s445_s0 = ssub.s32 %s6529_s11, %s6527_s22  ;;  %s5530_s2 = sshll.u32 %s6529_s11, 8 }
  0x8d   : > { %p446_p7 = scmp.eq.s32.totalorder %s445_s0, 0  ;;  %s1023_s24 = sshll.u32 %s1013_s16, 4  ;;  %s5544_s24 = int_to_ptr.vmem [resolvable:$true] %s1023_s24 }
  0x8e   : > { %s6432_s4 = sadd.s32 1, %s5099_s27  ;;  %p6434_p9 = scmp.ne.s32.totalorder %s6424_s29, 0 }
  0x8f   : > { %s5542_s1 = scalar_select %p446_p7, %s5099_s27, %s6432_s4  }
  0x90   : > { %s5536_s26 = scalar_lea.hbm %s6431_s14, %s5530_s2  ;;  %p5551_p4 = pneg %p6434_p9 }
  0x91   : > { %6433 = sst [smem:[#allocation50_spill]] %s5542_s1  ;;  %s4715_s11 = scalar_lea.hbm %s5536_s26, 256 }
  0x92   : > { %p4716_p3 = scmp.ne.s32.totalorder %s5536_s26, %s4715_s11  ;;  %s4720_s16 = scalar_lea.hbm %s6431_s14, 512 }
  0x93   : > { %s6435_s0 = scalar_select %p5551_p4, 1, 0 }
  0x94   : > { %p4718_p12 = pnand %p5551_p4, %p4716_p3  ;;  %p4721_p11 = scmp.lt.u32.totalorder %s5536_s26, %s6431_s14 }
  0x95   : > { %p4722_p13 = scmp.lt.u32.totalorder %s4720_s16, %s4715_s11  ;;  %p4724_p5 = scmp.lt.u32.totalorder %s4715_s11, %s5536_s26 }
  0x96   : > { %p4719_p10 = pneg %p4718_p12 }
  0x97   : > { %p4723_p1 = por %p4722_p13, %p4721_p11 }
  0x99   : > { %p4725_p8 = por %p4724_p5, %p4723_p1 }
  0x9b   : > { %p4726_p0 = pnand %p4725_p8, %p4719_p10 }
  0x9d   : > { %4729 = shalt.err (!%p4726_p0)
}
  0x9e   : > { %s4730_s22 = scalar_lea.vmem %s5544_s24, 256  ;;  %s5135_s6 = smov [#allocation13]  }
  0x9f   : > { %p4731_p7 = scmp.ne.s32.totalorder %s5544_s24, %s4730_s22  ;;  %s4735_s3 = sshll.u32 %s5135_s6, 4  ;;  %s4736_s3 = int_to_ptr.vmem [resolvable:$false] %s4735_s3 }
  0xa0   : > { %s4737_s25 = scalar_lea.vmem %s4736_s3, 512  ;;  %p4738_p2 = scmp.lt.s32.totalorder %s5544_s24, %s4736_s3 }
  0xa1   : > { %p4733_p3 = pnand %p4731_p7, %p5551_p4  ;;  %p4739_p6 = scmp.lt.s32.totalorder %s4737_s25, %s4730_s22 }
  0xa3   : > { %p4734_p12 = pneg %p4733_p3  ;;  %p4740_p11 = por %p4739_p6, %p4738_p2 }
  0xa5   : > { %p4741_p13 = pnand %p4740_p11, %p4734_p12 }
  0xa7   : > { %4744 = shalt.err (!%p4741_p13)
}
  0xa8   : > { %s5136_s11 = smov 64   ;;  %s5137_s16 = smov 4  }
  0xa9   : > { %s6436_s4 = scalar_lea.sflag [#allocation14], %s5428_s10  ;;  %s6437_s17 = sld [smem:[#allocation68_spill]] }
  0xaa   : > { %4455 = dma.hbm_to_vmem [thread:$0]  (!%p6434_p9), %s5536_s26, 256, %s5544_s24, %s6436_s4, %s5136_s11, %s5136_s11, %s5137_s16  }
  0xab   : > { %s1075_s25 = scalar_lea.vmem [#allocation16], %s5525_s9  ;;  %s6362_s7 = scalar_lea.sflag [#allocation17], %s5428_s10 }
  0xac   : > { %s1085_s14 = sshll.u32 %s1075_s25, 4  ;;  %s5586_s14 = int_to_ptr.vmem [resolvable:$true] %s1085_s14 }
  0xaf   : > { %s5583_s3 = scalar_lea.hbm %s6437_s17, %s5530_s2  ;;  %s4750_s4 = scalar_lea.hbm %s6437_s17, 512 }
  0xb0   : > { %s4745_s1 = scalar_lea.hbm %s5583_s3, 256  ;;  %p4751_p1 = scmp.lt.u32.totalorder %s5583_s3, %s6437_s17 }
  0xb1   : > { %p4746_p2 = scmp.ne.s32.totalorder %s5583_s3, %s4745_s1  ;;  %p4752_p5 = scmp.lt.u32.totalorder %s4750_s4, %s4745_s1 }
  0xb2   : > { %p4754_p0 = scmp.lt.u32.totalorder %s4745_s1, %s5583_s3 }
  0xb3   : > { %p4748_p6 = pnand %p4746_p2, %p5551_p4  ;;  %p4753_p8 = por %p4752_p5, %p4751_p1 }
  0xb5   : > { %p4749_p10 = pneg %p4748_p6  ;;  %p4755_p7 = por %p4754_p0, %p4753_p8 }
  0xb7   : > { %p4756_p3 = pnand %p4755_p7, %p4749_p10 }
  0xb9   : > { %4759 = shalt.err (!%p4756_p3)
}
  0xba   : > { %s4760_s25 = scalar_lea.vmem %s5586_s14, 256  ;;  %s5138_s26 = smov [#allocation16]  }
  0xbb   : > { %p4761_p12 = scmp.ne.s32.totalorder %s5586_s14, %s4760_s25  ;;  %s4765_s24 = sshll.u32 %s5138_s26, 4  ;;  %s4766_s24 = int_to_ptr.vmem [resolvable:$false] %s4765_s24 }
  0xbc   : > { %s4767_s22 = scalar_lea.vmem %s4766_s24, 512  ;;  %p4768_p2 = scmp.lt.s32.totalorder %s5586_s14, %s4766_s24 }
  0xbd   : > { %p4763_p11 = pnand %p4761_p12, %p5551_p4  ;;  %p4769_p6 = scmp.lt.s32.totalorder %s4767_s22, %s4760_s25 }
  0xbf   : > { %p4764_p13 = pneg %p4763_p11  ;;  %p4770_p1 = por %p4769_p6, %p4768_p2 }
  0xc1   : > { %p4771_p5 = pnand %p4770_p1, %p4764_p13 }
  0xc3   : > { %4774 = shalt.err (!%p4771_p5)
}
  0xc4   : > { %4461 = dma.hbm_to_vmem [thread:$0]  (!%p6434_p9), %s5583_s3, 256, %s5586_s14, %s6362_s7, %s5136_s11, %s5136_s11, %s5137_s16  }
  0xc5   : > { %s6438_s19 = sld [smem:[#allocation70_spill]]  ;;  %s1123_s25 = scalar_lea.vmem [#allocation19], %s5525_s9 }
  0xc6   : > { %s1133_s26 = sshll.u32 %s1123_s25, 4  ;;  %s6365_s24 = scalar_lea.sflag [#allocation20], %s5428_s10  ;;  %s5622_s26 = int_to_ptr.vmem [resolvable:$true] %s1133_s26 }
  0xcb   : > { %s5619_s6 = scalar_lea.hbm %s6438_s19, %s5530_s2  ;;  %s4780_s1 = scalar_lea.hbm %s6438_s19, 512 }
  0xcc   : > { %s4775_s22 = scalar_lea.hbm %s5619_s6, 256  ;;  %p4781_p7 = scmp.lt.u32.totalorder %s5619_s6, %s6438_s19 }
  0xcd   : > { %p4776_p10 = scmp.ne.s32.totalorder %s5619_s6, %s4775_s22  ;;  %p4782_p3 = scmp.lt.u32.totalorder %s4780_s1, %s4775_s22 }
  0xce   : > { %p4784_p11 = scmp.lt.u32.totalorder %s4775_s22, %s5619_s6 }
  0xcf   : > { %p4778_p8 = pnand %p4776_p10, %p5551_p4  ;;  %p4783_p12 = por %p4782_p3, %p4781_p7 }
  0xd1   : > { %p4779_p0 = pneg %p4778_p8  ;;  %p4785_p13 = por %p4784_p11, %p4783_p12 }
  0xd3   : > { %p4786_p2 = pnand %p4785_p13, %p4779_p0 }
  0xd5   : > { %4789 = shalt.err (!%p4786_p2)
}
  0xd6   : > { %s4790_s25 = scalar_lea.vmem %s5622_s26, 256  ;;  %s5139_s14 = smov [#allocation19]  }
  0xd7   : > { %p4791_p6 = scmp.ne.s32.totalorder %s5622_s26, %s4790_s25  ;;  %s4795_s3 = sshll.u32 %s5139_s14, 4  ;;  %s4796_s3 = int_to_ptr.vmem [resolvable:$false] %s4795_s3 }
  0xd8   : > { %s4797_s7 = scalar_lea.vmem %s4796_s3, 512  ;;  %p4798_p10 = scmp.lt.s32.totalorder %s5622_s26, %s4796_s3 }
  0xd9   : > { %p4793_p1 = pnand %p4791_p6, %p5551_p4  ;;  %p4799_p8 = scmp.lt.s32.totalorder %s4797_s7, %s4790_s25 }
  0xdb   : > { %p4794_p5 = pneg %p4793_p1  ;;  %p4800_p7 = por %p4799_p8, %p4798_p10 }
  0xdd   : > { %p4801_p3 = pnand %p4800_p7, %p4794_p5 }
  0xdf   : > { %4804 = shalt.err (!%p4801_p3)
}
  0xe0   : > { %4467 = dma.hbm_to_vmem [thread:$0]  (!%p6434_p9), %s5619_s6, 256, %s5622_s26, %s6365_s24, %s5136_s11, %s5136_s11, %s5137_s16  }
  0xe1   : > { %s6439_s22 = sshll.u32 %s5127_s30, 7  ;;  %s6440_s25 = sld [smem:[#allocation51_spill]] }
  0xe2   : > { %s6441_s3 = sshll.u32 %s5417_s5, 3  ;;  %s861_s19 = scalar_lea.vmem [#allocation9], %s5417_s5 }
  0xe3   : > { %s819_s7 = scalar_lea.vmem [#allocation4], %s6441_s3  ;;  %s5663_s27 = sshll.u32 %s861_s19, 4  ;;  %s869_s27 = int_to_ptr.vmem [resolvable:$true] %s5663_s27 }
  0xe4   : > { %s826_s17 = sshll.u32 %s819_s7, 4  ;;  %s816_s21 = scalar_lea.sflag [#allocation5], %s5417_s5  ;;  %s5660_s17 = int_to_ptr.vmem [resolvable:$true] %s826_s17 }
  0xe5   : > { %p6442_p12 = scmp.ne.s32.totalorder %s6425_s28, 0 }
  0xe7   : > { %s5656_s14 = scalar_lea.hbm %s6440_s25, %s6439_s22  ;;  %s4810_s1 = scalar_lea.hbm %s6440_s25, 256 }
  0xe8   : > { %s4805_s6 = scalar_lea.hbm %s5656_s14, 128  ;;  %p4811_p2 = scmp.lt.u32.totalorder %s5656_s14, %s6440_s25 }
  0xe9   : > { %p4806_p0 = scmp.ne.s32.totalorder %s5656_s14, %s4805_s6  ;;  %p4812_p6 = scmp.lt.u32.totalorder %s4810_s1, %s4805_s6 }
  0xea   : > { %p4814_p5 = scmp.lt.u32.totalorder %s4805_s6, %s5656_s14 }
  0xeb   : > { %p4808_p11 = pnand %p4806_p0, %p6442_p12  ;;  %p4813_p1 = por %p4812_p6, %p4811_p2 }
  0xed   : > { %p4809_p13 = pneg %p4808_p11  ;;  %p4815_p10 = por %p4814_p5, %p4813_p1 }
  0xef   : > { %p4816_p8 = pnand %p4815_p10, %p4809_p13 }
  0xf1   : > { %4819 = shalt.err (!%p4816_p8)
}
  0xf2   : > { %s4820_s19 = scalar_lea.vmem %s5660_s17, 128  ;;  %s5140_s5 = smov [#allocation4]  }
  0xf3   : > { %p4821_p7 = scmp.ne.s32.totalorder %s5660_s17, %s4820_s19  ;;  %s4825_s3 = sshll.u32 %s5140_s5, 4  ;;  %s4826_s3 = int_to_ptr.vmem [resolvable:$false] %s4825_s3 }
  0xf4   : > { %s4827_s24 = scalar_lea.vmem %s4826_s3, 256  ;;  %p4828_p11 = scmp.lt.s32.totalorder %s5660_s17, %s4826_s3 }
  0xf5   : > { %p4823_p3 = pnand %p4821_p7, %p6442_p12  ;;  %p4829_p9 = scmp.lt.s32.totalorder %s4827_s24, %s4820_s19 }
  0xf7   : > { %p4824_p0 = pneg %p4823_p3  ;;  %p4830_p2 = por %p4829_p9, %p4828_p11 }
  0xf9   : > { %p4831_p6 = pnand %p4830_p2, %p4824_p0 }
  0xfb   : > { %4834 = shalt.err (!%p4831_p6)
}
  0xfc   : > { %p6443_p13 = scmp.ne.s32.totalorder %s6422_s8, 0  ;;  %s4835_s7 = scalar_lea.hbm %s5483_s23, 16 }
  0xfd   : > { %p4836_p1 = scmp.ne.s32.totalorder %s5483_s23, %s4835_s7  ;;  %s4840_s22 = scalar_lea.hbm %s6427_s12, 32 }
  0xfe   : > { %4440 = dma.hbm_to_vmem [thread:$0]  (!%p6443_p13), %s5656_s14, 128, %s5660_s17, %s816_s21  }
  0xff   : > { %p4838_p5 = pnand %p4836_p1, %p6442_p12  ;;  %p4841_p9 = scmp.lt.u32.totalorder %s5483_s23, %s6427_s12 }
 0x100   : > { %p4842_p8 = scmp.lt.u32.totalorder %s4840_s22, %s4835_s7  ;;  %p4844_p3 = scmp.lt.u32.totalorder %s4835_s7, %s5483_s23 }
 0x101   : > { %p4839_p10 = pneg %p4838_p5 }
 0x102   : > { %p4843_p7 = por %p4842_p8, %p4841_p9 }
 0x104   : > { %p4845_p0 = por %p4844_p3, %p4843_p7 }
 0x106   : > { %p4846_p11 = pnand %p4845_p0, %p4839_p10 }
 0x108   : > { %4849 = shalt.err (!%p4846_p11)
}
 0x109   : > { %s4850_s17 = scalar_lea.vmem %s869_s27, 16  ;;  %s5141_s21 = smov [#allocation9]  }
 0x10a   : > { %p4851_p2 = scmp.ne.s32.totalorder %s869_s27, %s4850_s17  ;;  %s4855_s14 = sshll.u32 %s5141_s21, 4  ;;  %s4856_s14 = int_to_ptr.vmem [resolvable:$false] %s4855_s14 }
 0x10b   : > { %s4857_s19 = scalar_lea.vmem %s4856_s14, 32  ;;  %p4858_p5 = scmp.lt.s32.totalorder %s869_s27, %s4856_s14 }
 0x10c   : > { %p4853_p6 = pnand %p4851_p2, %p6442_p12  ;;  %p4859_p4 = scmp.lt.s32.totalorder %s4857_s19, %s4850_s17 }
 0x10e   : > { %p4854_p1 = pneg %p4853_p6  ;;  %p4860_p13 = por %p4859_p4, %p4858_p5 }
 0x110   : > { %p4861_p8 = pnand %p4860_p13, %p4854_p1 }
 0x112   : > { %4864 = shalt.err (!%p4861_p8)
}
 0x113   : > { %p6444_p9 = scmp.ne.s32.totalorder %s6422_s8, 0  ;;  %s6445_s5 = scalar_lea.sflag [#allocation8], %s5428_s10 }
 0x114   : > { %s6446_s13 = sld [smem:[#allocation64_spill]]  ;;  %s989_s7 = scalar_lea.vmem [#allocation12], %s5525_s9 }
 0x115   : > { %4446 = dma.hbm_to_vmem [thread:$0]  (!%p6444_p9), %s5483_s23, 16, %s869_s27, %s6445_s5  }
 0x116   : > { %s999_s6 = sshll.u32 %s989_s7, 4  ;;  %p6447_p12 = scmp.ne.s32.totalorder %s6435_s0, 0  ;;  %s5714_s6 = int_to_ptr.vmem [resolvable:$true] %s999_s6 }
 0x11a   : > { %s5711_s24 = scalar_lea.hbm %s6446_s13, %s5530_s2  ;;  %s4870_s23 = scalar_lea.hbm %s6446_s13, 512 }
 0x11b   : > { %s4865_s8 = scalar_lea.hbm %s5711_s24, 256  ;;  %p4871_p7 = scmp.lt.u32.totalorder %s5711_s24, %s6446_s13 }
 0x11c   : > { %p4866_p4 = scmp.ne.s32.totalorder %s5711_s24, %s4865_s8  ;;  %p4872_p3 = scmp.lt.u32.totalorder %s4870_s23, %s4865_s8 }
 0x11d   : > { %p4874_p11 = scmp.lt.u32.totalorder %s4865_s8, %s5711_s24 }
 0x11e   : > { %p4868_p13 = pnand %p4866_p4, %p6447_p12  ;;  %p4873_p0 = por %p4872_p3, %p4871_p7 }
 0x120   : > { %p4869_p10 = pneg %p4868_p13  ;;  %p4875_p2 = por %p4874_p11, %p4873_p0 }
 0x122   : > { %p4876_p6 = pnand %p4875_p2, %p4869_p10 }
 0x124   : > { %4879 = shalt.err (!%p4876_p6)
}
 0x125   : > { %s4880_s4 = scalar_lea.vmem %s5714_s6, 256  ;;  %s5142_s17 = smov [#allocation12]  }
 0x126   : > { %p4881_p1 = scmp.ne.s32.totalorder %s5714_s6, %s4880_s4  ;;  %s4885_s21 = sshll.u32 %s5142_s17, 4  ;;  %s4886_s21 = int_to_ptr.vmem [resolvable:$false] %s4885_s21 }
 0x127   : > { %s4887_s14 = scalar_lea.vmem %s4886_s21, 512  ;;  %p4888_p9 = scmp.lt.s32.totalorder %s5714_s6, %s4886_s21 }
 0x128   : > { %p4883_p5 = pnand %p4881_p1, %p6447_p12  ;;  %p4889_p4 = scmp.lt.s32.totalorder %s4887_s14, %s4880_s4 }
 0x12a   : > { %p4884_p8 = pneg %p4883_p5  ;;  %p4890_p13 = por %p4889_p4, %p4888_p9 }
 0x12c   : > { %p4891_p7 = pnand %p4890_p13, %p4884_p8 }
 0x12e   : > { %4894 = shalt.err (!%p4891_p7)
}
 0x12f   : > { %p6448_p10 = scmp.ne.s32.totalorder %s6424_s29, 0  ;;  %s6449_s19 = scalar_lea.sflag [#allocation11], %s5428_s10 }
 0x130   : > { %s6450_s15 = sld [smem:[#allocation66_spill]]  ;;  %s1037_s7 = scalar_lea.vmem [#allocation15], %s5525_s9 }
 0x131   : > { %4452 = dma.hbm_to_vmem [thread:$0]  (!%p6448_p10), %s5711_s24, 256, %s5714_s6, %s6449_s19, %s5136_s11, %s5136_s11, %s5137_s16  }
 0x132   : > { %s1047_s8 = sshll.u32 %s1037_s7, 4  ;;  %s5749_s8 = int_to_ptr.vmem [resolvable:$true] %s1047_s8 }
 0x136   : > { %s5746_s3 = scalar_lea.hbm %s6450_s15, %s5530_s2  ;;  %s4900_s6 = scalar_lea.hbm %s6450_s15, 512 }
 0x137   : > { %s4895_s26 = scalar_lea.hbm %s5746_s3, 256  ;;  %p4901_p2 = scmp.lt.u32.totalorder %s5746_s3, %s6450_s15 }
 0x138   : > { %p4896_p3 = scmp.ne.s32.totalorder %s5746_s3, %s4895_s26  ;;  %p4902_p6 = scmp.lt.u32.totalorder %s4900_s6, %s4895_s26 }
 0x139   : > { %p4904_p5 = scmp.lt.u32.totalorder %s4895_s26, %s5746_s3 }
 0x13a   : > { %p4898_p0 = pnand %p4896_p3, %p6447_p12  ;;  %p4903_p1 = por %p4902_p6, %p4901_p2 }
 0x13c   : > { %p4899_p11 = pneg %p4898_p0  ;;  %p4905_p8 = por %p4904_p5, %p4903_p1 }
 0x13e   : > { %p4906_p9 = pnand %p4905_p8, %p4899_p11 }
 0x140   : > { %4909 = shalt.err (!%p4906_p9)
}
 0x141   : > { %s4910_s1 = scalar_lea.vmem %s5749_s8, 256  ;;  %s5143_s4 = smov [#allocation15]  }
 0x142   : > { %p4911_p4 = scmp.ne.s32.totalorder %s5749_s8, %s4910_s1  ;;  %s4915_s17 = sshll.u32 %s5143_s4, 4  ;;  %s4916_s17 = int_to_ptr.vmem [resolvable:$false] %s4915_s17 }
 0x143   : > { %s4917_s21 = scalar_lea.vmem %s4916_s17, 512  ;;  %p4918_p3 = scmp.lt.s32.totalorder %s5749_s8, %s4916_s17 }
 0x144   : > { %p4913_p13 = pnand %p4911_p4, %p6447_p12  ;;  %p4919_p0 = scmp.lt.s32.totalorder %s4917_s21, %s4910_s1 }
 0x146   : > { %p4914_p7 = pneg %p4913_p13  ;;  %p4920_p2 = por %p4919_p0, %p4918_p3 }
 0x148   : > { %p4921_p6 = pnand %p4920_p2, %p4914_p7 }
 0x14a   : > { %4924 = shalt.err (!%p4921_p6)
}
 0x14b   : > { %s6451_s14 = scalar_lea.sflag [#allocation14], %s5428_s10  ;;  %s6452_s18 = sld [smem:[#allocation69_spill]] }
 0x14c   : > { %4458 = dma.hbm_to_vmem [thread:$0]  (!%p6448_p10), %s5746_s3, 256, %s5749_s8, %s6451_s14, %s5136_s11, %s5136_s11, %s5137_s16  }
 0x14d   : > { %s1099_s7 = scalar_lea.vmem [#allocation18], %s5525_s9 }
 0x14e   : > { %s1109_s26 = sshll.u32 %s1099_s7, 4  ;;  %s5784_s26 = int_to_ptr.vmem [resolvable:$true] %s1109_s26 }
 0x151   : > { %s5781_s28 = scalar_lea.hbm %s6452_s18, %s5530_s2  ;;  %s4930_s8 = scalar_lea.hbm %s6452_s18, 512 }
 0x152   : > { %s4925_s27 = scalar_lea.hbm %s5781_s28, 256  ;;  %p4931_p8 = scmp.lt.u32.totalorder %s5781_s28, %s6452_s18 }
 0x153   : > { %p4926_p11 = scmp.ne.s32.totalorder %s5781_s28, %s4925_s27  ;;  %p4932_p9 = scmp.lt.u32.totalorder %s4930_s8, %s4925_s27 }
 0x154   : > { %p4934_p13 = scmp.lt.u32.totalorder %s4925_s27, %s5781_s28 }
 0x155   : > { %p4928_p1 = pnand %p4926_p11, %p6447_p12  ;;  %p4933_p4 = por %p4932_p9, %p4931_p8 }
 0x157   : > { %p4929_p5 = pneg %p4928_p1  ;;  %p4935_p7 = por %p4934_p13, %p4933_p4 }
 0x159   : > { %p4936_p3 = pnand %p4935_p7, %p4929_p5 }
 0x15b   : > { %4939 = shalt.err (!%p4936_p3)
}
 0x15c   : > { %s4940_s22 = scalar_lea.vmem %s5784_s26, 256  ;;  %s5144_s1 = smov [#allocation18]  }
 0x15d   : > { %p4941_p0 = scmp.ne.s32.totalorder %s5784_s26, %s4940_s22  ;;  %s4945_s4 = sshll.u32 %s5144_s1, 4  ;;  %s4946_s4 = int_to_ptr.vmem [resolvable:$false] %s4945_s4 }
 0x15e   : > { %s4947_s17 = scalar_lea.vmem %s4946_s4, 512  ;;  %p4948_p11 = scmp.lt.s32.totalorder %s5784_s26, %s4946_s4 }
 0x15f   : > { %p4943_p2 = pnand %p4941_p0, %p6447_p12  ;;  %p4949_p1 = scmp.lt.s32.totalorder %s4947_s17, %s4940_s22 }
 0x161   : > { %p4944_p6 = pneg %p4943_p2  ;;  %p4950_p8 = por %p4949_p1, %p4948_p11 }
 0x163   : > { %p4951_p9 = pnand %p4950_p8, %p4944_p6 }
 0x165   : > { %4954 = shalt.err (!%p4951_p9)
}
 0x166   : > { %s6453_s21 = scalar_lea.sflag [#allocation17], %s5428_s10  ;;  %s6454_s20 = sld [smem:[#allocation71_spill]] }
 0x167   : > { %4464 = dma.hbm_to_vmem [thread:$0]  (!%p6448_p10), %s5781_s28, 256, %s5784_s26, %s6453_s21, %s5136_s11, %s5136_s11, %s5137_s16  }
 0x168   : > { %s1147_s7 = scalar_lea.vmem [#allocation21], %s5525_s9 }
 0x169   : > { %s1157_s27 = sshll.u32 %s1147_s7, 4  ;;  %s5819_s27 = int_to_ptr.vmem [resolvable:$true] %s1157_s27 }
 0x16c   : > { %s5816_s5 = scalar_lea.hbm %s6454_s20, %s5530_s2  ;;  %s4960_s26 = scalar_lea.hbm %s6454_s20, 512 }
 0x16d   : > { %s4955_s24 = scalar_lea.hbm %s5816_s5, 256  ;;  %p4961_p7 = scmp.lt.u32.totalorder %s5816_s5, %s6454_s20 }
 0x16e   : > { %p4956_p5 = scmp.ne.s32.totalorder %s5816_s5, %s4955_s24  ;;  %p4962_p3 = scmp.lt.u32.totalorder %s4960_s26, %s4955_s24 }
 0x16f   : > { %p4964_p2 = scmp.lt.u32.totalorder %s4955_s24, %s5816_s5 }
 0x170   : > { %p4958_p4 = pnand %p4956_p5, %p6447_p12  ;;  %p4963_p0 = por %p4962_p3, %p4961_p7 }
 0x172   : > { %p4959_p13 = pneg %p4958_p4  ;;  %p4965_p6 = por %p4964_p2, %p4963_p0 }
 0x174   : > { %p4966_p11 = pnand %p4965_p6, %p4959_p13 }
 0x176   : > { %4969 = shalt.err (!%p4966_p11)
}
 0x177   : > { %s4970_s9 = scalar_lea.vmem %s5819_s27, 256  ;;  %s5145_s6 = smov [#allocation21]  }
 0x178   : > { %p4971_p1 = scmp.ne.s32.totalorder %s5819_s27, %s4970_s9  ;;  %s4975_s23 = sshll.u32 %s5145_s6, 4  ;;  %s4976_s23 = int_to_ptr.vmem [resolvable:$false] %s4975_s23 }
 0x179   : > { %s4977_s22 = scalar_lea.vmem %s4976_s23, 512  ;;  %p4978_p5 = scmp.lt.s32.totalorder %s5819_s27, %s4976_s23 }
 0x17a   : > { %p4973_p8 = pnand %p4971_p1, %p6447_p12  ;;  %p4979_p4 = scmp.lt.s32.totalorder %s4977_s22, %s4970_s9 }
 0x17c   : > { %p4974_p9 = pneg %p4973_p8  ;;  %p4980_p7 = por %p4979_p4, %p4978_p5 }
 0x17e   : > { %p4981_p3 = pnand %p4980_p7, %p4974_p9 }
 0x180   : > { %4984 = shalt.err (!%p4981_p3)
}
 0x181   : > { %s6455_s1 = scalar_lea.sflag [#allocation20], %s5428_s10  ;;  %s6456_s0 = sld [smem:[#allocation49_spill]] }
 0x182   : > { %4470 = dma.hbm_to_vmem [thread:$0]  (!%p6448_p10), %s5816_s5, 256, %s5819_s27, %s6455_s1, %s5136_s11, %s5136_s11, %s5137_s16  }
 0x187   : > { %p6457_p12 = scmp.ne.s32.totalorder %s6456_s0, 0 }
 0x188   : > { %s6458_s4 = sld [smem:[#allocation34_spill]] (!%p6457_p12)  ;;  %s6459_s17 = sld [smem:[#allocation44_spill]] (!%p6457_p12) }
 0x189   : > { %1183 = sbr.rel (%p6457_p12) target bundleno = 7390 (0x1cde), region = 116 }
 0x18e   : > { %s5850_s21 = sand.u32 (!%p6457_p12), 1, %s6458_s4   ;;  %p6460_p13 = scmp.ne.s32.totalorder (!%p6457_p12), %s6459_s17, 0 }
 0x18f   : > { %s5853_s14 = sshll.u32 (!%p6457_p12), %s5850_s21, 3  ;;  %s1186_s29 = scalar_lea.sflag (!%p6457_p12), [#allocation5], %s5850_s21 }
 0x190   : > { %5058 = dma.done.wait (%p6460_p13), %s1186_s29, 128  }
 0x191   : > { %5060 = vsyncadd (%p6460_p13), %s1186_s29, 4294967168  ;;  %s6461_s10 = sld [smem:[#allocation41_spill]] }
 0x197   : > { %s1194_s11 = sand.u32 1, %s6461_s10  }
 0x198   : > { %s1195_s16 = scalar_lea.sflag [#allocation8], %s1194_s11 }
 0x199   : > { %5062 = dma.done.wait (%p6460_p13), %s1195_s16, 144  }
 0x19a   : > { %5064 = vsyncadd (%p6460_p13), %s1195_s16, 4294967152  ;;  %s1212_s27 = scalar_lea.sflag [#allocation11], %s1194_s11 }
 0x19b   : > { %5066 = dma.done.wait (%p6460_p13), %s1212_s27, 16  }
 0x19c   : > { %5068 = vsyncadd (%p6460_p13), %s1212_s27, 4294967280  ;;  %s6462_s3 = sld [smem:[#allocation31_spill]] }
 0x19d   : > { %s6463_s28 = sld [smem:[#allocation46_spill]] }
 0x1a2   : > { %s1221_s26 = sand.u32 1, %s6462_s3  }
 0x1a3   : > { %s5874_s8 = sshll.u32 %s1221_s26, 4  ;;  %p6464_p10 = scmp.ne.s32.totalorder %s6463_s28, 0 }
 0x1a5   : > { %5070 = dma.done.wait (%p6464_p10), %s1212_s27, 256  }
 0x1a6   : > { %5072 = vsyncadd (%p6464_p10), %s1212_s27, 4294967040  ;;  %s1229_s9 = scalar_lea.sflag [#allocation14], %s1194_s11 }
 0x1a7   : > { %5074 = dma.done.wait (%p6464_p10), %s1229_s9, 512  }
 0x1a8   : > { %5076 = vsyncadd (%p6464_p10), %s1229_s9, 4294966784  ;;  %s1247_s22 = scalar_lea.sflag [#allocation17], %s1194_s11 }
 0x1a9   : > { %5078 = dma.done.wait (%p6464_p10), %s1247_s22, 512  }
 0x1aa   : > { %5080 = vsyncadd (%p6464_p10), %s1247_s22, 4294966784  ;;  %s1265_s4 = scalar_lea.sflag [#allocation20], %s1194_s11 }
 0x1ab   : > { %5082 = dma.done.wait (%p6464_p10), %s1265_s4, 512  }
 0x1ac   : > { %5084 = vsyncadd (%p6464_p10), %s1265_s4, 4294966784  ;;  %s6465_s29 = sld [smem:[#allocation37_spill]]  ;;  %s6466_s10 = sld [smem:[#allocation36_spill]] }
 0x1ad   : > { %s6467_s9 = sld [smem:[#allocation53_spill]]  ;;  %s6468_s4 = sld [smem:[#allocation55_spill]] }
 0x1ae   : > { %s6470_s11 = sld [smem:[#allocation58_spill]]  ;;  %s6471_s17 = sld [smem:[#allocation59_spill]] }
 0x1af   : > { %s6472_s13 = sld [smem:[#allocation60_spill]]  ;;  %s6473_s20 = sld [smem:[#allocation61_spill]] }
 0x1b0   : > { %s6474_s25 = sld [smem:[#allocation62_spill]]  ;;  %s6476_s30 = sld [smem:[#allocation67_spill]] }
 0x1b2   : > { %p1464_p0 = scmp.lt.s32.totalorder %s6465_s29, 1  ;;  %p1472_p2 = scmp.lt.s32.totalorder %s6466_s10, 1 }
 0x1b3   : > { %s3993_s16 = sadd.s32 4294967294, %s6466_s10  ;;  %p4017_p1 = scmp.ne.s32.totalorder %s6466_s10, 0 }
 0x1b4   : > { %s6531_s29 = smov (!%p1464_p0, %s6465_s29), 1  ;;  %p1527_p6 = scmp.gt.s32.totalorder %s3993_s16, 0  ;;  %vm1586_vm0 = vcmask (!%p4017_p1), 261120  }
 0x1b5   : > { %s1473_s27 = scalar_select %p1472_p2, %s6466_s10, 1 }
 0x1b6   : > { %s3961_s3 = sshll.u32 %s6531_s29, 3  ;;  %s6469_s29 = sld [smem:[#allocation57_spill]] }
 0x1b7   : > { %s5906_s22 = scalar_lea.vmem %s6467_s9, %s3961_s3  ;;  %s5911_s0 = scalar_lea.vmem %s6468_s4, %s3961_s3 }
 0x1b8   : > { %s6533_s27 = smov (!%p1472_p2, %s1473_s27), 1  ;;  %p3994_p11 = scmp.lt.s32.totalorder %s3993_s16, 1 }
 0x1b9   : > { %s1528_s1 = scalar_select %p1527_p6, %s3993_s16, 0 }
 0x1ba   : > { %s4103_s23 = sshll.u32 %s6533_s27, 4  ;;  %s4108_s24 = sshll.u32 %s6533_s27, 5 }
 0x1bb   : > { %s1487_s9 = scalar_lea.vmem %s6470_s11, %s4103_s23  ;;  %s5924_s3 = scalar_lea.vmem %s6471_s17, %s4103_s23 }
 0x1bc   : > { %s5916_s7 = scalar_lea.vmem %s6469_s29, %s4103_s23  ;;  %s5929_s15 = scalar_lea.vmem %s6472_s13, %s4103_s23 }
 0x1bd   : > { %s5934_s2 = scalar_lea.vmem %s6473_s20, %s4103_s23  ;;  %s5939_s5 = scalar_lea.vmem %s6474_s25, %s4108_s24 }
 0x1be   : > { %s6535_s1 = smov (!%p3994_p11, %s1528_s1), 1  ;;  %s6475_s17 = sld [smem:[#allocation63_spill]] }
 0x1bf   : > { %s4111_s12 = sshll.u32 %s6535_s1, 4  ;;  %s4117_s19 = sshll.u32 %s6535_s1, 5 }
 0x1c0   : > { %s5949_s18 = scalar_lea.vmem %s6476_s30, %s4111_s12  ;;  %s6477_s27 = sld [smem:[#allocation72_spill]] }
 0x1c1   : > { %s1277_s25 = scalar_lea.vmem [#allocation21], %s5874_s8  ;;  %s1463_s24 = scalar_lea.vmem [#allocation22], %s5853_s14 }
 0x1c2   : > { %1584 = sbr.rel (%p4017_p1) target bundleno = 457 (0x1c9), region = 164  ;;  %s6478_s1 = scalar_lea.vmem (!%p4017_p1), [#allocation4], %s5853_s14 }
 0x1c3   : > { %v1585_v0 = vld [vmem:[%s6478_s1] sm:$0xff] (!%p4017_p1)  ;;  %s6479_s16 = scalar_lea.vmem (!%p4017_p1), [#allocation7], %s5853_s14 }
 0x1c4   : > { %s5944_s28 = scalar_lea.vmem %s6475_s17, %s4111_s12  ;;  %v1588_v1 = vld [vmem:[%s6479_s16] sm:$0xff] (!%p4017_p1)  ;;  %1587 = vst.msk [vmem:[#allocation2] sm:$0xff] (!%p4017_p1), %vm1586_vm0, %v1585_v0 }
 0x1c5   : > { %1589 = vst.msk [vmem:[#allocation3] sm:$0xff] (!%p4017_p1), %vm1586_vm0, %v1588_v1 }
 0x1c6   : > { %s5954_s6 = scalar_lea.vmem %s6477_s27, %s4117_s19 }
 0x1c9 PF: > { %s6480_s30 = sld [smem:[#allocation36_spill]] }
 0x1cf   : > { %p4018_p8 = scmp.ge.s32.totalorder %s6480_s30, 2 }
 0x1d0   : > { %v4581_v2 = vld [vmem:[%s1487_s9] sm:$0xff] (!%p4018_p8)   ;;  %v5146_v3 = vmov (!%p4018_p8), 0.0   ;;  %v4582_v4 = vld [vmem:[%s1487_s9 + $0x8] sm:$0xff] (!%p4018_p8)   ;;  %vm5147_vm1 = vmmov (!%p4018_p8), 0   ;;  %vm1652_vm2 = vcmask (!%p4018_p8), 261120   ;;  %v5148_v10 = vmov (!%p4018_p8), 0  }
 0x1d1   : > { %1593 = sbr.rel (%p4018_p8) target bundleno = 2935 (0xb77), region = 168  ;;  %4205 = vmatprep.subr.bf16.mxu1 (!%p4018_p8), %v5146_v3  ;;  %4197 = vmatprep.subr.bf16.mxu0 (!%p4018_p8), %v5146_v3  ;;  %v4583_v5 = vld [vmem:[%s5916_s7] sm:$0xff] (!%p4018_p8)   ;;  %v4584_v7 = vld [vmem:[%s5916_s7 + $0x8] sm:$0xff] (!%p4018_p8)   ;;  %vm1803_vm3 = vcmask (!%p4018_p8), 130048   ;;  %s5149_s7 = smov (!%p4018_p8), 112   ;;  %vm1850_vm5 = vcmask (!%p4018_p8), 64512  }
 0x1d2   : > { %4206 = vmatpush3.bf16.msra.mxu1 (!%p4018_p8), %v4581_v2  ;;  %4209 = vmatprep.mubr.msk.bf16.mxu1 (!%p4018_p8), %vm5147_vm1, %v5146_v3  ;;  %v5970_v6 = vld [vmem:[#allocation2] sm:$0xff] (!%p4018_p8)  ;;  %v4586_v23 = vld [vmem:[%s5924_s3 + $0x8] sm:$0xff] (!%p4018_p8)   ;;  %s6481_s10 = scalar_lea.vmem (!%p4018_p8), [#allocation9], %s5850_s21  ;;  %vm1866_vm6 = vcmask (!%p4018_p8), 1043456   ;;  %vm2181_vm7 = vcmask (!%p4018_p8), 523264  }
 0x1d3   : > { %4207 = vmatprep.subr.bf16.mxu1 (!%p4018_p8), %v5146_v3  ;;  %4201 = vmatprep.mubr.msk.bf16.mxu0 (!%p4018_p8), %vm5147_vm1, %v5146_v3  ;;  %v1639_v8 = vpack.c.bf16 (!%p4018_p8), %v5970_v6, %v5970_v6  ;;  %v1594_v9 = vld [vmem:[%s5906_s22] sm:$0xff] (!%p4018_p8)  ;;  %s5150_s22 = smov (!%p4018_p8), 16  }
 0x1d4   : > { %4198 = vmatpush3.bf16.msra.mxu0 (!%p4018_p8), %v4583_v5  ;;  %4579 = vset.pattern.permute.xlu1 (!%p4018_p8), %v5148_v10  ;;  %v4585_v22 = vld [vmem:[%s5924_s3] sm:$0xff] (!%p4018_p8)  }
 0x1d5   : > { %4199 = vmatprep.subr.bf16.mxu0 (!%p4018_p8), %v5146_v3  ;;  %4580 = vset.pattern.permute.xlu0 (!%p4018_p8), %v5148_v10  ;;  %v4019_v27 = vld [vmem:[%s6481_s10] ss:$0 sm:$0xff] (!%p4018_p8) }
 0x1d6   : > { %4208 = vmatpush3.bf16.msra.mxu1 (!%p4018_p8), %v4582_v4  ;;  %1598 = vperm.xlu1 (!%p4018_p8), %4579, %v1594_v9  }
 0x1d7   : > { %4221 = vmatprep.subr.bf16.mxu1 (!%p4018_p8), %v5146_v3 }
 0x1d8   : > { %4200 = vmatpush3.bf16.msra.mxu0 %v4584_v7  ;;  %v4587_v7 = vld [vmem:[%s5929_s15] sm:$0xff]  }
 0x1d9   : > { %4210 = vmatmul.mubr.msk.bf16.vlgmr.msra.gmra.mrb[0].mxu1 %vm1652_vm2, %v1639_v8  ;;  %4213 = vmatprep.subr.bf16.mxu0 %v5146_v3 }
 0x1da   : > { %4223 = vmatprep.mubr.msk.bf16.mxu1 %vm5147_vm1, %v5146_v3 }
 0x1db   : > { %4202 = vmatmul.mubr.msk.bf16.vlgmr.msra.gmra.mrb[0].mxu0 %vm1652_vm2, %v1639_v8 }
 0x1dc   : > { %4217 = vmatprep.mubr.msk.bf16.mxu0 %vm5147_vm1, %v5146_v3  ;;  %4214 = vmatpush3.bf16.msra.mxu0 %v4585_v22 }
 0x1dd   : > { %4215 = vmatprep.subr.bf16.mxu0 %v5146_v3 }
 0x1e0   : > { %4216 = vmatpush3.bf16.msra.mxu0 %v4586_v23 }
 0x1e1   : > { %4227 = vmatprep.subr.bf16.mxu0 %v5146_v3 }
 0x1e3   : > { %4218 = vmatmul.mubr.msk.bf16.vlgmr.msra.gmra.mrb[4].mxu0 %vm1652_vm2, %v1639_v8 }
 0x1e4   : > { %4229 = vmatprep.mubr.msk.bf16.mxu0 %vm5147_vm1, %v5146_v3 }
 0x255   : > { %v1599_v28 = vpop.permute.xlu1 %1598 }
 0x256   : > { %v1607_v29 = vadd.f32 %v4019_v27, %v1599_v28 }
 0x258   : > { %vm1608_vm4 = vcmp.gt.f32.partialorder %v1607_v29, 0.0 }
 0x259   : > { %v1609_v30 = vsel %vm1608_vm4, -1e+09, %v5146_v3 }
 0x2ac   : > { %v1742_v11 = vpop.f32.mrb[0].mxu1 }
 0x2ad   : > { %v1801_v12 = vpack.c.bf16 %v1742_v11, %v1742_v11  ;;  %v4211_v13 = vpop.f32.mrb[1].mxu1 }
 0x2ae   : > { %v1745_v14 = vpop.f32.mrb[2].mxu1  ;;  %v1690_v15 = vpop.f32.mrb[0].mxu0 }
 0x2af   : > { %v1808_v16 = vsel %vm1803_vm3, %v1801_v12, 0  ;;  %1914 = vrot.lane.b32.xlu0 %v1801_v12, %s5149_s7  ;;  %v4212_v17 = vpop.f32.mrb[3].mxu1  ;;  %v1800_v18 = vpack.c.bf16 %v1690_v15, %v1690_v15  ;;  %v4203_v19 = vpop.f32.mrb[1].mxu0  ;;  %v4588_v12 = vld [vmem:[%s5929_s15 + $0x8] sm:$0xff]  }
 0x2b0   : > { %4222 = vmatpush3.bf16.xpose.msra.mxu1 %v1808_v16  ;;  %v1693_v20 = vpop.f32.mrb[2].mxu0 }
 0x2b1   : > { %v4204_v21 = vpop.f32.mrb[3].mxu0  ;;  %4233 = vmatprep.subr.bf16.mxu1 %v5146_v3 }
 0x2b3   : > { %1911 = vrot.lane.b32.xlu0 %v1800_v18, %s5149_s7 }
 0x2b6   : > { %v1794_v48 = vpop.f32.mrb[4].mxu0 }
 0x2b7   : > { %4224 = vmatmul.mubr.msk.bf16.vlgmr.msra.gmra.mrb[4].mxu1 %vm1803_vm3, %v1800_v18  ;;  %v4219_v49 = vpop.f32.mrb[5].mxu0  ;;  %v1802_v52 = vpack.c.bf16 %v1794_v48, %v1794_v48 }
 0x2b8   : > { %4235 = vmatprep.mubr.msk.bf16.mxu1 %vm5147_vm1, %v5146_v3  ;;  %v1797_v50 = vpop.f32.mrb[6].mxu0 }
 0x2b9   : > { %v4220_v51 = vpop.f32.mrb[7].mxu0  ;;  %v1868_v53 = vsel %vm1866_vm6, %v1802_v52, 0 }
 0x2ba   : > { %4228 = vmatpush3.bf16.msra.mxu0 %v1868_v53 }
 0x2bb   : > { %4239 = vmatprep.subr.bf16.mxu0 %v5146_v3 }
 0x321   : > { %v1915_v24 = vpop.permute.xlu0 %1914 }
 0x322   : > { %v1920_v25 = vsel %vm1803_vm3, %v1915_v24, 0 }
 0x323   : > { %4234 = vmatpush3.bf16.xpose.msra.mxu1 %v1920_v25 }
 0x324   : > { %4245 = vmatprep.subr.bf16.mxu1 %v5146_v3 }
 0x325   : > { %v1912_v26 = vpop.permute.xlu0 %1911 }
 0x32a   : > { %4236 = vmatmul.mubr.msk.bf16.vlgmr.msra.gmra.mrb[8].mxu1 %vm1803_vm3, %v1912_v26 }
 0x32b   : > { %4249 = vmatprep.mubr.msk.bf16.mxu1 %vm5147_vm1, %v5146_v3  ;;  %4246 = vmatpush3.bf16.msra.mxu1 %v4587_v7 }
 0x32c   : > { %4247 = vmatprep.subr.bf16.mxu1 %v5146_v3 }
 0x32f   : > { %4248 = vmatpush3.bf16.msra.mxu1 %v4588_v12 }
 0x330   : > { %4261 = vmatprep.subr.bf16.mxu1 %v5146_v3 }
 0x38a   : > { %v1844_v31 = vpop.f32.mrb[4].mxu1 }
 0x38b   : > { %v1845_v32 = vadd.f32 %v1844_v31, %v1609_v30  ;;  %v4225_v33 = vpop.f32.mrb[5].mxu1  ;;  %v4589_v31 = vld [vmem:[%s5934_s2] sm:$0xff]  }
 0x38c   : > { %v1847_v34 = vpop.f32.mrb[6].mxu1  ;;  %v4592_v33 = vld [vmem:[%s5939_s5 + $0x8] sm:$0xff]  }
 0x38d   : > { %v4226_v35 = vpop.f32.mrb[7].mxu1  ;;  %v1851_v36 = vsel %vm1850_vm5, %v1845_v32, -inf  ;;  %v4593_v34 = vld [vmem:[%s5939_s5 + $0x10] sm:$0xff]  }
 0x38e   : > { %1852 = vmax.xlane.f32.xlu1 %v1851_v36 }
 0x3fd   : > { %v1956_v37 = vpop.f32.mrb[8].mxu1 }
 0x3fe   : > { %v1957_v38 = vadd.f32 %v1956_v37, %v1609_v30  ;;  %v4237_v39 = vpop.f32.mrb[9].mxu1 }
 0x3ff   : > { %v1959_v40 = vpop.f32.mrb[10].mxu1 }
 0x400   : > { %v4238_v41 = vpop.f32.mrb[11].mxu1  ;;  %v1962_v42 = vsel %vm1850_vm5, %v1957_v38, -inf }
 0x401   : > { %1963 = vmax.xlane.f32.xlu0 %v1962_v42  ;;  %v4594_v41 = vld [vmem:[%s5939_s5 + $0x18] sm:$0xff]  }
 0x41b   : > { %v1853_v43 = vpop.xlane.xlu1 %1852 }
 0x41c   : > { %v1854_v44 = vsub.f32 %v1845_v32, %v1853_v43  ;;  %v4591_v32 = vld [vmem:[%s5939_s5] sm:$0xff]  }
 0x41e   : > { %v1855_v45 = vmul.f32 1.442695, %v1854_v44 }
 0x420   : > { %4595 = vpow2.f32 %v1855_v45 }
 0x42a   : > { %v4596_v46 = vpop.eup %4595 }
 0x42b   : > { %v1857_v47 = vsel %vm1850_vm5, %v4596_v46, 0.0 }
 0x42c   : > { %1858 = vadd.xlane.f32.xlu0 %v1857_v47 }
 0x442   : > { %1975 = vrot.lane.b32.xlu0 %v1802_v52, %s5149_s7 }
 0x48e   : > { %v1964_v54 = vpop.xlane.xlu0 %1963 }
 0x48f   : > { %v1965_v55 = vsub.f32 %v1957_v38, %v1964_v54 }
 0x491   : > { %v1966_v56 = vmul.f32 1.442695, %v1965_v55 }
 0x493   : > { %4597 = vpow2.f32 %v1966_v56 }
 0x49d   : > { %v4598_v57 = vpop.eup %4597 }
 0x49e   : > { %v1968_v58 = vsel %vm1850_vm5, %v4598_v57, 0.0 }
 0x49f   : > { %1969 = vadd.xlane.f32.xlu1 %v1968_v58 }
 0x4b9   : > { %v1859_v59 = vpop.xlane.xlu0 %1858 }
 0x4ba   : > { %4599 = vrcp.f32 %v1859_v59 }
 0x4bd   : > { %v1976_v61 = vpop.permute.xlu0 %1975 }
 0x4be   : > { %v1981_v0 = vsel %vm1866_vm6, %v1976_v61, 0 }
 0x4c4   : > { %v4600_v60 = vpop.eup %4599 }
 0x4c5   : > { %v1861_v62 = vmul.f32 %v4600_v60, %v4596_v46 }
 0x4c7   : > { %v1862_v63 = vpack.c.bf16 %v1861_v62, %v1861_v62 }
 0x4c9   : > { %4230 = vmatmul.mubr.msk.bf16.vlgmr.msra.gmra.mrb[8].mxu0 %vm1850_vm5, %v1862_v63 }
 0x4ca   : > { %4240 = vmatpush3.bf16.msra.mxu0 %v1981_v0  ;;  %4241 = vmatprep.mubr.msk.bf16.mxu0 %vm5147_vm1, %v5146_v3 }
 0x4cb   : > { %4253 = vmatprep.subr.bf16.mxu0 %v5146_v3 }
 0x52c   : > { %v1970_v1 = vpop.xlane.xlu1 %1969 }
 0x52d   : > { %4601 = vrcp.f32 %v1970_v1 }
 0x537   : > { %v4602_v2 = vpop.eup %4601 }
 0x538   : > { %v1972_v4 = vmul.f32 %v4602_v2, %v4598_v57 }
 0x53a   : > { %v1973_v5 = vpack.c.bf16 %v1972_v4, %v1972_v4 }
 0x53c   : > { %4242 = vmatmul.mubr.msk.bf16.vlgmr.msra.gmra.mrb[12].mxu0 %vm1850_vm5, %v1973_v5 }
 0x53d   : > { %4257 = vmatprep.mubr.msk.bf16.mxu0 %vm5147_vm1, %v5146_v3  ;;  %4254 = vmatpush3.bf16.msra.mxu0 %v4589_v31 }
 0x53e   : > { %4255 = vmatprep.subr.bf16.mxu0 %v5146_v3 }
 0x59c   : > { %v1904_v8 = vpop.f32.mrb[8].mxu0 }
 0x59d   : > { %v4231_v9 = vpop.f32.mrb[9].mxu0 }
 0x59e   : > { %v1907_v10 = vpop.f32.mrb[10].mxu0 }
 0x59f   : > { %v4232_v11 = vpop.f32.mrb[11].mxu0 }
 0x60f   : > { %v2017_v13 = vpop.f32.mrb[12].mxu0 }
 0x610   : > { %2024 = vrot.lane.b32.xlu1 %v2017_v13, %s5150_s22  ;;  %v4243_v14 = vpop.f32.mrb[13].mxu0 }
 0x611   : > { %v2020_v15 = vpop.f32.mrb[14].mxu0 }
 0x612   : > { %v4244_v16 = vpop.f32.mrb[15].mxu0 }
 0x682   : > { %v2025_v17 = vpop.permute.xlu1 %2024 }
 0x683   : > { %v2027_v18 = vsel %vm1803_vm3, %v1904_v8, %v2025_v17 }
 0x684   : > { %v2028_v19 = vpack.c.bf16 %v2027_v18, %v2027_v18 }
 0x686   : > { %4250 = vmatmul.mubr.msk.bf16.vlgmr.msra.gmra.mrb[12].mxu1 %vm1652_vm2, %v2028_v19 }
 0x687   : > { %4269 = vmatprep.mubr.msk.bf16.mxu1 %vm5147_vm1, %v5146_v3  ;;  %4262 = vmatpush3.bf16.msra.mxu1 %v4591_v32 }
 0x688   : > { %4263 = vmatprep.subr.bf16.mxu1 %v5146_v3 }
 0x68b   : > { %4264 = vmatpush3.bf16.msra.mxu1 %v4592_v33 }
 0x68c   : > { %4265 = vmatprep.subr.bf16.mxu1 %v5146_v3 }
 0x68f   : > { %4266 = vmatpush3.bf16.msra.mxu1 %v4593_v34 }
 0x690   : > { %4267 = vmatprep.subr.bf16.mxu1 %v5146_v3 }
 0x693   : > { %4268 = vmatpush3.bf16.msra.mxu1 %v4594_v41 }
 0x759   : > { %v2078_v20 = vpop.f32.mrb[12].mxu1 }
 0x75a   : > { %v2084_v21 = vadd.f32 %v2078_v20, %v5970_v6  ;;  %v4251_v22 = vpop.f32.mrb[13].mxu1  ;;  %v4590_v6 = vld [vmem:[%s5934_s2 + $0x8] sm:$0xff]  }
 0x75b   : > { %v2081_v23 = vpop.f32.mrb[14].mxu1  ;;  %4256 = vmatpush3.bf16.msra.mxu0 %v4590_v6 }
 0x75c   : > { %v4252_v24 = vpop.f32.mrb[15].mxu1  ;;  %v2085_v25 = vsel %vm1652_vm2, %v2084_v21, 0.0 }
 0x75d   : > { %2086 = vadd.xlane.f32.xlu1 %v2085_v25 }
 0x7ea   : > { %v2087_v26 = vpop.xlane.xlu1 %2086 }
 0x7eb   : > { %v2089_v27 = vmul.f32 0.03125, %v2087_v26 }
 0x7ed   : > { %v2090_v28 = vsub.f32 %v2084_v21, %v2089_v27 }
 0x7ef   : > { %v2091_v29 = vmul.f32 %v2090_v28, %v2090_v28 }
 0x7f1   : > { %v2092_v30 = vsel %vm1652_vm2, %v2091_v29, 0.0 }
 0x7f2   : > { %2093 = vadd.xlane.f32.xlu0 %v2092_v30 }
 0x87f   : > { %v2094_v35 = vpop.xlane.xlu0 %2093 }
 0x880   : > { %v2095_v36 = vmul.f32 0.03125, %v2094_v35 }
 0x882   : > { %v2096_v37 = vadd.f32 1e-05, %v2095_v36 }
 0x884   : > { %4603 = vrsqrt.f32 %v2096_v37 }
 0x88e   : > { %v4604_v38 = vpop.eup %4603 }
 0x88f   : > { %v2098_v39 = vmul.f32 %v4604_v38, %v2090_v28 }
 0x891   : > { %v2099_v40 = vpack.c.bf16 %v2098_v39, %v2098_v39 }
 0x893   : > { %4258 = vmatmul.mubr.msk.bf16.vlgmr.msra.gmra.mrb[16].mxu0 %vm1652_vm2, %v2099_v40 }
 0x966   : > { %v2149_v42 = vpop.f32.mrb[16].mxu0 }
 0x967   : > { %v2155_v43 = vmax.f32 %v2149_v42, 0.0  ;;  %v4259_v44 = vpop.f32.mrb[17].mxu0 }
 0x968   : > { %v2152_v45 = vpop.f32.mrb[18].mxu0 }
 0x969   : > { %v2156_v46 = vpack.c.bf16 %v2155_v43, %v2155_v43  ;;  %v4260_v47 = vpop.f32.mrb[19].mxu0 }
 0x96b   : > { %4270 = vmatmul.mubr.msk.bf16.vlgmr.msra.gmra.mrb[16].mxu1 %vm2181_vm7, %v2156_v46 }
 0xa3e   : > { %v2219_v3 = vpop.f32.mrb[16].mxu1 }
 0xa3f   : > { %v2225_v48 = vadd.f32 %v2219_v3, %v2098_v39  ;;  %v4271_v49 = vpop.f32.mrb[17].mxu1 }
 0xa40   : > { %v2222_v50 = vpop.f32.mrb[18].mxu1 }
 0xa41   : > { %v4272_v51 = vpop.f32.mrb[19].mxu1  ;;  %v2226_v52 = vsel %vm1652_vm2, %v2225_v48, 0.0 }
 0xa42   : > { %2227 = vadd.xlane.f32.xlu0 %v2226_v52 }
 0xacf   : > { %v2228_v53 = vpop.xlane.xlu0 %2227 }
 0xad0   : > { %v2229_v54 = vmul.f32 0.03125, %v2228_v53 }
 0xad2   : > { %v2230_v55 = vsub.f32 %v2225_v48, %v2229_v54 }
 0xad4   : > { %v2231_v56 = vmul.f32 %v2230_v55, %v2230_v55 }
 0xad6   : > { %v2232_v57 = vsel %vm1652_vm2, %v2231_v56, 0.0 }
 0xad7   : > { %2233 = vadd.xlane.f32.xlu1 %v2232_v57 }
 0xb64   : > { %v2234_v58 = vpop.xlane.xlu1 %2233 }
 0xb65   : > { %v2235_v59 = vmul.f32 0.03125, %v2234_v58 }
 0xb67   : > { %v2236_v60 = vadd.f32 1e-05, %v2235_v59 }
 0xb69   : > { %4605 = vrsqrt.f32 %v2236_v60 }
 0xb73   : > { %v4606_v61 = vpop.eup %4605 }
 0xb74   : > { %v2238_v62 = vmul.f32 %v4606_v61, %v2230_v55 }
 0xb76   : > { %2239 = vst.msk [vmem:[#allocation2] sm:$0xff] %vm1652_vm2, %v2238_v62 }
 0xb77 PF: > { %s6482_s15 = sld [smem:[#allocation36_spill]] }
 0xb7d   : > { %p4044_p9 = scmp.lt.s32.totalorder %s6482_s15, 2 }
 0xb7e   : > { %s6483_s9 = scalar_lea.vmem (!%p4044_p9), [#allocation12], %s5874_s8  ;;  %v5151_v0 = vmov (!%p4044_p9), 0.0   ;;  %v4611_v2 = vld [vmem:[%s5944_s28] sm:$0xff] (!%p4044_p9)   ;;  %vm5152_vm8 = vmmov (!%p4044_p9), 0   ;;  %v6060_v4 = vld [vmem:[#allocation3] sm:$0xff] (!%p4044_p9)  ;;  %vm2306_vm9 = vcmask (!%p4044_p9), 261120   ;;  %v2247_v26 = vlaneseq (!%p4044_p9) }
 0xb7f   : > { %2243 = sbr.rel (%p4044_p9) target bundleno = 7127 (0x1bd7), region = 172  ;;  %v4609_v63 = vld [vmem:[%s6483_s9] sm:$0xff] (!%p4044_p9)   ;;  %4281 = vmatprep.subr.bf16.mxu1 (!%p4044_p9), %v5151_v0  ;;  %s6484_s3 = smov (!%p4044_p9), %s6483_s9  ;;  %4273 = vmatprep.subr.bf16.mxu0 (!%p4044_p9), %v5151_v0  ;;  %v2293_v7 = vpack.c.bf16 (!%p4044_p9), %v6060_v4, %v6060_v4  ;;  %v5153_v9 = vmov (!%p4044_p9), 0   ;;  %vm2457_vm10 = vcmask (!%p4044_p9), 130048   ;;  %vm2504_vm14 = vcmask (!%p4044_p9), 64512  }
 0xb80   : > { %v4610_v1 = vld [vmem:[%s6484_s3 + $0x8] sm:$0xff] (!%p4044_p9)   ;;  %4282 = vmatpush3.bf16.msra.mxu1 (!%p4044_p9), %v4609_v63  ;;  %4285 = vmatprep.mubr.msk.bf16.mxu1 (!%p4044_p9), %vm5152_vm8, %v5151_v0  ;;  %v2244_v8 = vld [vmem:[%s5911_s0] sm:$0xff] (!%p4044_p9)  ;;  %s5154_s2 = smov (!%p4044_p9), 112   ;;  %s6485_s0 = scalar_lea.vmem (!%p4044_p9), [#allocation13], %s5874_s8  ;;  %v2248_v30 = vshrl.u32 (!%p4044_p9), %v2247_v26, 7  ;;  %v2250_v31 = vand.u32 (!%p4044_p9), 127, %v2247_v26 }
 0xb81   : > { %4283 = vmatprep.subr.bf16.mxu1 (!%p4044_p9), %v5151_v0  ;;  %4277 = vmatprep.mubr.msk.bf16.mxu0 (!%p4044_p9), %vm5152_vm8, %v5151_v0  ;;  %v4612_v5 = vld [vmem:[%s5944_s28 + $0x8] sm:$0xff] (!%p4044_p9)   ;;  %s6486_s29 = smov (!%p4044_p9), %s6485_s0  ;;  %s6487_s5 = scalar_lea.vmem (!%p4044_p9), [#allocation10], %s5850_s21  ;;  %vm2520_vm15 = vcmask (!%p4044_p9), 1043456   ;;  %vm3323_vm1 = vcmask (!%p4044_p9), 523264  }
 0xb82   : > { %4274 = vmatpush3.bf16.msra.mxu0 (!%p4044_p9), %v4611_v2  ;;  %4607 = vset.pattern.permute.xlu1 (!%p4044_p9), %v5153_v9  ;;  %v4613_v21 = vld [vmem:[%s6485_s0] sm:$0xff] (!%p4044_p9)   ;;  %v4045_v27 = vld [vmem:[%s6487_s5] ss:$0 sm:$0xff] (!%p4044_p9)  ;;  %vm2264_vm12 = vcmp.gt.s32.totalorder (!%p4044_p9), %v2250_v31, %v2248_v30  ;;  %s6488_s12 = scalar_lea.vmem (!%p4044_p9), [#allocation15], %s5874_s8  ;;  %s5155_s26 = smov (!%p4044_p9), 16  }
 0xb83   : > { %4275 = vmatprep.subr.bf16.mxu0 (!%p4044_p9), %v5151_v0  ;;  %4608 = vset.pattern.permute.xlu0 (!%p4044_p9), %v5153_v9  ;;  %v4614_v22 = vld [vmem:[%s6486_s29 + $0x8] sm:$0xff] (!%p4044_p9)   ;;  %s6489_s19 = smov (!%p4044_p9), %s6488_s12  ;;  %s6490_s11 = scalar_lea.vmem (!%p4044_p9), [#allocation16], %s5874_s8 }
 0xb84   : > { %4284 = vmatpush3.bf16.msra.mxu1 (!%p4044_p9), %v4610_v1  ;;  %2253 = vperm.xlu1 (!%p4044_p9), %4607, %v2244_v8   ;;  %v4615_v9 = vld [vmem:[%s6488_s12] sm:$0xff] (!%p4044_p9)   ;;  %s6491_s17 = smov (!%p4044_p9), %s6490_s11  ;;  %s6492_s28 = scalar_lea.vmem (!%p4044_p9), [#allocation18], %s5874_s8 }
 0xb85   : > { %4297 = vmatprep.subr.bf16.mxu1 (!%p4044_p9), %v5151_v0  ;;  %s6493_s13 = smov (!%p4044_p9), %s6492_s28  ;;  %s6494_s4 = scalar_lea.vmem (!%p4044_p9), [#allocation9], %s5850_s21 }
 0xb86   : > { %4276 = vmatpush3.bf16.msra.mxu0 %v4612_v5 }
 0xb87   : > { %4286 = vmatmul.mubr.msk.bf16.vlgmr.msra.gmra.mrb[0].mxu1 %vm2306_vm9, %v2293_v7  ;;  %4289 = vmatprep.subr.bf16.mxu0 %v5151_v0 }
 0xb88   : > { %4299 = vmatprep.mubr.msk.bf16.mxu1 %vm5152_vm8, %v5151_v0 }
 0xb89   : > { %4278 = vmatmul.mubr.msk.bf16.vlgmr.msra.gmra.mrb[0].mxu0 %vm2306_vm9, %v2293_v7 }
 0xb8a   : > { %4293 = vmatprep.mubr.msk.bf16.mxu0 %vm5152_vm8, %v5151_v0  ;;  %4290 = vmatpush3.bf16.msra.mxu0 %v4613_v21 }
 0xb8b   : > { %4291 = vmatprep.subr.bf16.mxu0 %v5151_v0 }
 0xb8e   : > { %4292 = vmatpush3.bf16.msra.mxu0 %v4614_v22 }
 0xb8f   : > { %4303 = vmatprep.subr.bf16.mxu0 %v5151_v0 }
 0xb91   : > { %4294 = vmatmul.mubr.msk.bf16.vlgmr.msra.gmra.mrb[4].mxu0 %vm2306_vm9, %v2293_v7 }
 0xb92   : > { %4305 = vmatprep.mubr.msk.bf16.mxu0 %vm5152_vm8, %v5151_v0 }
 0xc03   : > { %v6100_v28 = vpop.permute.xlu1 %2253 }
 0xc04   : > { %v2262_v29 = vadd.f32 %v4045_v27, %v6100_v28 }
 0xc06   : > { %vm2263_vm11 = vcmp.gt.f32.partialorder %v2262_v29, 0.0 }
 0xc07   : > { %vm2265_vm13 = vmor %vm2263_vm11, %vm2264_vm12 }
 0xc08   : > { %v2266_v6 = vsel %vm2265_vm13, -1e+09, %v5151_v0 }
 0xc5a   : > { %v2396_v10 = vpop.f32.mrb[0].mxu1 }
 0xc5b   : > { %v2455_v11 = vpack.c.bf16 %v2396_v10, %v2396_v10  ;;  %v4287_v12 = vpop.f32.mrb[1].mxu1 }
 0xc5c   : > { %v2399_v13 = vpop.f32.mrb[2].mxu1  ;;  %v2344_v14 = vpop.f32.mrb[0].mxu0 }
 0xc5d   : > { %v2462_v15 = vsel %vm2457_vm10, %v2455_v11, 0  ;;  %2568 = vrot.lane.b32.xlu0 %v2455_v11, %s5154_s2  ;;  %v4288_v16 = vpop.f32.mrb[3].mxu1  ;;  %v2454_v17 = vpack.c.bf16 %v2344_v14, %v2344_v14  ;;  %v4279_v18 = vpop.f32.mrb[1].mxu0  ;;  %v4616_v14 = vld [vmem:[%s6489_s19 + $0x8] sm:$0xff]  }
 0xc5e   : > { %4298 = vmatpush3.bf16.xpose.msra.mxu1 %v2462_v15  ;;  %v2347_v19 = vpop.f32.mrb[2].mxu0 }
 0xc5f   : > { %v4280_v20 = vpop.f32.mrb[3].mxu0  ;;  %4309 = vmatprep.subr.bf16.mxu1 %v5151_v0 }
 0xc61   : > { %2565 = vrot.lane.b32.xlu0 %v2454_v17, %s5154_s2 }
 0xc64   : > { %v2448_v48 = vpop.f32.mrb[4].mxu0 }
 0xc65   : > { %4300 = vmatmul.mubr.msk.bf16.vlgmr.msra.gmra.mrb[4].mxu1 %vm2457_vm10, %v2454_v17  ;;  %v4295_v49 = vpop.f32.mrb[5].mxu0  ;;  %v2456_v52 = vpack.c.bf16 %v2448_v48, %v2448_v48 }
 0xc66   : > { %4311 = vmatprep.mubr.msk.bf16.mxu1 %vm5152_vm8, %v5151_v0  ;;  %v2451_v50 = vpop.f32.mrb[6].mxu0 }
 0xc67   : > { %v4296_v51 = vpop.f32.mrb[7].mxu0  ;;  %v2522_v53 = vsel %vm2520_vm15, %v2456_v52, 0 }
 0xc68   : > { %4304 = vmatpush3.bf16.msra.mxu0 %v2522_v53 }
 0xc69   : > { %4315 = vmatprep.subr.bf16.mxu0 %v5151_v0 }
 0xccf   : > { %v2569_v23 = vpop.permute.xlu0 %2568 }
 0xcd0   : > { %v2574_v24 = vsel %vm2457_vm10, %v2569_v23, 0 }
 0xcd1   : > { %4310 = vmatpush3.bf16.xpose.msra.mxu1 %v2574_v24 }
 0xcd2   : > { %4321 = vmatprep.subr.bf16.mxu1 %v5151_v0 }
 0xcd3   : > { %v2566_v25 = vpop.permute.xlu0 %2565 }
 0xcd8   : > { %4312 = vmatmul.mubr.msk.bf16.vlgmr.msra.gmra.mrb[8].mxu1 %vm2457_vm10, %v2566_v25 }
 0xcd9   : > { %4325 = vmatprep.mubr.msk.bf16.mxu1 %vm5152_vm8, %v5151_v0  ;;  %4322 = vmatpush3.bf16.msra.mxu1 %v4615_v9 }
 0xcda   : > { %4323 = vmatprep.subr.bf16.mxu1 %v5151_v0 }
 0xcdd   : > { %4324 = vmatpush3.bf16.msra.mxu1 %v4616_v14 }
 0xcde   : > { %4337 = vmatprep.subr.bf16.mxu1 %v5151_v0 }
 0xd38   : > { %v2498_v32 = vpop.f32.mrb[4].mxu1 }
 0xd39   : > { %v2499_v33 = vadd.f32 %v2498_v32, %v2266_v6  ;;  %v4301_v34 = vpop.f32.mrb[5].mxu1 }
 0xd3a   : > { %v2501_v35 = vpop.f32.mrb[6].mxu1  ;;  %v2753_v34 = vld [vmem:[#allocation2] sm:$0xff] }
 0xd3b   : > { %v4302_v36 = vpop.f32.mrb[7].mxu1  ;;  %v2505_v37 = vsel %vm2504_vm14, %v2499_v33, -inf  ;;  %v2783_v35 = vpack.c.bf16 %v2753_v34, %v2753_v34 }
 0xd3c   : > { %2506 = vmax.xlane.f32.xlu1 %v2505_v37  ;;  %v4619_v36 = vld [vmem:[%s5949_s18] sm:$0xff]   ;;  %v4620_v37 = vld [vmem:[%s5949_s18 + $0x8] sm:$0xff]   ;;  %s6495_s18 = scalar_lea.vmem [#allocation19], %s5874_s8 }
 0xd3d   : > { %s6496_s20 = smov %s6495_s18 }
 0xdab   : > { %v2610_v38 = vpop.f32.mrb[8].mxu1 }
 0xdac   : > { %v2611_v39 = vadd.f32 %v2610_v38, %v2266_v6  ;;  %v4313_v40 = vpop.f32.mrb[9].mxu1 }
 0xdad   : > { %v2613_v41 = vpop.f32.mrb[10].mxu1 }
 0xdae   : > { %v4314_v42 = vpop.f32.mrb[11].mxu1  ;;  %v2616_v43 = vsel %vm2504_vm14, %v2611_v39, -inf }
 0xdaf   : > { %2617 = vmax.xlane.f32.xlu0 %v2616_v43 }
 0xdc9   : > { %v2507_v44 = vpop.xlane.xlu1 %2506 }
 0xdca   : > { %v2508_v45 = vsub.f32 %v2499_v33, %v2507_v44  ;;  %v4617_v33 = vld [vmem:[%s6490_s11] sm:$0xff]  }
 0xdcc   : > { %v2509_v46 = vmul.f32 1.442695, %v2508_v45 }
 0xdce   : > { %4631 = vpow2.f32 %v2509_v46 }
 0xdd8   : > { %v4632_v47 = vpop.eup %4631 }
 0xdd9   : > { %v2511_v3 = vsel %vm2504_vm14, %v4632_v47, 0.0 }
 0xdda   : > { %2512 = vadd.xlane.f32.xlu0 %v2511_v3 }
 0xdf0   : > { %2629 = vrot.lane.b32.xlu0 %v2456_v52, %s5154_s2 }
 0xe3c   : > { %v2618_v54 = vpop.xlane.xlu0 %2617 }
 0xe3d   : > { %v2619_v55 = vsub.f32 %v2611_v39, %v2618_v54 }
 0xe3f   : > { %v2620_v56 = vmul.f32 1.442695, %v2619_v55 }
 0xe41   : > { %4633 = vpow2.f32 %v2620_v56  ;;  %v4621_v56 = vld [vmem:[%s6492_s28] sm:$0xff]  }
 0xe4b   : > { %v4634_v57 = vpop.eup %4633 }
 0xe4c   : > { %v2622_v58 = vsel %vm2504_vm14, %v4634_v57, 0.0 }
 0xe4d   : > { %2623 = vadd.xlane.f32.xlu1 %v2622_v58 }
 0xe67   : > { %v2513_v59 = vpop.xlane.xlu0 %2512 }
 0xe68   : > { %4635 = vrcp.f32 %v2513_v59  ;;  %v4046_v59 = vld [vmem:[%s6494_s4] ss:$0 sm:$0xff] }
 0xe6b   : > { %v2630_v61 = vpop.permute.xlu0 %2629 }
 0xe6c   : > { %v2635_v1 = vsel %vm2520_vm15, %v2630_v61, 0 }
 0xe72   : > { %v4636_v60 = vpop.eup %4635 }
 0xe73   : > { %v2515_v62 = vmul.f32 %v4636_v60, %v4632_v47  ;;  %v2273_v60 = vadd.f32 %v4046_v59, %v6100_v28 }
 0xe75   : > { %v2516_v63 = vpack.c.bf16 %v2515_v62, %v2515_v62  ;;  %vm2274_vm0 = vcmp.gt.f32.partialorder %v2273_v60, 0.0 }
 0xe76   : > { %v2275_v61 = vsel %vm2274_vm0, -1e+09, %v5151_v0 }
 0xe77   : > { %4306 = vmatmul.mubr.msk.bf16.vlgmr.msra.gmra.mrb[8].mxu0 %vm2504_vm14, %v2516_v63 }
 0xe78   : > { %4316 = vmatpush3.bf16.msra.mxu0 %v2635_v1  ;;  %4317 = vmatprep.mubr.msk.bf16.mxu0 %vm5152_vm8, %v5151_v0 }
 0xe79   : > { %4329 = vmatprep.subr.bf16.mxu0 %v5151_v0 }
 0xeda   : > { %v2624_v2 = vpop.xlane.xlu1 %2623 }
 0xedb   : > { %4637 = vrcp.f32 %v2624_v2 }
 0xee5   : > { %v4638_v5 = vpop.eup %4637 }
 0xee6   : > { %v2626_v7 = vmul.f32 %v4638_v5, %v4634_v57  ;;  %v4622_v57 = vld [vmem:[%s6493_s13 + $0x8] sm:$0xff]  }
 0xee8   : > { %v2627_v8 = vpack.c.bf16 %v2626_v7, %v2626_v7 }
 0xeea   : > { %4318 = vmatmul.mubr.msk.bf16.vlgmr.msra.gmra.mrb[12].mxu0 %vm2504_vm14, %v2627_v8 }
 0xeeb   : > { %4333 = vmatprep.mubr.msk.bf16.mxu0 %vm5152_vm8, %v5151_v0  ;;  %4330 = vmatpush3.bf16.msra.mxu0 %v4619_v36 }
 0xeec   : > { %4331 = vmatprep.subr.bf16.mxu0 %v5151_v0 }
 0xeef   : > { %4332 = vmatpush3.bf16.msra.mxu0 %v4620_v37 }
 0xef0   : > { %4345 = vmatprep.subr.bf16.mxu0 %v5151_v0 }
 0xf4a   : > { %v2558_v10 = vpop.f32.mrb[8].mxu0 }
 0xf4b   : > { %v4307_v11 = vpop.f32.mrb[9].mxu0 }
 0xf4c   : > { %v2561_v12 = vpop.f32.mrb[10].mxu0 }
 0xf4d   : > { %v4308_v13 = vpop.f32.mrb[11].mxu0 }
 0xfbd   : > { %v2671_v15 = vpop.f32.mrb[12].mxu0 }
 0xfbe   : > { %2678 = vrot.lane.b32.xlu1 %v2671_v15, %s5155_s26  ;;  %v4319_v16 = vpop.f32.mrb[13].mxu0 }
 0xfbf   : > { %v2674_v17 = vpop.f32.mrb[14].mxu0 }
 0xfc0   : > { %v4320_v18 = vpop.f32.mrb[15].mxu0 }
0x1030   : > { %v2679_v19 = vpop.permute.xlu1 %2678 }
0x1031   : > { %v2681_v20 = vsel %vm2457_vm10, %v2558_v10, %v2679_v19 }
0x1032   : > { %v2682_v21 = vpack.c.bf16 %v2681_v20, %v2681_v20 }
0x1034   : > { %4326 = vmatmul.mubr.msk.bf16.vlgmr.msra.gmra.mrb[12].mxu1 %vm2306_vm9, %v2682_v21 }
0x1035   : > { %4341 = vmatprep.mubr.msk.bf16.mxu1 %vm5152_vm8, %v5151_v0  ;;  %4338 = vmatpush3.bf16.msra.mxu1 %v4617_v33 }
0x1036   : > { %4339 = vmatprep.subr.bf16.mxu1 %v5151_v0 }
0x1107   : > { %v2732_v22 = vpop.f32.mrb[12].mxu1 }
0x1108   : > { %v2738_v23 = vadd.f32 %v2732_v22, %v6060_v4  ;;  %v4327_v24 = vpop.f32.mrb[13].mxu1  ;;  %v4618_v4 = vld [vmem:[%s6491_s17 + $0x8] sm:$0xff]  }
0x1109   : > { %v2735_v25 = vpop.f32.mrb[14].mxu1  ;;  %4340 = vmatpush3.bf16.msra.mxu1 %v4618_v4 }
0x110a   : > { %v4328_v26 = vpop.f32.mrb[15].mxu1  ;;  %v2739_v27 = vsel %vm2306_vm9, %v2738_v23, 0.0  ;;  %4353 = vmatprep.subr.bf16.mxu1 %v5151_v0 }
0x110b   : > { %2740 = vadd.xlane.f32.xlu1 %v2739_v27 }
0x110c   : > { %4342 = vmatmul.mubr.msk.bf16.vlgmr.msra.gmra.mrb[16].mxu1 %vm2306_vm9, %v2783_v35 }
0x110d   : > { %4355 = vmatprep.mubr.msk.bf16.mxu1 %vm5152_vm8, %v5151_v0 }
0x1198   : > { %v2741_v29 = vpop.xlane.xlu1 %2740 }
0x1199   : > { %v2743_v30 = vmul.f32 0.03125, %v2741_v29 }
0x119b   : > { %v2744_v31 = vsub.f32 %v2738_v23, %v2743_v30 }
0x119d   : > { %v2745_v6 = vmul.f32 %v2744_v31, %v2744_v31 }
0x119f   : > { %v2746_v32 = vsel %vm2306_vm9, %v2745_v6, 0.0 }
0x11a0   : > { %2747 = vadd.xlane.f32.xlu0 %v2746_v32 }
0x11df   : > { %v2888_v44 = vpop.f32.mrb[16].mxu1 }
0x11e0   : > { %v2947_v45 = vpack.c.bf16 %v2888_v44, %v2888_v44  ;;  %v4343_v46 = vpop.f32.mrb[17].mxu1  ;;  %v4624_v44 = vld [vmem:[%s6496_s20 + $0x8] sm:$0xff]  }
0x11e1   : > { %v2891_v47 = vpop.f32.mrb[18].mxu1 }
0x11e2   : > { %v2953_v3 = vsel %vm2457_vm10, %v2947_v45, 0  ;;  %v4344_v48 = vpop.f32.mrb[19].mxu1  ;;  %3057 = vrot.lane.b32.xlu0 %v2947_v45, %s5154_s2 }
0x11e3   : > { %4354 = vmatpush3.bf16.xpose.msra.mxu1 %v2953_v3 }
0x11e4   : > { %4365 = vmatprep.subr.bf16.mxu1 %v5151_v0 }
0x122d   : > { %v2748_v38 = vpop.xlane.xlu0 %2747 }
0x122e   : > { %v2749_v39 = vmul.f32 0.03125, %v2748_v38  ;;  %v4623_v38 = vld [vmem:[%s6495_s18] sm:$0xff]  }
0x1230   : > { %v2750_v40 = vadd.f32 1e-05, %v2749_v39 }
0x1232   : > { %4639 = vrsqrt.f32 %v2750_v40 }
0x123c   : > { %v4640_v41 = vpop.eup %4639 }
0x123d   : > { %v6146_v42 = vmul.f32 %v4640_v41, %v2744_v31 }
0x123f   : > { %v2782_v43 = vpack.c.bf16 %v6146_v42, %v6146_v42 }
0x1241   : > { %4334 = vmatmul.mubr.msk.bf16.vlgmr.msra.gmra.mrb[16].mxu0 %vm2306_vm9, %v2782_v43 }
0x1242   : > { %4349 = vmatprep.mubr.msk.bf16.mxu0 %vm5152_vm8, %v5151_v0  ;;  %4346 = vmatpush3.bf16.msra.mxu0 %v4621_v56 }
0x1243   : > { %4347 = vmatprep.subr.bf16.mxu0 %v5151_v0 }
0x1246   : > { %4348 = vmatpush3.bf16.msra.mxu0 %v4622_v57 }
0x1247   : > { %4359 = vmatprep.subr.bf16.mxu0 %v5151_v0 }
0x1249   : > { %4350 = vmatmul.mubr.msk.bf16.vlgmr.msra.gmra.mrb[20].mxu0 %vm2306_vm9, %v2783_v35 }
0x124a   : > { %4361 = vmatprep.mubr.msk.bf16.mxu0 %vm5152_vm8, %v5151_v0 }
0x1254   : > { %v3058_v49 = vpop.permute.xlu0 %3057 }
0x1255   : > { %v3063_v53 = vsel %vm2457_vm10, %v3058_v49, 0 }
0x1314   : > { %v2833_v50 = vpop.f32.mrb[16].mxu0 }
0x1315   : > { %v2946_v51 = vpack.c.bf16 %v2833_v50, %v2833_v50  ;;  %v4335_v52 = vpop.f32.mrb[17].mxu0 }
0x1316   : > { %v2836_v54 = vpop.f32.mrb[18].mxu0 }
0x1317   : > { %3054 = vrot.lane.b32.xlu1 %v2946_v51, %s5154_s2  ;;  %v4336_v55 = vpop.f32.mrb[19].mxu0  ;;  %4356 = vmatmul.mubr.msk.bf16.vlgmr.msra.gmra.mrb[20].mxu1 %vm2457_vm10, %v2946_v51 }
0x1318   : > { %4366 = vmatpush3.bf16.xpose.msra.mxu1 %v3063_v53  ;;  %4367 = vmatprep.mubr.msk.bf16.mxu1 %vm5152_vm8, %v5151_v0 }
0x1319   : > { %4377 = vmatprep.subr.bf16.mxu1 %v5151_v0 }
0x131c   : > { %v2940_v18 = vpop.f32.mrb[20].mxu0 }
0x131d   : > { %v4351_v19 = vpop.f32.mrb[21].mxu0  ;;  %v2948_v22 = vpack.c.bf16 %v2940_v18, %v2940_v18 }
0x131e   : > { %v2943_v20 = vpop.f32.mrb[22].mxu0 }
0x131f   : > { %v4352_v21 = vpop.f32.mrb[23].mxu0  ;;  %v3011_v23 = vsel %vm2520_vm15, %v2948_v22, 0 }
0x1320   : > { %4360 = vmatpush3.bf16.msra.mxu0 %v3011_v23 }
0x1321   : > { %4371 = vmatprep.subr.bf16.mxu0 %v5151_v0 }
0x1389   : > { %v3055_v58 = vpop.permute.xlu1 %3054 }
0x138a   : > { %4368 = vmatmul.mubr.msk.bf16.vlgmr.msra.gmra.mrb[24].mxu1 %vm2457_vm10, %v3055_v58 }
0x138b   : > { %4381 = vmatprep.mubr.msk.bf16.mxu1 %vm5152_vm8, %v5151_v0  ;;  %4378 = vmatpush3.bf16.msra.mxu1 %v4623_v38 }
0x138c   : > { %4379 = vmatprep.subr.bf16.mxu1 %v5151_v0 }
0x138f   : > { %4380 = vmatpush3.bf16.msra.mxu1 %v4624_v44 }
0x1390   : > { %4393 = vmatprep.subr.bf16.mxu1 %v5151_v0 }
0x13ea   : > { %v2989_v62 = vpop.f32.mrb[20].mxu1 }
0x13eb   : > { %v2990_v63 = vadd.f32 %v2989_v62, %v2275_v61  ;;  %v4357_v1 = vpop.f32.mrb[21].mxu1  ;;  %v4625_v62 = vld [vmem:[%s1277_s25] sm:$0xff]  }
0x13ec   : > { %v2992_v2 = vpop.f32.mrb[22].mxu1  ;;  %v4628_v1 = vld [vmem:[%s5954_s6 + $0x8] sm:$0xff]  }
0x13ed   : > { %v4358_v5 = vpop.f32.mrb[23].mxu1  ;;  %v2995_v7 = vsel %vm2504_vm14, %v2990_v63, -inf  ;;  %v4629_v2 = vld [vmem:[%s5954_s6 + $0x10] sm:$0xff]  }
0x13ee   : > { %2996 = vmax.xlane.f32.xlu1 %v2995_v7 }
0x145d   : > { %v3099_v8 = vpop.f32.mrb[24].mxu1 }
0x145e   : > { %v3100_v9 = vadd.f32 %v3099_v8, %v2275_v61  ;;  %v4369_v10 = vpop.f32.mrb[25].mxu1 }
0x145f   : > { %v3102_v11 = vpop.f32.mrb[26].mxu1 }
0x1460   : > { %v4370_v12 = vpop.f32.mrb[27].mxu1  ;;  %v3105_v13 = vsel %vm2504_vm14, %v3100_v9, -inf }
0x1461   : > { %3106 = vmax.xlane.f32.xlu0 %v3105_v13  ;;  %v4630_v12 = vld [vmem:[%s5954_s6 + $0x18] sm:$0xff]  }
0x147b   : > { %v2997_v28 = vpop.xlane.xlu1 %2996 }
0x147c   : > { %v2998_v14 = vsub.f32 %v2990_v63, %v2997_v28  ;;  %v4627_v63 = vld [vmem:[%s5954_s6] sm:$0xff]  }
0x147e   : > { %v2999_v15 = vmul.f32 1.442695, %v2998_v14 }
0x1480   : > { %4641 = vpow2.f32 %v2999_v15 }
0x148a   : > { %v4642_v16 = vpop.eup %4641 }
0x148b   : > { %v3001_v17 = vsel %vm2504_vm14, %v4642_v16, 0.0 }
0x148c   : > { %3002 = vadd.xlane.f32.xlu0 %v3001_v17 }
0x14a2   : > { %3118 = vrot.lane.b32.xlu0 %v2948_v22, %s5154_s2 }
0x14ee   : > { %v3107_v24 = vpop.xlane.xlu0 %3106 }
0x14ef   : > { %v3108_v25 = vsub.f32 %v3100_v9, %v3107_v24 }
0x14f1   : > { %v3109_v26 = vmul.f32 1.442695, %v3108_v25 }
0x14f3   : > { %4643 = vpow2.f32 %v3109_v26 }
0x14fd   : > { %v4644_v27 = vpop.eup %4643 }
0x14fe   : > { %v3111_v29 = vsel %vm2504_vm14, %v4644_v27, 0.0 }
0x14ff   : > { %3112 = vadd.xlane.f32.xlu1 %v3111_v29 }
0x1519   : > { %v3003_v30 = vpop.xlane.xlu0 %3002 }
0x151a   : > { %4645 = vrcp.f32 %v3003_v30 }
0x151d   : > { %v3119_v6 = vpop.permute.xlu0 %3118 }
0x151e   : > { %v3124_v4 = vsel %vm2520_vm15, %v3119_v6, 0 }
0x1524   : > { %v4646_v31 = vpop.eup %4645 }
0x1525   : > { %v3005_v32 = vmul.f32 %v4646_v31, %v4642_v16 }
0x1527   : > { %v3006_v33 = vpack.c.bf16 %v3005_v32, %v3005_v32 }
0x1529   : > { %4362 = vmatmul.mubr.msk.bf16.vlgmr.msra.gmra.mrb[24].mxu0 %vm2504_vm14, %v3006_v33 }
0x152a   : > { %4372 = vmatpush3.bf16.msra.mxu0 %v3124_v4  ;;  %4373 = vmatprep.mubr.msk.bf16.mxu0 %vm5152_vm8, %v5151_v0 }
0x152b   : > { %4385 = vmatprep.subr.bf16.mxu0 %v5151_v0 }
0x158c   : > { %v3113_v34 = vpop.xlane.xlu1 %3112 }
0x158d   : > { %4647 = vrcp.f32 %v3113_v34 }
0x1597   : > { %v4648_v35 = vpop.eup %4647 }
0x1598   : > { %v3115_v36 = vmul.f32 %v4648_v35, %v4644_v27 }
0x159a   : > { %v3116_v37 = vpack.c.bf16 %v3115_v36, %v3115_v36 }
0x159c   : > { %4374 = vmatmul.mubr.msk.bf16.vlgmr.msra.gmra.mrb[28].mxu0 %vm2504_vm14, %v3116_v37 }
0x159d   : > { %4389 = vmatprep.mubr.msk.bf16.mxu0 %vm5152_vm8, %v5151_v0  ;;  %4386 = vmatpush3.bf16.msra.mxu0 %v4625_v62 }
0x159e   : > { %4387 = vmatprep.subr.bf16.mxu0 %v5151_v0 }
0x15fc   : > { %v3047_v39 = vpop.f32.mrb[24].mxu0 }
0x15fd   : > { %v4363_v40 = vpop.f32.mrb[25].mxu0 }
0x15fe   : > { %v3050_v41 = vpop.f32.mrb[26].mxu0 }
0x15ff   : > { %v4364_v43 = vpop.f32.mrb[27].mxu0 }
0x166f   : > { %v3160_v45 = vpop.f32.mrb[28].mxu0 }
0x1670   : > { %3167 = vrot.lane.b32.xlu1 %v3160_v45, %s5155_s26  ;;  %v4375_v46 = vpop.f32.mrb[29].mxu0 }
0x1671   : > { %v3163_v47 = vpop.f32.mrb[30].mxu0 }
0x1672   : > { %v4376_v3 = vpop.f32.mrb[31].mxu0 }
0x16e2   : > { %v3168_v48 = vpop.permute.xlu1 %3167 }
0x16e3   : > { %v3170_v49 = vsel %vm2457_vm10, %v3047_v39, %v3168_v48 }
0x16e4   : > { %v3171_v50 = vpack.c.bf16 %v3170_v49, %v3170_v49 }
0x16e6   : > { %4382 = vmatmul.mubr.msk.bf16.vlgmr.msra.gmra.mrb[28].mxu1 %vm2306_vm9, %v3171_v50 }
0x16e7   : > { %4401 = vmatprep.mubr.msk.bf16.mxu1 %vm5152_vm8, %v5151_v0  ;;  %4394 = vmatpush3.bf16.msra.mxu1 %v4627_v63 }
0x16e8   : > { %4395 = vmatprep.subr.bf16.mxu1 %v5151_v0 }
0x16eb   : > { %4396 = vmatpush3.bf16.msra.mxu1 %v4628_v1 }
0x16ec   : > { %4397 = vmatprep.subr.bf16.mxu1 %v5151_v0 }
0x16ef   : > { %4398 = vmatpush3.bf16.msra.mxu1 %v4629_v2 }
0x16f0   : > { %4399 = vmatprep.subr.bf16.mxu1 %v5151_v0 }
0x16f3   : > { %4400 = vmatpush3.bf16.msra.mxu1 %v4630_v12 }
0x17b9   : > { %v3221_v51 = vpop.f32.mrb[28].mxu1 }
0x17ba   : > { %v3227_v52 = vadd.f32 %v3221_v51, %v6146_v42  ;;  %v4383_v53 = vpop.f32.mrb[29].mxu1  ;;  %v4626_v42 = vld [vmem:[%s1277_s25 + $0x8] sm:$0xff]  }
0x17bb   : > { %v3224_v54 = vpop.f32.mrb[30].mxu1  ;;  %4388 = vmatpush3.bf16.msra.mxu0 %v4626_v42 }
0x17bc   : > { %v4384_v55 = vpop.f32.mrb[31].mxu1  ;;  %v3228_v56 = vsel %vm2306_vm9, %v3227_v52, 0.0 }
0x17bd   : > { %3229 = vadd.xlane.f32.xlu1 %v3228_v56 }
0x184a   : > { %v3230_v57 = vpop.xlane.xlu1 %3229 }
0x184b   : > { %v3231_v58 = vmul.f32 0.03125, %v3230_v57 }
0x184d   : > { %v3232_v59 = vsub.f32 %v3227_v52, %v3231_v58 }
0x184f   : > { %v3233_v60 = vmul.f32 %v3232_v59, %v3232_v59 }
0x1851   : > { %v3234_v61 = vsel %vm2306_vm9, %v3233_v60, 0.0 }
0x1852   : > { %3235 = vadd.xlane.f32.xlu0 %v3234_v61 }
0x18df   : > { %v3236_v5 = vpop.xlane.xlu0 %3235 }
0x18e0   : > { %v3237_v7 = vmul.f32 0.03125, %v3236_v5 }
0x18e2   : > { %v3238_v8 = vadd.f32 1e-05, %v3237_v7 }
0x18e4   : > { %4649 = vrsqrt.f32 %v3238_v8 }
0x18ee   : > { %v4650_v9 = vpop.eup %4649 }
0x18ef   : > { %v3240_v10 = vmul.f32 %v4650_v9, %v3232_v59 }
0x18f1   : > { %v3241_v11 = vpack.c.bf16 %v3240_v10, %v3240_v10 }
0x18f3   : > { %4390 = vmatmul.mubr.msk.bf16.vlgmr.msra.gmra.mrb[32].mxu0 %vm2306_vm9, %v3241_v11 }
0x19c6   : > { %v3291_v13 = vpop.f32.mrb[32].mxu0 }
0x19c7   : > { %v3297_v28 = vmax.f32 %v3291_v13, 0.0  ;;  %v4391_v14 = vpop.f32.mrb[33].mxu0 }
0x19c8   : > { %v3294_v15 = vpop.f32.mrb[34].mxu0 }
0x19c9   : > { %v3298_v16 = vpack.c.bf16 %v3297_v28, %v3297_v28  ;;  %v4392_v17 = vpop.f32.mrb[35].mxu0 }
0x19cb   : > { %4402 = vmatmul.mubr.msk.bf16.vlgmr.msra.gmra.mrb[32].mxu1 %vm3323_vm1, %v3298_v16 }
0x1a9e   : > { %v3361_v0 = vpop.f32.mrb[32].mxu1 }
0x1a9f   : > { %v3367_v18 = vadd.f32 %v3361_v0, %v3240_v10  ;;  %v4403_v19 = vpop.f32.mrb[33].mxu1 }
0x1aa0   : > { %v3364_v20 = vpop.f32.mrb[34].mxu1 }
0x1aa1   : > { %v4404_v21 = vpop.f32.mrb[35].mxu1  ;;  %v3368_v22 = vsel %vm2306_vm9, %v3367_v18, 0.0 }
0x1aa2   : > { %3369 = vadd.xlane.f32.xlu0 %v3368_v22 }
0x1b2f   : > { %v3370_v23 = vpop.xlane.xlu0 %3369 }
0x1b30   : > { %v3371_v24 = vmul.f32 0.03125, %v3370_v23 }
0x1b32   : > { %v3372_v25 = vsub.f32 %v3367_v18, %v3371_v24 }
0x1b34   : > { %v3373_v26 = vmul.f32 %v3372_v25, %v3372_v25 }
0x1b36   : > { %v3374_v27 = vsel %vm2306_vm9, %v3373_v26, 0.0 }
0x1b37   : > { %3375 = vadd.xlane.f32.xlu1 %v3374_v27 }
0x1bc4   : > { %v3376_v29 = vpop.xlane.xlu1 %3375 }
0x1bc5   : > { %v3377_v30 = vmul.f32 0.03125, %v3376_v29 }
0x1bc7   : > { %v3378_v31 = vadd.f32 1e-05, %v3377_v30 }
0x1bc9   : > { %4651 = vrsqrt.f32 %v3378_v31 }
0x1bd3   : > { %v4652_v6 = vpop.eup %4651 }
0x1bd4   : > { %v3380_v32 = vmul.f32 %v4652_v6, %v3372_v25 }
0x1bd6   : > { %3381 = vst.msk [vmem:[#allocation3] sm:$0xff] %vm2306_vm9, %v3380_v32 }
0x1bd7 PF: > { %s6497_s8 = sld [smem:[#allocation36_spill]] }
0x1bdd   : > { %p4087_p5 = scmp.ne.s32.totalorder %s6497_s8, 3 }
0x1bde   : > { %s6498_s6 = sld [smem:[#allocation73_spill]] (!%p4087_p5)  ;;  %v5156_v4 = vmov (!%p4087_p5), 0.0   ;;  %vm5157_vm2 = vmmov (!%p4087_p5), 0   ;;  %v3386_v35 = vld [vmem:[#allocation3] sm:$0xff] (!%p4087_p5)  ;;  %vm3411_vm3 = vcmask (!%p4087_p5), 261120   ;;  %s6500_s10 = sld [smem:[#allocation74_spill]] (!%p4087_p5) }
0x1bdf   : > { %3385 = sbr.rel (%p4087_p5) target bundleno = 7363 (0x1cc3), region = 176  ;;  %4405 = vmatprep.subr.bf16.mxu0 (!%p4087_p5), %v5156_v4  ;;  %4409 = vmatprep.mubr.msk.bf16.mxu0 (!%p4087_p5), %vm5157_vm2, %v5156_v4  ;;  %v3387_v36 = vpack.c.bf16 (!%p4087_p5), %v3386_v35, %v3386_v35 }
0x1be4   : > { %s6499_s25 = smov (!%p4087_p5), %s6498_s6  ;;  %v4653_v33 = vld [vmem:[%s6498_s6] sm:$0xff] (!%p4087_p5)  }
0x1be5   : > { %4406 = vmatpush3.bf16.msra.mxu0 (!%p4087_p5), %v4653_v33  ;;  %v4654_v34 = vld [vmem:[%s6499_s25 + $0x8] sm:$0xff] (!%p4087_p5)   ;;  %v4088_v37 = vld [vmem:[%s6500_s10] ss:$0 sm:$0xff] (!%p4087_p5) }
0x1be6   : > { %4407 = vmatprep.subr.bf16.mxu0 %v5156_v4 }
0x1be9   : > { %4408 = vmatpush3.bf16.msra.mxu0 %v4654_v34 }
0x1bec   : > { %4410 = vmatmul.mubr.msk.bf16.vlgmr.msra.gmra.mrb[0].mxu0 %vm3411_vm3, %v3387_v36 }
0x1cbf   : > { %v3449_v38 = vpop.f32.mrb[0].mxu0 }
0x1cc0   : > { %v3450_v39 = vadd.f32 %v4088_v37, %v3449_v38  ;;  %v4411_v40 = vpop.f32.mrb[1].mxu0 }
0x1cc1   : > { %v3452_v41 = vpop.f32.mrb[2].mxu0 }
0x1cc2   : > { %3455 = vst [vmem:[%s1463_s24] sm:$0xff] %v3450_v39  ;;  %v4412_v43 = vpop.f32.mrb[3].mxu0 }
0x1cc3 PF: > { %s6501_s22 = sld [smem:[#allocation37_spill]]  ;;  %s6502_s15 = sld [smem:[#allocation47_spill]] }
0x1cc4   : > { %s6503_s0 = sld [smem:[#allocation75_spill]]  ;;  %s3470_s5 = sshll.u32 %s1463_s24, 4  ;;  %s3471_s5 = int_to_ptr.vmem [resolvable:$true] %s3470_s5 }
0x1cc5   : > { %s3457_s19 = scalar_lea.sflag [#allocation6], %s5850_s21  ;;  %s4985_s26 = scalar_lea.vmem %s3471_s5, 128 }
0x1cc6   : > { %p4986_p4 = scmp.ne.s32.totalorder %s3471_s5, %s4985_s26  ;;  %s5158_s11 = smov [#allocation22]  }
0x1cc7   : > { %s4989_s17 = sshll.u32 %s5158_s11, 4  ;;  %s4990_s17 = int_to_ptr.vmem [resolvable:$false] %s4989_s17 }
0x1cc8   : > { %s4991_s28 = scalar_lea.vmem %s4990_s17, 256  ;;  %p4992_p13 = scmp.lt.s32.totalorder %s3471_s5, %s4990_s17 }
0x1cc9   : > { %s4093_s9 = sshll.u32 %s6501_s22, 7  ;;  %p6505_p7 = scmp.ne.s32.totalorder %s6502_s15, 0 }
0x1cca   : > { %s6504_s12 = smov %s6503_s0  ;;  %s6239_s29 = scalar_lea.hbm %s6503_s0, %s4093_s9 }
0x1ccb   : > { %p4987_p3 = pnand %p4986_p4, %p6505_p7  ;;  %p4993_p10 = scmp.lt.s32.totalorder %s4991_s28, %s4985_s26 }
0x1ccd   : > { %p4988_p12 = pneg %p4987_p3  ;;  %p4994_p0 = por %p4993_p10, %p4992_p13 }
0x1ccf   : > { %p4995_p2 = pnand %p4994_p0, %p4988_p12 }
0x1cd1   : > { %4998 = shalt.err (!%p4995_p2)
}
0x1cd2   : > { %s4999_s21 = scalar_lea.hbm %s6239_s29, 128  ;;  %s5003_s13 = scalar_lea.hbm %s6504_s12, 256 }
0x1cd3   : > { %p5000_p6 = scmp.ne.s32.totalorder %s6239_s29, %s4999_s21  ;;  %p5004_p8 = scmp.lt.u32.totalorder %s6239_s29, %s6504_s12 }
0x1cd4   : > { %p5005_p9 = scmp.lt.u32.totalorder %s5003_s13, %s4999_s21  ;;  %p5007_p4 = scmp.lt.u32.totalorder %s4999_s21, %s6239_s29 }
0x1cd5   : > { %p5001_p11 = pnand %p5000_p6, %p6505_p7 }
0x1cd6   : > { %p5006_p5 = por %p5005_p9, %p5004_p8 }
0x1cd7   : > { %p5002_p1 = pneg %p5001_p11 }
0x1cd8   : > { %p5008_p3 = por %p5007_p4, %p5006_p5 }
0x1cda   : > { %p5009_p12 = pnand %p5008_p3, %p5002_p1 }
0x1cdc   : > { %5012 = shalt.err (!%p5009_p12)
}
0x1cdd   : > { %4435 = dma.vmem_to_hbm [thread:$0]  (%p6505_p7), %s3471_s5, 128, %s6239_s29, %s3457_s19  }
0x1cde PF: > { %s6506_s20 = sld [smem:[#allocation40_spill]]  ;;  %s6507_s8 = sld [smem:[#allocation33_spill]] }
0x1cdf   : > { %s6508_s23 = sld [smem:[#allocation48_spill]] }
0x1ce4   : > { %p4476_p13 = scmp.ge.s32.totalorder %s6506_s20, 2  ;;  %s3482_s27 = sand.u32 1, %s6507_s8  }
0x1ce5   : > { %p6509_p10 = scmp.ne.s32.totalorder %s6508_s23, 0  ;;  %s3483_s6 = scalar_lea.sflag [#allocation6], %s3482_s27 }
0x1ce7   : > { %p4472_p0 = pnand %p4476_p13, %p6509_p10 }
0x1ce9   : > { %5086 = dma.done.wait (!%p4472_p0), %s3483_s6, 128  }
0x1cea   : > { %5088 = vsyncadd (!%p4472_p0), %s3483_s6, 4294967168  ;;  %s55_s3 = sadd.s32 1, %s6506_s20   ;;  %s6510_s5 = sld [smem:[#allocation31_spill]] }
0x1ceb   : > { %p52_p2 = scmp.ge.s32.totalorder %s55_s3, 10   ;;  %s6511_s26 = sld [smem:[#allocation32_spill]] }
0x1cec   : > { %s6512_s27 = sld [smem:[#allocation50_spill]]  ;;  %s6513_s28 = sld [smem:[#allocation34_spill]] }
0x1ced   : > { %s6514_s6 = sld [smem:[#allocation35_spill]]  ;;  %s6515_s2 = sld [smem:[#allocation45_spill]] }
0x1cee   : > { %s6516_s29 = sld [smem:[#allocation38_spill]]  ;;  %s6517_s0 = sld [smem:[#allocation39_spill]] }
0x1cef   : > { %s6518_s7 = sld [smem:[#allocation42_spill]]  ;;  %s6519_s30 = sld [smem:[#allocation43_spill]] }
0x1cf0   :  { %54 = sbr.rel (!%p52_p2) target bundleno = 45 (0x2d), region = 330 }
0x1cf7   :  { %3488 = vsyncpa [#allocation5], 1 }
0x1cf8   :  { %3490 = vsyncpa [#allocation5 + $0x1], 1 }
0x1cf9   :  { %3491 = vsyncpa [#allocation8], 1 }
0x1cfa   :  { %3493 = vsyncpa [#allocation8 + $0x1], 1 }
0x1cfb   :  { %3494 = vsyncpa [#allocation11], 1 }
0x1cfc   :  { %3496 = vsyncpa [#allocation11 + $0x1], 1 }
0x1cfd   :  { %3497 = vsyncpa [#allocation14], 1 }
0x1cfe   :  { %3499 = vsyncpa [#allocation14 + $0x1], 1 }
0x1cff   :  { %3500 = vsyncpa [#allocation17], 1 }
0x1d00   :  { %3502 = vsyncpa [#allocation17 + $0x1], 1 }
0x1d01   :  { %3503 = vsyncpa [#allocation20], 1 }
0x1d02   :  { %3505 = vsyncpa [#allocation20 + $0x1], 1 }
0x1d03   :  { %3506 = vsyncpa [#allocation6], 1 }
0x1d04   :  { %3508 = vsyncpa [#allocation6 + $0x1], 1 }

</bundles_post_ra>
